<compile_context>
chip_gen: v5e
topology: v5e:2x2
jax: 0.10.0
libtpu: 0.0.40
codegen_flags: <defaults>
</compile_context>

<pallas_src>
import jax
import jax.numpy as jnp
from jax.experimental import pallas as pl
from jax.experimental.pallas import tpu as pltpu

BN_EPS = 1e-5       # PyTorch BatchNorm1d default eps
OUT_PAD = 128       # fc3 output (40) padded to a lane-dense 128; sliced in wrapper


def _round_up(n, m):
    return ((n + m - 1) // m) * m


def _mlp_kernel(x_ref, w1_ref, b1_ref, w2_ref, b2_ref, w3_ref, b3_ref, o_ref):
    # fc1 (+ folded bn1) + ReLU : bf16 x bf16 on the MXU, f32 accumulate.
    h1 = jnp.dot(x_ref[...].astype(jnp.bfloat16), w1_ref[...],
                 preferred_element_type=jnp.float32) + b1_ref[...]
    h1 = jnp.maximum(h1, 0.0)
    # fc2 (+ folded bn2) + ReLU
    h2 = jnp.dot(h1.astype(jnp.bfloat16), w2_ref[...],
                 preferred_element_type=jnp.float32) + b2_ref[...]
    h2 = jnp.maximum(h2, 0.0)
    # fc3 (columns zero-padded to OUT_PAD -> unmasked lane-dense store)
    h3 = jnp.dot(h2.astype(jnp.bfloat16), w3_ref[...],
                 preferred_element_type=jnp.float32) + b3_ref[...]
    o_ref[...] = h3.astype(o_ref.dtype)


def normalized_model_forward(x, params):
    """x: (B, input_dim) float32.  params: dict from init_params (bf16 weights,
    BN already folded into w1/b1 and w2/b2)."""
    B, D = x.shape
    H1 = params["w1"].shape[1]          # 256
    H2 = params["w2"].shape[1]          # 128
    out_dim = params["out_dim"]         # 40 (true fc3 width)

    # Batch tiling: round B up to a multiple of 8, cap the tile at 512 rows,
    # pad the batch to a multiple of TB (sliced off at the end).
    B8 = _round_up(B, 8)
    TB = B8 if B8 <= 512 else 512
    Bp = _round_up(B8, TB)
    nb = Bp // TB
    if Bp != B:
        x = jnp.pad(x, ((0, Bp - B), (0, 0)))

    resident = lambda a: pl.BlockSpec(a.shape, lambda i: (0, 0))

    out_padded = pl.pallas_call(
        _mlp_kernel,
        out_shape=jax.ShapeDtypeStruct((Bp, OUT_PAD), jnp.float32),
        grid=(nb,),
        in_specs=[
            pl.BlockSpec((TB, D), lambda i: (i, 0)),     # x   (batch-tiled)
            resident(params["w1"]),                      # w1  (VMEM-resident)
            resident(params["b1"]),
            resident(params["w2"]),                      # w2  (VMEM-resident)
            resident(params["b2"]),
            resident(params["w3"]),                      # w3  (VMEM-resident, padded)
            resident(params["b3"]),
        ],
        out_specs=pl.BlockSpec((TB, OUT_PAD), lambda i: (i, 0)),
        compiler_params=pltpu.CompilerParams(
            dimension_semantics=("parallel",),
            vmem_limit_bytes=48 << 20,   # fits v7x's 64 MiB VMEM with headroom
        ),
    )(x, params["w1"], params["b1"], params["w2"], params["b2"],
      params["w3"], params["b3"])

    return out_padded[:B, :out_dim]


def init_params(key, input_dim=4096, h1=256, h2=128, out_dim=40):
    """Deterministic synthetic parameters matching the PyTorch module's shapes.

    nn.Linear weight (out, in) is stored transposed as (in, out) so the kernel
    computes x @ W + b.  Eval-mode BatchNorm (gamma, beta, running mean/var) is
    folded into the preceding linear's weight/bias here (done ONCE, not per
    call).  Weights are kept in bf16; biases stay f32.  fc3 is zero-padded to
    OUT_PAD columns.
    """
    ks = jax.random.split(key, 14)

    def linear_f32(kw, kb, fan_in, fan_out):
        bound = 1.0 / jnp.sqrt(fan_in)
        w = jax.random.uniform(kw, (fan_in, fan_out), jnp.float32, -bound, bound)
        b = jax.random.uniform(kb, (1, fan_out), jnp.float32, -bound, bound)
        return w, b

    def batchnorm(kg, kb, km, kv, c):
        gamma = 1.0 + 0.1 * jax.random.normal(kg, (1, c), jnp.float32)
        beta = 0.1 * jax.random.normal(kb, (1, c), jnp.float32)
        mean = 0.1 * jax.random.normal(km, (1, c), jnp.float32)
        var = jax.random.uniform(kv, (1, c), jnp.float32, 0.5, 1.5)
        return gamma, beta, mean, var

    def fold_bn(w, b, gamma, beta, mean, var):
        scale = gamma * jax.lax.rsqrt(var + BN_EPS)          # (1, C)
        w_f = w * scale                                      # per output column
        b_f = (b - mean) * scale + beta
        return w_f.astype(jnp.bfloat16), b_f

    # Layer 1: fc1 + bn1 folded
    w1, b1 = linear_f32(ks[0], ks[1], input_dim, h1)
    g1, bt1, m1, v1 = batchnorm(ks[2], ks[3], ks[4], ks[5], h1)
    w1f, b1f = fold_bn(w1, b1, g1, bt1, m1, v1)

    # Layer 2: fc2 + bn2 folded
    w2, b2 = linear_f32(ks[6], ks[7], h1, h2)
    g2, bt2, m2, v2 = batchnorm(ks[8], ks[9], ks[10], ks[11], h2)
    w2f, b2f = fold_bn(w2, b2, g2, bt2, m2, v2)

    # Layer 3: fc3, zero-padded to OUT_PAD columns
    w3, b3 = linear_f32(ks[12], ks[13], h2, out_dim)
    w3 = jnp.pad(w3, ((0, 0), (0, OUT_PAD - out_dim))).astype(jnp.bfloat16)
    b3 = jnp.pad(b3, ((0, 0), (0, OUT_PAD - out_dim)))

    return {"w1": w1f, "b1": b1f, "w2": w2f, "b2": b2f,
            "w3": w3, "b3": b3, "out_dim": out_dim}


def _ref_forward(x, p):
    """Pure-JAX f32 reference using the exact (BN-folded, bf16-rounded) weights."""
    h = jnp.maximum(x @ p["w1"].astype(jnp.float32) + p["b1"], 0.0)
    h = jnp.maximum(h @ p["w2"].astype(jnp.float32) + p["b2"], 0.0)
    h = h @ p["w3"].astype(jnp.float32) + p["b3"]
    return h[:, :p["out_dim"]]


if __name__ == "__main__":
    key = jax.random.PRNGKey(0)
    kx, kp = jax.random.split(key)

    input_dim = 4096
    batch = 8
    x = jax.random.normal(kx, (batch, input_dim), jnp.float32)
    params = init_params(kp, input_dim=input_dim)

    out = normalized_model_forward(x, params)
    out = jax.block_until_ready(out)

    ref = _ref_forward(x, params)
    assert out.shape == (batch, 40)
    # bf16 inputs to the MXU (f32 accumulate) -> loosen tolerance vs the f32 reference.
    assert jnp.allclose(out, ref, atol=2e-2, rtol=2e-2), float(jnp.max(jnp.abs(out - ref)))

    print("KERNEL_OK")
</pallas_src>

<mosaic_0001>
module attributes {stable_mosaic.version = 11 : i64} {
  func.func @_mlp_kernel(%arg0: i32, %arg1: memref<8x4096xf32, #tpu.memory_space<vmem>>, %arg2: memref<4096x256xbf16, #tpu.memory_space<vmem>>, %arg3: memref<1x256xf32, #tpu.memory_space<vmem>>, %arg4: memref<256x128xbf16, #tpu.memory_space<vmem>>, %arg5: memref<1x128xf32, #tpu.memory_space<vmem>>, %arg6: memref<128x128xbf16, #tpu.memory_space<vmem>>, %arg7: memref<1x128xf32, #tpu.memory_space<vmem>>, %arg8: memref<8x128xf32, #tpu.memory_space<vmem>>) attributes {dimension_semantics = [#tpu.dimension_semantics<parallel>], iteration_bounds = array<i64: 1>, scalar_prefetch = 0 : i64, scratch_operands = 0 : i64, tpu.core_type = #tpu.core_type<tc>, window_params = [{transform_indices = @transform_0, window_bounds = array<i64: 8, 4096>}, {pipeline_mode = #tpu.pipeline_mode<synchronous>, transform_indices = @transform_1, window_bounds = array<i64: 4096, 256>}, {pipeline_mode = #tpu.pipeline_mode<synchronous>, transform_indices = @transform_2, window_bounds = array<i64: 1, 256>}, {pipeline_mode = #tpu.pipeline_mode<synchronous>, transform_indices = @transform_3, window_bounds = array<i64: 256, 128>}, {pipeline_mode = #tpu.pipeline_mode<synchronous>, transform_indices = @transform_4, window_bounds = array<i64: 1, 128>}, {pipeline_mode = #tpu.pipeline_mode<synchronous>, transform_indices = @transform_5, window_bounds = array<i64: 128, 128>}, {pipeline_mode = #tpu.pipeline_mode<synchronous>, transform_indices = @transform_6, window_bounds = array<i64: 1, 128>}, {transform_indices = @transform_7, window_bounds = array<i64: 8, 128>}]} {
    %c0 = arith.constant 0 : index
    %c0_0 = arith.constant 0 : index
    %0 = vector.load %arg1[%c0, %c0_0] : memref<8x4096xf32, #tpu.memory_space<vmem>>, vector<8x4096xf32>
    %1 = arith.truncf %0 : vector<8x4096xf32> to vector<8x4096xbf16>
    %c0_1 = arith.constant 0 : index
    %c0_2 = arith.constant 0 : index
    %2 = vector.load %arg2[%c0_1, %c0_2] : memref<4096x256xbf16, #tpu.memory_space<vmem>>, vector<4096x256xbf16>
    %cst = arith.constant dense<0.000000e+00> : vector<8x256xf32>
    %3 = tpu.matmul %1, %2, %cst {dimension_numbers = #tpu.dot_dimension_numbers<[1], [0], [0], [1], [0, 0, 1, 1], [], []>} : vector<8x4096xbf16>, vector<4096x256xbf16>, vector<8x256xf32> -> vector<8x256xf32>
    %c0_3 = arith.constant 0 : index
    %c0_4 = arith.constant 0 : index
    %4 = vector.load %arg3[%c0_3, %c0_4] : memref<1x256xf32, #tpu.memory_space<vmem>>, vector<1x256xf32>
    %5 = vector.broadcast %4 : vector<1x256xf32> to vector<8x256xf32>
    %6 = arith.addf %3, %5 : vector<8x256xf32>
    %cst_5 = arith.constant 0.000000e+00 : f32
    %7 = vector.broadcast %cst_5 : f32 to vector<8x256xf32>
    %8 = arith.maximumf %6, %7 : vector<8x256xf32>
    %9 = arith.truncf %8 : vector<8x256xf32> to vector<8x256xbf16>
    %c0_6 = arith.constant 0 : index
    %c0_7 = arith.constant 0 : index
    %10 = vector.load %arg4[%c0_6, %c0_7] : memref<256x128xbf16, #tpu.memory_space<vmem>>, vector<256x128xbf16>
    %cst_8 = arith.constant dense<0.000000e+00> : vector<8x128xf32>
    %11 = tpu.matmul %9, %10, %cst_8 {dimension_numbers = #tpu.dot_dimension_numbers<[1], [0], [0], [1], [0, 0, 1, 1], [], []>} : vector<8x256xbf16>, vector<256x128xbf16>, vector<8x128xf32> -> vector<8x128xf32>
    %c0_9 = arith.constant 0 : index
    %c0_10 = arith.constant 0 : index
    %12 = vector.load %arg5[%c0_9, %c0_10] : memref<1x128xf32, #tpu.memory_space<vmem>>, vector<1x128xf32>
    %13 = vector.broadcast %12 : vector<1x128xf32> to vector<8x128xf32>
    %14 = arith.addf %11, %13 : vector<8x128xf32>
    %cst_11 = arith.constant 0.000000e+00 : f32
    %15 = vector.broadcast %cst_11 : f32 to vector<8x128xf32>
    %16 = arith.maximumf %14, %15 : vector<8x128xf32>
    %17 = arith.truncf %16 : vector<8x128xf32> to vector<8x128xbf16>
    %c0_12 = arith.constant 0 : index
    %c0_13 = arith.constant 0 : index
    %18 = vector.load %arg6[%c0_12, %c0_13] : memref<128x128xbf16, #tpu.memory_space<vmem>>, vector<128x128xbf16>
    %cst_14 = arith.constant dense<0.000000e+00> : vector<8x128xf32>
    %19 = tpu.matmul %17, %18, %cst_14 {dimension_numbers = #tpu.dot_dimension_numbers<[1], [0], [0], [1], [0, 0, 1, 1], [], []>} : vector<8x128xbf16>, vector<128x128xbf16>, vector<8x128xf32> -> vector<8x128xf32>
    %c0_15 = arith.constant 0 : index
    %c0_16 = arith.constant 0 : index
    %20 = vector.load %arg7[%c0_15, %c0_16] : memref<1x128xf32, #tpu.memory_space<vmem>>, vector<1x128xf32>
    %21 = vector.broadcast %20 : vector<1x128xf32> to vector<8x128xf32>
    %22 = arith.addf %19, %21 : vector<8x128xf32>
    %c0_17 = arith.constant 0 : index
    %c0_18 = arith.constant 0 : index
    %23 = vector.load %arg8[%c0_17, %c0_18] : memref<8x128xf32, #tpu.memory_space<vmem>>, vector<8x128xf32>
    tpu.vector_store %arg8[%c0_17, %c0_18], %22 {strides = array<i32>} : memref<8x128xf32, #tpu.memory_space<vmem>>, vector<8x128xf32>,
    return
  }
  func.func @transform_0(%arg0: i32) -> (i32, i32) {
    %c0_i32 = arith.constant 0 : i32
    %c0_i32_0 = arith.constant 0 : i32
    return %arg0, %c0_i32 : i32, i32
  }
  func.func @transform_1(%arg0: i32) -> (i32, i32) {
    %c0_i32 = arith.constant 0 : i32
    %c0_i32_0 = arith.constant 0 : i32
    %c0_i32_1 = arith.constant 0 : i32
    return %c0_i32, %c0_i32_0 : i32, i32
  }
  func.func @transform_2(%arg0: i32) -> (i32, i32) {
    %c0_i32 = arith.constant 0 : i32
    %c0_i32_0 = arith.constant 0 : i32
    %c0_i32_1 = arith.constant 0 : i32
    return %c0_i32, %c0_i32_0 : i32, i32
  }
  func.func @transform_3(%arg0: i32) -> (i32, i32) {
    %c0_i32 = arith.constant 0 : i32
    %c0_i32_0 = arith.constant 0 : i32
    %c0_i32_1 = arith.constant 0 : i32
    return %c0_i32, %c0_i32_0 : i32, i32
  }
  func.func @transform_4(%arg0: i32) -> (i32, i32) {
    %c0_i32 = arith.constant 0 : i32
    %c0_i32_0 = arith.constant 0 : i32
    %c0_i32_1 = arith.constant 0 : i32
    return %c0_i32, %c0_i32_0 : i32, i32
  }
  func.func @transform_5(%arg0: i32) -> (i32, i32) {
    %c0_i32 = arith.constant 0 : i32
    %c0_i32_0 = arith.constant 0 : i32
    %c0_i32_1 = arith.constant 0 : i32
    return %c0_i32, %c0_i32_0 : i32, i32
  }
  func.func @transform_6(%arg0: i32) -> (i32, i32) {
    %c0_i32 = arith.constant 0 : i32
    %c0_i32_0 = arith.constant 0 : i32
    %c0_i32_1 = arith.constant 0 : i32
    return %c0_i32, %c0_i32_0 : i32, i32
  }
  func.func @transform_7(%arg0: i32) -> (i32, i32) {
    %c0_i32 = arith.constant 0 : i32
    %c0_i32_0 = arith.constant 0 : i32
    return %arg0, %c0_i32 : i32, i32
  }
}

</mosaic_0001>

<bundles_post_ra>
// kernel: tpu_custom_call.1
= control target key start
LH: loop header
LB: loop body
LE: loop exit
PB: predicated region body
PF: predicated region fallthrough
CT: control target
= control target key end

     0   :  { %12 = vsyncpa [#allocation3], 0  ;;  %s7499_s0 = inlined_call_operand.hbm [shape: f32[8,4096], index: 0, kind: input, shape index: {}]   ;;  %s7500_s1 = inlined_call_operand.hbm [shape: bf16[4096,256], index: 1, kind: input, shape index: {}]   ;;  %s7501_s2 = inlined_call_operand.hbm [shape: f32[1,256], index: 2, kind: input, shape index: {}]   ;;  %s7502_s3 = inlined_call_operand.hbm [shape: bf16[256,128], index: 3, kind: input, shape index: {}]   ;;  %s7503_s4 = inlined_call_operand.hbm [shape: f32[1,128], index: 4, kind: input, shape index: {}]   ;;  %s7504_s5 = inlined_call_operand.hbm [shape: bf16[128,128], index: 5, kind: input, shape index: {}]   ;;  %s7505_s6 = inlined_call_operand.hbm [shape: f32[1,128], index: 6, kind: input, shape index: {}]   ;;  %s7506_s7 = inlined_call_operand.hbm [shape: f32[8,128], index: 7, kind: output, shape index: {}]  }
   0x1   :  { %13 = vsyncpa [#allocation6], 0 }
   0x2   :  { %14 = vsyncpa [#allocation9], 0 }
   0x3   :  { %15 = vsyncpa [#allocation12], 0  ;;  %s32_s26 = sshll.u32 %s7500_s1, 4  ;;  %s33_s26 = int_to_ptr.hbm [resolvable:$true] %s32_s26 }
   0x4   :  { %16 = vsyncpa [#allocation4], 0  ;;  %s7265_s27 = smov [#allocation5]   ;;  %s56_s8 = sshll.u32 %s7502_s3, 4  ;;  %s57_s8 = int_to_ptr.hbm [resolvable:$true] %s56_s8 }
   0x5   :  { %s34_s28 = sshll.u32 %s7265_s27, 4  ;;  %s7266_s9 = smov 128   ;;  %s35_s28 = int_to_ptr.vmem [resolvable:$true] %s34_s28 }
   0x6   :  { %s7267_s10 = smov 8   ;;  %s7268_s11 = smov [#allocation8]  }
   0x7   :  { %40 = dma.hbm_to_vmem [thread:$0]  %s33_s26, 65536, %s35_s28, [#allocation6], %s7266_s9, %s7266_s9, %s7267_s10  }
   0x8   :  { %s58_s12 = sshll.u32 %s7268_s11, 4  ;;  %s7269_s13 = smov 64   ;;  %s59_s12 = int_to_ptr.vmem [resolvable:$true] %s58_s12 }
   0x9   :  { %s7270_s14 = smov 4   ;;  %s80_s16 = sshll.u32 %s7504_s5, 4  ;;  %s81_s16 = int_to_ptr.hbm [resolvable:$true] %s80_s16 }
   0xa   :  { %64 = dma.hbm_to_vmem [thread:$0]  %s57_s8, 2048, %s59_s12, [#allocation9], %s7269_s13, %s7269_s13, %s7270_s14  }
   0xb   :  { %s7271_s17 = smov [#allocation11]   ;;  %s22_s20 = sshll.u32 %s7499_s0, 4  ;;  %s23_s20 = int_to_ptr.hbm [resolvable:$true] %s22_s20 }
   0xc   :  { %s82_s18 = sshll.u32 %s7271_s17, 4  ;;  %s7272_s21 = smov [#allocation2]   ;;  %s83_s18 = int_to_ptr.vmem [resolvable:$true] %s82_s18 }
   0xd   :  { %88 = dma.hbm_to_vmem [thread:$0]  %s81_s16, 1024, %s83_s18, [#allocation12], %s7269_s13, %s7269_s13, %s7270_s14  }
   0xe   :  { %s24_s22 = sshll.u32 %s7272_s21, 4  ;;  %s46_s25 = sshll.u32 %s7501_s2, 4  ;;  %s25_s22 = int_to_ptr.vmem [resolvable:$true] %s24_s22  ;;  %s47_s25 = int_to_ptr.hbm [resolvable:$true] %s46_s25 }
   0xf   :  { %27 = dma.hbm_to_vmem [thread:$0]  %s23_s20, 4096, %s25_s22, [#allocation3]  }
  0x10   :  { %s70_s27 = sshll.u32 %s7503_s4, 4  ;;  %s7273_s28 = smov [#allocation7]   ;;  %s71_s27 = int_to_ptr.hbm [resolvable:$true] %s70_s27 }
  0x11   :  { %s48_s29 = sshll.u32 %s7273_s28, 4  ;;  %s7274_s0 = smov [#allocation10]   ;;  %s49_s29 = int_to_ptr.vmem [resolvable:$true] %s48_s29 }
  0x12   :  { %51 = dma.hbm_to_vmem [thread:$0]  %s47_s25, 32, %s49_s29, [#allocation6]  }
  0x13   :  { %s72_s30 = sshll.u32 %s7274_s0, 4  ;;  %s94_s10 = sshll.u32 %s7505_s6, 4  ;;  %s73_s30 = int_to_ptr.vmem [resolvable:$true] %s72_s30  ;;  %s95_s10 = int_to_ptr.hbm [resolvable:$true] %s94_s10 }
  0x14   :  { %75 = dma.hbm_to_vmem [thread:$0]  %s71_s27, 16, %s73_s30, [#allocation9]  }
  0x15   :  { %s7275_s2 = smov [#allocation13]  }
  0x16   :  { %s96_s11 = sshll.u32 %s7275_s2, 4  ;;  %s97_s11 = int_to_ptr.vmem [resolvable:$true] %s96_s11 }
  0x17   :  { %99 = dma.hbm_to_vmem [thread:$0]  %s95_s10, 16, %s97_s11, [#allocation12]  }
  0x18   :  { %7255 = dma.done.wait [#allocation3], 4096  }
  0x19   :  { %7256 = vsyncadd [#allocation3], 4294963200 }
  0x1a   :  { %7257 = dma.done.wait [#allocation6], 65568  }
  0x1b   :  { %7258 = vsyncadd [#allocation6], 4294901728 }
  0x1c   :  { %7259 = dma.done.wait [#allocation9], 2064  }
  0x1d   :  { %7260 = vsyncadd [#allocation9], 4294965232 }
  0x1e   :  { %7261 = dma.done.wait [#allocation12], 1040  }
  0x1f   :  { %7262 = vsyncadd [#allocation12], 4294966256  ;;  %v4426_v0 = vld [vmem:[#allocation5 + $0x70] sm:$0xf]  ;;  %v6527_v1 = vld [vmem:[#allocation5 + $0x74] sm:$0xf0] }
  0x20   :  { %v4490_v2 = vld [vmem:[#allocation5 + $0xf0] sm:$0xf]  ;;  %v4427_v3 = vor.u32 %v6527_v1, %v4426_v0  ;;  %v6543_v4 = vld [vmem:[#allocation5 + $0xf4] sm:$0xf0]  ;;  %v4418_v11 = vld [vmem:[#allocation5 + $0x60] sm:$0xf] }
  0x21   :  { %v4554_v5 = vld [vmem:[#allocation5 + $0x170] sm:$0xf]  ;;  %v6559_v6 = vld [vmem:[#allocation5 + $0x174] sm:$0xf0]  ;;  %v4491_v7 = vor.u32 %v6543_v4, %v4490_v2  ;;  %v6525_v13 = vld [vmem:[#allocation5 + $0x64] sm:$0xf0] }
  0x22   :  { %v4555_v8 = vor.u32 %v6559_v6, %v4554_v5  ;;  %v4618_v9 = vld [vmem:[#allocation5 + $0x1f0] sm:$0xf]  ;;  %v6575_v10 = vld [vmem:[#allocation5 + $0x1f4] sm:$0xf0]  ;;  %3270 = vmatpush.bf16.msra.mxu0 %v4427_v3  ;;  %v4482_v14 = vld [vmem:[#allocation5 + $0xe0] sm:$0xf]  ;;  %v4419_v16 = vor.u32 %v6525_v13, %v4418_v11 }
  0x23   :  { %v4619_v12 = vor.u32 %v6575_v10, %v4618_v9  ;;  %v6541_v15 = vld [vmem:[#allocation5 + $0xe4] sm:$0xf0]  ;;  %3283 = vmatpush.bf16.msra.mxu1 %v4491_v7  ;;  %v4546_v18 = vld [vmem:[#allocation5 + $0x160] sm:$0xf]  ;;  %v4410_v23 = vld [vmem:[#allocation5 + $0x50] sm:$0xf] }
  0x24   :  { %3296 = vmatpush.bf16.msra.mxu2 %v4555_v8  ;;  %v4483_v17 = vor.u32 %v6541_v15, %v4482_v14  ;;  %v6557_v19 = vld [vmem:[#allocation5 + $0x164] sm:$0xf0]  ;;  %v4610_v20 = vld [vmem:[#allocation5 + $0x1e0] sm:$0xf]  ;;  %v6523_v24 = vld [vmem:[#allocation5 + $0x54] sm:$0xf0] }
  0x25   :  { %3309 = vmatpush.bf16.msra.mxu3 %v4619_v12  ;;  %v4547_v21 = vor.u32 %v6557_v19, %v4546_v18  ;;  %v6573_v22 = vld [vmem:[#allocation5 + $0x1e4] sm:$0xf0]  ;;  %v4474_v26 = vld [vmem:[#allocation5 + $0xd0] sm:$0xf]  ;;  %v6539_v27 = vld [vmem:[#allocation5 + $0xd4] sm:$0xf0]  ;;  %v4411_v29 = vor.u32 %v6523_v24, %v4410_v23 }
  0x26   :  { %v4611_v25 = vor.u32 %v6573_v22, %v4610_v20  ;;  %v4538_v28 = vld [vmem:[#allocation5 + $0x150] sm:$0xf]  ;;  %3271 = vmatpush.bf16.msra.mxu0 %v4419_v16  ;;  %v6555_v30 = vld [vmem:[#allocation5 + $0x154] sm:$0xf0]  ;;  %v4475_v33 = vor.u32 %v6539_v27, %v4474_v26  ;;  %v4402_v35 = vld [vmem:[#allocation5 + $0x40] sm:$0xf] }
  0x27   :  { %v4602_v31 = vld [vmem:[#allocation5 + $0x1d0] sm:$0xf]  ;;  %v6571_v32 = vld [vmem:[#allocation5 + $0x1d4] sm:$0xf0]  ;;  %3284 = vmatpush.bf16.msra.mxu1 %v4483_v17  ;;  %v4539_v34 = vor.u32 %v6555_v30, %v4538_v28  ;;  %v6521_v36 = vld [vmem:[#allocation5 + $0x44] sm:$0xf0] }
  0x28   :  { %3297 = vmatpush.bf16.msra.mxu2 %v4547_v21  ;;  %v4466_v37 = vld [vmem:[#allocation5 + $0xc0] sm:$0xf]  ;;  %v4603_v38 = vor.u32 %v6571_v32, %v4602_v31  ;;  %v6537_v39 = vld [vmem:[#allocation5 + $0xc4] sm:$0xf0]  ;;  %v4403_v44 = vor.u32 %v6521_v36, %v4402_v35  ;;  %v4394_v47 = vld [vmem:[#allocation5 + $0x30] sm:$0xf] }
  0x29   :  { %3310 = vmatpush.bf16.msra.mxu3 %v4611_v25  ;;  %v4530_v40 = vld [vmem:[#allocation5 + $0x140] sm:$0xf]  ;;  %v6553_v41 = vld [vmem:[#allocation5 + $0x144] sm:$0xf0]  ;;  %v4467_v45 = vor.u32 %v6537_v39, %v4466_v37  ;;  %v6519_v48 = vld [vmem:[#allocation5 + $0x34] sm:$0xf0] }
  0x2a   :  { %v4594_v42 = vld [vmem:[#allocation5 + $0x1c0] sm:$0xf]  ;;  %v6569_v43 = vld [vmem:[#allocation5 + $0x1c4] sm:$0xf0]  ;;  %3272 = vmatpush.bf16.msra.mxu0 %v4411_v29  ;;  %v4531_v46 = vor.u32 %v6553_v41, %v4530_v40  ;;  %v4458_v49 = vld [vmem:[#allocation5 + $0xb0] sm:$0xf]  ;;  %v4395_v56 = vor.u32 %v6519_v48, %v4394_v47 }
  0x2b   :  { %3285 = vmatpush.bf16.msra.mxu1 %v4475_v33  ;;  %v4595_v50 = vor.u32 %v6569_v43, %v4594_v42  ;;  %v6535_v51 = vld [vmem:[#allocation5 + $0xb4] sm:$0xf0]  ;;  %v4522_v52 = vld [vmem:[#allocation5 + $0x130] sm:$0xf]  ;;  %v4386_v59 = vld [vmem:[#allocation5 + $0x20] sm:$0xf] }
  0x2c   :  { %3298 = vmatpush.bf16.msra.mxu2 %v4539_v34  ;;  %v6551_v53 = vld [vmem:[#allocation5 + $0x134] sm:$0xf0]  ;;  %v4586_v54 = vld [vmem:[#allocation5 + $0x1b0] sm:$0xf]  ;;  %v4459_v57 = vor.u32 %v6535_v51, %v4458_v49  ;;  %v6517_v60 = vld [vmem:[#allocation5 + $0x24] sm:$0xf0] }
  0x2d   :  { %3311 = vmatpush.bf16.msra.mxu3 %v4603_v38  ;;  %v6567_v55 = vld [vmem:[#allocation5 + $0x1b4] sm:$0xf0]  ;;  %v4523_v58 = vor.u32 %v6551_v53, %v4522_v52  ;;  %v4450_v61 = vld [vmem:[#allocation5 + $0xa0] sm:$0xf]  ;;  %v6533_v63 = vld [vmem:[#allocation5 + $0xa4] sm:$0xf0]  ;;  %v4387_v4 = vor.u32 %v6517_v60, %v4386_v59 }
  0x2e   :  { %3273 = vmatpush.bf16.msra.mxu0 %v4403_v44  ;;  %v4587_v62 = vor.u32 %v6567_v55, %v4586_v54  ;;  %v4514_v0 = vld [vmem:[#allocation5 + $0x120] sm:$0xf]  ;;  %v6549_v1 = vld [vmem:[#allocation5 + $0x124] sm:$0xf0]  ;;  %v4451_v5 = vor.u32 %v6533_v63, %v4450_v61  ;;  %v4378_v7 = vld [vmem:[#allocation5 + $0x10] sm:$0xf] }
  0x2f   :  { %3286 = vmatpush.bf16.msra.mxu1 %v4467_v45  ;;  %v4578_v2 = vld [vmem:[#allocation5 + $0x1a0] sm:$0xf]  ;;  %v6565_v3 = vld [vmem:[#allocation5 + $0x1a4] sm:$0xf0]  ;;  %v4515_v6 = vor.u32 %v6549_v1, %v4514_v0  ;;  %v6515_v8 = vld [vmem:[#allocation5 + $0x14] sm:$0xf0] }
  0x30   :  { %3299 = vmatpush.bf16.msra.mxu2 %v4531_v46  ;;  %v4442_v9 = vld [vmem:[#allocation5 + $0x90] sm:$0xf]  ;;  %v4579_v10 = vor.u32 %v6565_v3, %v4578_v2  ;;  %v6531_v11 = vld [vmem:[#allocation5 + $0x94] sm:$0xf0]  ;;  %v4379_v16 = vor.u32 %v6515_v8, %v4378_v7  ;;  %v4370_v17 = vld [vmem:[#allocation5] sm:$0xf] }
  0x31   :  { %3312 = vmatpush.bf16.msra.mxu3 %v4595_v50  ;;  %v4506_v12 = vld [vmem:[#allocation5 + $0x110] sm:$0xf]  ;;  %v6547_v13 = vld [vmem:[#allocation5 + $0x114] sm:$0xf0]  ;;  %v6513_v18 = vld [vmem:[#allocation5 + $0x4] sm:$0xf0]  ;;  %v4443_v19 = vor.u32 %v6531_v11, %v4442_v9 }
  0x32   :  { %3274 = vmatpush.bf16.msra.mxu0 %v4395_v56  ;;  %v4570_v14 = vld [vmem:[#allocation5 + $0x190] sm:$0xf]  ;;  %v6563_v15 = vld [vmem:[#allocation5 + $0x194] sm:$0xf0]  ;;  %v4507_v20 = vor.u32 %v6547_v13, %v4506_v12  ;;  %v4434_v21 = vld [vmem:[#allocation5 + $0x80] sm:$0xf]  ;;  %v4371_v31 = vor.u32 %v6513_v18, %v4370_v17 }
  0x33   :  { %3287 = vmatpush.bf16.msra.mxu1 %v4459_v57  ;;  %v6529_v22 = vld [vmem:[#allocation5 + $0x84] sm:$0xf0]  ;;  %v4498_v23 = vld [vmem:[#allocation5 + $0x100] sm:$0xf]  ;;  %v4571_v24 = vor.u32 %v6563_v15, %v4570_v14  ;;  %v4682_v28 = vld [vmem:[#allocation5 + $0x270] sm:$0xf] }
  0x34   :  { %3300 = vmatpush.bf16.msra.mxu2 %v4523_v58  ;;  %v6545_v25 = vld [vmem:[#allocation5 + $0x104] sm:$0xf0]  ;;  %v4562_v26 = vld [vmem:[#allocation5 + $0x180] sm:$0xf]  ;;  %v6591_v29 = vld [vmem:[#allocation5 + $0x274] sm:$0xf0]  ;;  %v4435_v35 = vor.u32 %v6529_v22, %v4434_v21 }
  0x35   :  { %3313 = vmatpush.bf16.msra.mxu3 %v4587_v62  ;;  %v6561_v27 = vld [vmem:[#allocation5 + $0x184] sm:$0xf0]  ;;  %v4746_v30 = vld [vmem:[#allocation5 + $0x2f0] sm:$0xf]  ;;  %v6607_v32 = vld [vmem:[#allocation5 + $0x2f4] sm:$0xf0]  ;;  %v4499_v36 = vor.u32 %v6545_v25, %v4498_v23  ;;  %v4683_v40 = vor.u32 %v6591_v29, %v4682_v28 }
  0x36   :  { %3275 = vmatpush.bf16.msra.mxu0 %v4387_v4  ;;  %v4810_v33 = vld [vmem:[#allocation5 + $0x370] sm:$0xf]  ;;  %v6623_v34 = vld [vmem:[#allocation5 + $0x374] sm:$0xf0]  ;;  %v4563_v39 = vor.u32 %v6561_v27, %v4562_v26  ;;  %v4747_v41 = vor.u32 %v6607_v32, %v4746_v30  ;;  %v4674_v43 = vld [vmem:[#allocation5 + $0x260] sm:$0xf] }
  0x37   :  { %3288 = vmatpush.bf16.msra.mxu1 %v4451_v5  ;;  %v4874_v37 = vld [vmem:[#allocation5 + $0x3f0] sm:$0xf]  ;;  %v6639_v38 = vld [vmem:[#allocation5 + $0x3f4] sm:$0xf0]  ;;  %v4811_v42 = vor.u32 %v6623_v34, %v4810_v33  ;;  %v6589_v44 = vld [vmem:[#allocation5 + $0x264] sm:$0xf0] }
  0x38   :  { %3301 = vmatpush.bf16.msra.mxu2 %v4515_v6  ;;  %v4738_v45 = vld [vmem:[#allocation5 + $0x2e0] sm:$0xf]  ;;  %v4875_v46 = vor.u32 %v6639_v38, %v4874_v37  ;;  %v6605_v47 = vld [vmem:[#allocation5 + $0x2e4] sm:$0xf0]  ;;  %v4675_v52 = vor.u32 %v6589_v44, %v4674_v43  ;;  %v4666_v53 = vld [vmem:[#allocation5 + $0x250] sm:$0xf] }
  0x39   :  { %3314 = vmatpush.bf16.msra.mxu3 %v4579_v10  ;;  %v4802_v48 = vld [vmem:[#allocation5 + $0x360] sm:$0xf]  ;;  %v6621_v49 = vld [vmem:[#allocation5 + $0x364] sm:$0xf0]  ;;  %v4739_v54 = vor.u32 %v6605_v47, %v4738_v45  ;;  %v6587_v56 = vld [vmem:[#allocation5 + $0x254] sm:$0xf0] }
  0x3a   :  { %3276 = vmatpush.bf16.msra.mxu0 %v4379_v16  ;;  %v4866_v50 = vld [vmem:[#allocation5 + $0x3e0] sm:$0xf]  ;;  %v6637_v51 = vld [vmem:[#allocation5 + $0x3e4] sm:$0xf0]  ;;  %v4803_v55 = vor.u32 %v6621_v49, %v4802_v48  ;;  %v4730_v57 = vld [vmem:[#allocation5 + $0x2d0] sm:$0xf]  ;;  %v4667_v0 = vor.u32 %v6587_v56, %v4666_v53 }
  0x3b   :  { %3289 = vmatpush.bf16.msra.mxu1 %v4443_v19  ;;  %v6603_v58 = vld [vmem:[#allocation5 + $0x2d4] sm:$0xf0]  ;;  %v4867_v59 = vor.u32 %v6637_v51, %v4866_v50  ;;  %v4794_v60 = vld [vmem:[#allocation5 + $0x350] sm:$0xf]  ;;  %v4658_v2 = vld [vmem:[#allocation5 + $0x240] sm:$0xf] }
  0x3c   :  { %3302 = vmatpush.bf16.msra.mxu2 %v4507_v20  ;;  %v6619_v61 = vld [vmem:[#allocation5 + $0x354] sm:$0xf0]  ;;  %v4858_v62 = vld [vmem:[#allocation5 + $0x3d0] sm:$0xf]  ;;  %v4731_v1 = vor.u32 %v6603_v58, %v4730_v57  ;;  %v128_v4 = vld [vmem:[#allocation2] sm:$0xff]  ;;  %s7276_s4 = smov [#allocation14]  }
  0x3d   :  { %3315 = vmatpush.bf16.msra.mxu3 %v4571_v24  ;;  %v6635_v63 = vld [vmem:[#allocation5 + $0x3d4] sm:$0xf0]  ;;  %v130_v3 = vld [vmem:[#allocation2 + $0x10] sm:$0xff]  ;;  %v4795_v5 = vor.u32 %v6619_v61, %v4794_v60  ;;  %v6585_v6 = vld [vmem:[#allocation5 + $0x244] sm:$0xf0]  ;;  %v7340_v9 = vpack.c.bf16 %v128_v4, %v128_v4  ;;  %s4353_s6 = sshll.u32 %s7276_s4, 4  ;;  %s4354_s6 = int_to_ptr.vmem [resolvable:$true] %s4353_s6 }
  0x3e   :  { %3277 = vmatpush.bf16.msra.mxu0 %v4371_v31  ;;  %v4722_v7 = vld [vmem:[#allocation5 + $0x2c0] sm:$0xf]  ;;  %v7338_v8 = vpack.c.bf16 %v130_v3, %v130_v3  ;;  %v131_v10 = vld [vmem:[#allocation2 + $0x18] sm:$0xff]  ;;  %v4859_v11 = vor.u32 %v6635_v63, %v4858_v62  ;;  %v6601_v12 = vld [vmem:[#allocation5 + $0x2c4] sm:$0xf0]  ;;  %v4659_v18 = vor.u32 %v6585_v6, %v4658_v2  ;;  %s4355_s14 = sshll.u32 %s7506_s7, 4  ;;  %s4356_s14 = int_to_ptr.hbm [resolvable:$true] %s4355_s14 }
  0x3f   :  { %3290 = vmatpush.bf16.msra.mxu1 %v4435_v35  ;;  %v4786_v13 = vld [vmem:[#allocation5 + $0x340] sm:$0xf]  ;;  %v6617_v14 = vld [vmem:[#allocation5 + $0x344] sm:$0xf0]  ;;  %v7342_v15 = vpack.c.bf16 %v131_v10, %v131_v10  ;;  %v4723_v20 = vor.u32 %v6601_v12, %v4722_v7  ;;  %v4650_v22 = vld [vmem:[#allocation5 + $0x230] sm:$0xf] }
  0x40   :  { %3303 = vmatpush.bf16.msra.mxu2 %v4499_v36  ;;  %v4850_v16 = vld [vmem:[#allocation5 + $0x3c0] sm:$0xf]  ;;  %v6633_v17 = vld [vmem:[#allocation5 + $0x3c4] sm:$0xf0]  ;;  %v4787_v21 = vor.u32 %v6617_v14, %v4786_v13  ;;  %v6583_v23 = vld [vmem:[#allocation5 + $0x234] sm:$0xf0] }
  0x41   :  { %3316 = vmatpush.bf16.msra.mxu3 %v4563_v39  ;;  %3278 = vmatmul.bf16.vlgmr.msra.gmra.mxu0 %v7340_v9  ;;  %v129_v19 = vld [vmem:[#allocation2 + $0x8] sm:$0xff]  ;;  %v4714_v24 = vld [vmem:[#allocation5 + $0x2b0] sm:$0xf]  ;;  %v4851_v26 = vor.u32 %v6633_v17, %v4850_v16  ;;  %v6599_v27 = vld [vmem:[#allocation5 + $0x2b4] sm:$0xf0]  ;;  %v4651_v32 = vor.u32 %v6583_v23, %v4650_v22 }
  0x42   :  { %3322 = vmatpush.bf16.msrb.mxu0 %v4683_v40  ;;  %v7347_v25 = vpack.c.bf16 %v129_v19, %v129_v19  ;;  %v4778_v28 = vld [vmem:[#allocation5 + $0x330] sm:$0xf]  ;;  %v6615_v29 = vld [vmem:[#allocation5 + $0x334] sm:$0xf0]  ;;  %v4715_v33 = vor.u32 %v6599_v27, %v4714_v24  ;;  %v4642_v35 = vld [vmem:[#allocation5 + $0x220] sm:$0xf] }
  0x43   :  { %3335 = vmatpush.bf16.msrb.mxu1 %v4747_v41  ;;  %3304 = vmatmul.bf16.vlgmr.msra.gmra.mxu2 %v7338_v8  ;;  %v4842_v30 = vld [vmem:[#allocation5 + $0x3b0] sm:$0xf]  ;;  %v6631_v31 = vld [vmem:[#allocation5 + $0x3b4] sm:$0xf0]  ;;  %v4779_v34 = vor.u32 %v6615_v29, %v4778_v28  ;;  %v6581_v36 = vld [vmem:[#allocation5 + $0x224] sm:$0xf0] }
  0x44   :  { %3348 = vmatpush.bf16.msrb.mxu2 %v4811_v42  ;;  %3317 = vmatmul.bf16.vlgmr.msra.gmra.mxu3 %v7342_v15  ;;  %v4706_v37 = vld [vmem:[#allocation5 + $0x2a0] sm:$0xf]  ;;  %v4843_v38 = vor.u32 %v6631_v31, %v4842_v30  ;;  %v6597_v39 = vld [vmem:[#allocation5 + $0x2a4] sm:$0xf0]  ;;  %v4643_v44 = vor.u32 %v6581_v36, %v4642_v35  ;;  %v4634_v47 = vld [vmem:[#allocation5 + $0x210] sm:$0xf] }
  0x45   :  { %3361 = vmatpush.bf16.msrb.mxu3 %v4875_v46  ;;  %3291 = vmatmul.bf16.vlgmr.msra.gmra.mxu1 %v7347_v25  ;;  %v4770_v40 = vld [vmem:[#allocation5 + $0x320] sm:$0xf]  ;;  %v6613_v41 = vld [vmem:[#allocation5 + $0x324] sm:$0xf0]  ;;  %v4707_v45 = vor.u32 %v6597_v39, %v4706_v37  ;;  %v6579_v48 = vld [vmem:[#allocation5 + $0x214] sm:$0xf0] }
  0x46   :  { %3323 = vmatpush.bf16.msrb.mxu0 %v4675_v52  ;;  %v4834_v42 = vld [vmem:[#allocation5 + $0x3a0] sm:$0xf]  ;;  %v6629_v43 = vld [vmem:[#allocation5 + $0x3a4] sm:$0xf0]  ;;  %v4771_v46 = vor.u32 %v6613_v41, %v4770_v40  ;;  %v4698_v49 = vld [vmem:[#allocation5 + $0x290] sm:$0xf]  ;;  %v4635_v56 = vor.u32 %v6579_v48, %v4634_v47 }
  0x47   :  { %3336 = vmatpush.bf16.msrb.mxu1 %v4739_v54  ;;  %v4835_v50 = vor.u32 %v6629_v43, %v4834_v42  ;;  %v6595_v51 = vld [vmem:[#allocation5 + $0x294] sm:$0xf0]  ;;  %v4762_v52 = vld [vmem:[#allocation5 + $0x310] sm:$0xf]  ;;  %v4626_v57 = vld [vmem:[#allocation5 + $0x200] sm:$0xf] }
  0x48   :  { %3349 = vmatpush.bf16.msrb.mxu2 %v4803_v55  ;;  %v6611_v53 = vld [vmem:[#allocation5 + $0x314] sm:$0xf0]  ;;  %v4826_v54 = vld [vmem:[#allocation5 + $0x390] sm:$0xf]  ;;  %v6577_v58 = vld [vmem:[#allocation5 + $0x204] sm:$0xf0] }
  0x49   :  { %3362 = vmatpush.bf16.msrb.mxu3 %v4867_v59  ;;  %v6627_v55 = vld [vmem:[#allocation5 + $0x394] sm:$0xf0]  ;;  %v4699_v59 = vor.u32 %v6595_v51, %v4698_v49  ;;  %v4763_v60 = vor.u32 %v6611_v53, %v4762_v52  ;;  %v4690_v61 = vld [vmem:[#allocation5 + $0x280] sm:$0xf]  ;;  %v6593_v62 = vld [vmem:[#allocation5 + $0x284] sm:$0xf0]  ;;  %v4627_v7 = vor.u32 %v6577_v58, %v4626_v57 }
  0x4a   :  { %3324 = vmatpush.bf16.msrb.mxu0 %v4667_v0  ;;  %v4754_v63 = vld [vmem:[#allocation5 + $0x300] sm:$0xf]  ;;  %v4827_v0 = vor.u32 %v6627_v55, %v4826_v54  ;;  %v6625_v3 = vld [vmem:[#allocation5 + $0x384] sm:$0xf0]  ;;  %v4938_v4 = vld [vmem:[#allocation5 + $0x470] sm:$0xf]  ;;  %v4691_v13 = vor.u32 %v6593_v62, %v4690_v61 }
  0x4b   :  { %3337 = vmatpush.bf16.msrb.mxu1 %v4731_v1  ;;  %v6609_v1 = vld [vmem:[#allocation5 + $0x304] sm:$0xf0]  ;;  %v4818_v2 = vld [vmem:[#allocation5 + $0x380] sm:$0xf]  ;;  %v5002_v6 = vld [vmem:[#allocation5 + $0x4f0] sm:$0xf] }
  0x4c   :  { %3350 = vmatpush.bf16.msrb.mxu2 %v4795_v5  ;;  %v6655_v5 = vld [vmem:[#allocation5 + $0x474] sm:$0xf0]  ;;  %v4755_v14 = vor.u32 %v6609_v1, %v4754_v63  ;;  %v5130_v16 = vld [vmem:[#allocation5 + $0x5f0] sm:$0xf]  ;;  %v4819_v19 = vor.u32 %v6625_v3, %v4818_v2  ;;  %v132_v22 = vld [vmem:[#allocation2 + $0x20] sm:$0xff] }
  0x4d   :  { %3363 = vmatpush.bf16.msrb.mxu3 %v4859_v11  ;;  %v6671_v10 = vld [vmem:[#allocation5 + $0x4f4] sm:$0xf0]  ;;  %v5066_v11 = vld [vmem:[#allocation5 + $0x570] sm:$0xf]  ;;  %v6653_v27 = vld [vmem:[#allocation5 + $0x464] sm:$0xf0]  ;;  %v7352_v37 = vpack.c.bf16 %v132_v22, %v132_v22 }
  0x4e   :  { %3325 = vmatpush.bf16.msrb.mxu0 %v4659_v18  ;;  %v6687_v12 = vld [vmem:[#allocation5 + $0x574] sm:$0xf0]  ;;  %v134_v18 = vld [vmem:[#allocation2 + $0x30] sm:$0xff]  ;;  %v5003_v24 = vor.u32 %v6671_v10, %v5002_v6  ;;  %v4994_v28 = vld [vmem:[#allocation5 + $0x4e0] sm:$0xf] }
  0x4f   :  { %3338 = vmatpush.bf16.msrb.mxu1 %v4723_v20  ;;  %v6703_v17 = vld [vmem:[#allocation5 + $0x5f4] sm:$0xf0]  ;;  %v4939_v20 = vor.u32 %v6655_v5, %v4938_v4  ;;  %v133_v29 = vld [vmem:[#allocation2 + $0x28] sm:$0xff]  ;;  %v5122_v35 = vld [vmem:[#allocation5 + $0x5e0] sm:$0xf] }
  0x50   :  { %3351 = vmatpush.bf16.msrb.mxu2 %v4787_v21  ;;  %v4930_v21 = vld [vmem:[#allocation5 + $0x460] sm:$0xf]  ;;  %v135_v23 = vld [vmem:[#allocation2 + $0x38] sm:$0xff]  ;;  %v5131_v30 = vor.u32 %v6703_v17, %v5130_v16  ;;  %v6669_v31 = vld [vmem:[#allocation5 + $0x4e4] sm:$0xf0]  ;;  %v7356_v40 = vpack.c.bf16 %v133_v29, %v133_v29 }
  0x51   :  { %3364 = vmatpush.bf16.msrb.mxu3 %v4851_v26  ;;  %v5067_v26 = vor.u32 %v6687_v12, %v5066_v11  ;;  %v6701_v36 = vld [vmem:[#allocation5 + $0x5e4] sm:$0xf0]  ;;  %v4931_v39 = vor.u32 %v6653_v27, %v4930_v21  ;;  %v4995_v41 = vor.u32 %v6669_v31, %v4994_v28  ;;  %v4922_v43 = vld [vmem:[#allocation5 + $0x450] sm:$0xf]  ;;  %v6667_v47 = vld [vmem:[#allocation5 + $0x4d4] sm:$0xf0] }
  0x52   :  { %3326 = vmatpush.bf16.msrb.mxu0 %v4651_v32  ;;  %v5058_v32 = vld [vmem:[#allocation5 + $0x560] sm:$0xf]  ;;  %v5050_v48 = vld [vmem:[#allocation5 + $0x550] sm:$0xf]  ;;  %v6683_v49 = vld [vmem:[#allocation5 + $0x554] sm:$0xf0] }
  0x53   :  { %3339 = vmatpush.bf16.msrb.mxu1 %v4715_v33  ;;  %v6685_v33 = vld [vmem:[#allocation5 + $0x564] sm:$0xf0]  ;;  %v6699_v51 = vld [vmem:[#allocation5 + $0x5d4] sm:$0xf0]  ;;  %v5051_v54 = vor.u32 %v6683_v49, %v5050_v48  ;;  %v4914_v55 = vld [vmem:[#allocation5 + $0x440] sm:$0xf] }
  0x54   :  { %3352 = vmatpush.bf16.msrb.mxu2 %v4779_v34  ;;  %v7350_v34 = vpack.c.bf16 %v134_v18, %v134_v18  ;;  %v5059_v42 = vor.u32 %v6685_v33, %v5058_v32  ;;  %v4978_v57 = vld [vmem:[#allocation5 + $0x4c0] sm:$0xf]  ;;  %v6681_v61 = vld [vmem:[#allocation5 + $0x544] sm:$0xf0]  ;;  %v4906_v3 = vld [vmem:[#allocation5 + $0x430] sm:$0xf] }
  0x55   :  { %3365 = vmatpush.bf16.msrb.mxu3 %v4843_v38  ;;  %v7354_v38 = vpack.c.bf16 %v135_v23, %v135_v23  ;;  %v5106_v62 = vld [vmem:[#allocation5 + $0x5c0] sm:$0xf]  ;;  %v6697_v63 = vld [vmem:[#allocation5 + $0x5c4] sm:$0xf0]  ;;  %v6647_v4 = vld [vmem:[#allocation5 + $0x434] sm:$0xf0] }
  0x56   :  { %3327 = vmatpush.bf16.msrb.mxu0 %v4643_v44  ;;  %v6651_v44 = vld [vmem:[#allocation5 + $0x454] sm:$0xf0]  ;;  %v4970_v5 = vld [vmem:[#allocation5 + $0x4b0] sm:$0xf]  ;;  %v5107_v6 = vor.u32 %v6697_v63, %v5106_v62  ;;  %v4898_v18 = vld [vmem:[#allocation5 + $0x420] sm:$0xf] }
  0x57   :  { %3340 = vmatpush.bf16.msrb.mxu1 %v4707_v45  ;;  %v4986_v45 = vld [vmem:[#allocation5 + $0x4d0] sm:$0xf]  ;;  %v4923_v52 = vor.u32 %v6651_v44, %v4922_v43  ;;  %v6679_v11 = vld [vmem:[#allocation5 + $0x534] sm:$0xf0]  ;;  %v6661_v22 = vld [vmem:[#allocation5 + $0x4a4] sm:$0xf0] }
  0x58   :  { %3353 = vmatpush.bf16.msrb.mxu2 %v4771_v46  ;;  %v5123_v46 = vor.u32 %v6701_v36, %v5122_v35  ;;  %v4987_v53 = vor.u32 %v6667_v47, %v4986_v45  ;;  %v5034_v10 = vld [vmem:[#allocation5 + $0x530] sm:$0xf]  ;;  %v5026_v23 = vld [vmem:[#allocation5 + $0x520] sm:$0xf]  ;;  %v6693_v27 = vld [vmem:[#allocation5 + $0x5a4] sm:$0xf0] }
  0x59   :  { %3366 = vmatpush.bf16.msrb.mxu3 %v4835_v50  ;;  %v5114_v50 = vld [vmem:[#allocation5 + $0x5d0] sm:$0xf]  ;;  %v5035_v17 = vor.u32 %v6679_v11, %v5034_v10  ;;  %v6643_v32 = vld [vmem:[#allocation5 + $0x414] sm:$0xf0]  ;;  %v4882_v44 = vld [vmem:[#allocation5 + $0x400] sm:$0xf] }
  0x5a   :  { %3328 = vmatpush.bf16.msrb.mxu0 %v4635_v56  ;;  %v6649_v56 = vld [vmem:[#allocation5 + $0x444] sm:$0xf0]  ;;  %v5115_v58 = vor.u32 %v6699_v51, %v5114_v50  ;;  %v5098_v12 = vld [vmem:[#allocation5 + $0x5b0] sm:$0xf]  ;;  %v6659_v36 = vld [vmem:[#allocation5 + $0x494] sm:$0xf0] }
  0x5b   :  { %3341 = vmatpush.bf16.msrb.mxu1 %v4699_v59  ;;  %v6665_v59 = vld [vmem:[#allocation5 + $0x4c4] sm:$0xf0]  ;;  %v4890_v31 = vld [vmem:[#allocation5 + $0x410] sm:$0xf]  ;;  %v6691_v43 = vld [vmem:[#allocation5 + $0x594] sm:$0xf0] }
  0x5c   :  { %3354 = vmatpush.bf16.msrb.mxu2 %v4763_v60  ;;  %v5042_v60 = vld [vmem:[#allocation5 + $0x540] sm:$0xf]  ;;  %v4979_v1 = vor.u32 %v6665_v59, %v4978_v57  ;;  %v4954_v33 = vld [vmem:[#allocation5 + $0x490] sm:$0xf]  ;;  %v4891_v45 = vor.u32 %v6643_v32, %v4890_v31  ;;  %v6657_v48 = vld [vmem:[#allocation5 + $0x484] sm:$0xf0] }
  0x5d   :  { %3367 = vmatpush.bf16.msrb.mxu3 %v4827_v0  ;;  %v4915_v0 = vor.u32 %v6649_v56, %v4914_v55  ;;  %v5043_v2 = vor.u32 %v6681_v61, %v5042_v60  ;;  %v4946_v47 = vld [vmem:[#allocation5 + $0x480] sm:$0xf]  ;;  %v4955_v49 = vor.u32 %v6659_v36, %v4954_v33  ;;  %v6689_v55 = vld [vmem:[#allocation5 + $0x584] sm:$0xf0]  ;;  %v5194_v56 = vld [vmem:[#allocation5 + $0x670] sm:$0xf] }
  0x5e   :  { %3329 = vmatpush.bf16.msrb.mxu0 %v4627_v7  ;;  %v6663_v7 = vld [vmem:[#allocation5 + $0x4b4] sm:$0xf0]  ;;  %v5010_v51 = vld [vmem:[#allocation5 + $0x500] sm:$0xf]  ;;  %v5322_v61 = vld [vmem:[#allocation5 + $0x770] sm:$0xf]  ;;  %v4947_v63 = vor.u32 %v6657_v48, %v4946_v47 }
  0x5f   :  { %3342 = vmatpush.bf16.msrb.mxu1 %v4691_v13  ;;  %v6695_v13 = vld [vmem:[#allocation5 + $0x5b4] sm:$0xf0]  ;;  %v4971_v16 = vor.u32 %v6663_v7, %v4970_v5  ;;  %v137_v7 = vld [vmem:[#allocation2 + $0x48] sm:$0xff]  ;;  %v5178_v31 = vld [vmem:[#allocation5 + $0x650] sm:$0xf] }
  0x60   :  { %3355 = vmatpush.bf16.msrb.mxu2 %v4755_v14  ;;  %v4907_v14 = vor.u32 %v6647_v4, %v4906_v3  ;;  %v5099_v21 = vor.u32 %v6695_v13, %v5098_v12  ;;  %v6719_v57 = vld [vmem:[#allocation5 + $0x674] sm:$0xf0]  ;;  %v136_v3 = vld [vmem:[#allocation2 + $0x40] sm:$0xff]  ;;  %v5242_v33 = vld [vmem:[#allocation5 + $0x6d0] sm:$0xf] }
  0x61   :  { %3368 = vmatpush.bf16.msrb.mxu3 %v4819_v19  ;;  %3330 = vmatmul.bf16.vlgmr.msrb.gmra.mxu0 %v7352_v37  ;;  %v6645_v19 = vld [vmem:[#allocation5 + $0x424] sm:$0xf0]  ;;  %v6735_v59 = vld [vmem:[#allocation5 + $0x6f4] sm:$0xf0]  ;;  %v5195_v5 = vor.u32 %v6719_v57, %v5194_v56  ;;  %v5186_v13 = vld [vmem:[#allocation5 + $0x660] sm:$0xf] }
  0x62   :  { %3374 = vmatpush.bf16.msra.mxu0 %v4939_v20  ;;  %3343 = vmatmul.bf16.vlgmr.msrb.gmra.mxu1 %v7356_v40  ;;  %v4962_v20 = vld [vmem:[#allocation5 + $0x4a0] sm:$0xf]  ;;  %v4899_v28 = vor.u32 %v6645_v19, %v4898_v18  ;;  %v6751_v62 = vld [vmem:[#allocation5 + $0x774] sm:$0xf0]  ;;  %v7362_v18 = vpack.c.bf16 %v136_v3, %v136_v3  ;;  %v6733_v19 = vld [vmem:[#allocation5 + $0x6e4] sm:$0xf0] }
  0x63   :  { %3387 = vmatpush.bf16.msra.mxu1 %v5003_v24  ;;  %3356 = vmatmul.bf16.vlgmr.msrb.gmra.mxu2 %v7350_v34  ;;  %v6677_v24 = vld [vmem:[#allocation5 + $0x524] sm:$0xf0]  ;;  %v4963_v29 = vor.u32 %v6661_v22, %v4962_v20  ;;  %v139_v10 = vld [vmem:[#allocation2 + $0x58] sm:$0xff]  ;;  %v5323_v12 = vor.u32 %v6751_v62, %v5322_v61  ;;  %v5314_v20 = vld [vmem:[#allocation5 + $0x760] sm:$0xf] }
  0x64   :  { %3400 = vmatpush.bf16.msra.mxu2 %v5067_v26  ;;  %3369 = vmatmul.bf16.vlgmr.msrb.gmra.mxu3 %v7354_v38  ;;  %v5090_v26 = vld [vmem:[#allocation5 + $0x5a0] sm:$0xf]  ;;  %v6715_v32 = vld [vmem:[#allocation5 + $0x654] sm:$0xf0]  ;;  %v6713_v48 = vld [vmem:[#allocation5 + $0x644] sm:$0xf0] }
  0x65   :  { %3413 = vmatpush.bf16.msra.mxu3 %v5131_v30  ;;  %v5027_v30 = vor.u32 %v6677_v24, %v5026_v23  ;;  %v5091_v35 = vor.u32 %v6693_v27, %v5090_v26  ;;  %v7366_v23 = vpack.c.bf16 %v137_v7, %v137_v7  ;;  %v5378_v24 = vld [vmem:[#allocation5 + $0x7e0] sm:$0xf]  ;;  %v6765_v26 = vld [vmem:[#allocation5 + $0x7e4] sm:$0xf0]  ;;  %v7368_v27 = vpack.c.bf16 %v139_v10, %v139_v10  ;;  %v6731_v36 = vld [vmem:[#allocation5 + $0x6d4] sm:$0xf0] }
  0x66   :  { %3375 = vmatpush.bf16.msra.mxu0 %v4931_v39  ;;  %v5018_v39 = vld [vmem:[#allocation5 + $0x510] sm:$0xf]  ;;  %v5170_v47 = vld [vmem:[#allocation5 + $0x640] sm:$0xf]  ;;  %v6759_v3 = vld [vmem:[#allocation5 + $0x7b4] sm:$0xf0] }
  0x67   :  { %3388 = vmatpush.bf16.msra.mxu1 %v4995_v41  ;;  %v6675_v41 = vld [vmem:[#allocation5 + $0x514] sm:$0xf0]  ;;  %v5171_v56 = vor.u32 %v6713_v48, %v5170_v47  ;;  %v5226_v61 = vld [vmem:[#allocation5 + $0x6b0] sm:$0xf]  ;;  %v5154_v7 = vld [vmem:[#allocation5 + $0x620] sm:$0xf] }
  0x68   :  { %3401 = vmatpush.bf16.msra.mxu2 %v5059_v42  ;;  %v5082_v42 = vld [vmem:[#allocation5 + $0x590] sm:$0xf]  ;;  %v5019_v50 = vor.u32 %v6675_v41, %v5018_v39  ;;  %v6747_v41 = vld [vmem:[#allocation5 + $0x754] sm:$0xf0]  ;;  %v6709_v10 = vld [vmem:[#allocation5 + $0x624] sm:$0xf0] }
  0x69   :  { %3414 = vmatpush.bf16.msra.mxu3 %v5123_v46  ;;  %v6641_v46 = vld [vmem:[#allocation5 + $0x404] sm:$0xf0]  ;;  %v5306_v39 = vld [vmem:[#allocation5 + $0x750] sm:$0xf]  ;;  %v5266_v47 = vld [vmem:[#allocation5 + $0x700] sm:$0xf] }
  0x6a   :  { %3376 = vmatpush.bf16.msra.mxu0 %v4923_v52  ;;  %v6673_v52 = vld [vmem:[#allocation5 + $0x504] sm:$0xf0]  ;;  %v4883_v60 = vor.u32 %v6641_v46, %v4882_v44  ;;  %v5179_v44 = vor.u32 %v6715_v32, %v5178_v31  ;;  %v5307_v46 = vor.u32 %v6747_v41, %v5306_v39  ;;  %v6723_v31 = vld [vmem:[#allocation5 + $0x694] sm:$0xf0]  ;;  %v5274_v32 = vld [vmem:[#allocation5 + $0x710] sm:$0xf] }
  0x6b   :  { %3389 = vmatpush.bf16.msra.mxu1 %v4987_v53  ;;  %v5074_v53 = vld [vmem:[#allocation5 + $0x580] sm:$0xf] }
  0x6c   :  { %3402 = vmatpush.bf16.msra.mxu2 %v5051_v54  ;;  %v5083_v54 = vor.u32 %v6691_v43, %v5082_v42  ;;  %v5075_v4 = vor.u32 %v6689_v55, %v5074_v53  ;;  %v5370_v42 = vld [vmem:[#allocation5 + $0x7d0] sm:$0xf]  ;;  %v6763_v43 = vld [vmem:[#allocation5 + $0x7d4] sm:$0xf0]  ;;  %v6745_v53 = vld [vmem:[#allocation5 + $0x744] sm:$0xf0] }
  0x6d   :  { %3415 = vmatpush.bf16.msra.mxu3 %v5115_v58  ;;  %v5258_v58 = vld [vmem:[#allocation5 + $0x6f0] sm:$0xf]  ;;  %v6761_v55 = vld [vmem:[#allocation5 + $0x7c4] sm:$0xf0]  ;;  %v5138_v41 = vld [vmem:[#allocation5 + $0x600] sm:$0xf] }
  0x6e   :  { %3377 = vmatpush.bf16.msra.mxu0 %v4915_v0  ;;  %v5011_v0 = vor.u32 %v6673_v52, %v5010_v51  ;;  %v5259_v11 = vor.u32 %v6735_v59, %v5258_v58  ;;  %v6729_v51 = vld [vmem:[#allocation5 + $0x6c4] sm:$0xf0]  ;;  %v5298_v52 = vld [vmem:[#allocation5 + $0x740] sm:$0xf]  ;;  %v5162_v59 = vld [vmem:[#allocation5 + $0x630] sm:$0xf] }
  0x6f   :  { %3390 = vmatpush.bf16.msra.mxu1 %v4979_v1  ;;  %v5386_v1 = vld [vmem:[#allocation5 + $0x7f0] sm:$0xf]  ;;  %v5299_v58 = vor.u32 %v6745_v53, %v5298_v52  ;;  %v6783_v53 = vld [vmem:[#allocation5 + $0x874] sm:$0xf0] }
  0x70   :  { %3403 = vmatpush.bf16.msra.mxu2 %v5043_v2  ;;  %v6767_v2 = vld [vmem:[#allocation5 + $0x7f4] sm:$0xf0]  ;;  %v5450_v52 = vld [vmem:[#allocation5 + $0x870] sm:$0xf] }
  0x71   :  { %3416 = vmatpush.bf16.msra.mxu3 %v5107_v6  ;;  %v138_v6 = vld [vmem:[#allocation2 + $0x50] sm:$0xff] }
  0x72   :  { %3378 = vmatpush.bf16.msra.mxu0 %v4907_v14  ;;  %v6717_v14 = vld [vmem:[#allocation5 + $0x664] sm:$0xf0]  ;;  %v7364_v22 = vpack.c.bf16 %v138_v6, %v138_v6 }
  0x73   :  { %3391 = vmatpush.bf16.msra.mxu1 %v4971_v16  ;;  %v5250_v16 = vld [vmem:[#allocation5 + $0x6e0] sm:$0xf] }
  0x74   :  { %3404 = vmatpush.bf16.msra.mxu2 %v5035_v17  ;;  %v5387_v17 = vor.u32 %v6767_v2, %v5386_v1  ;;  %v6743_v1 = vld [vmem:[#allocation5 + $0x734] sm:$0xf0]  ;;  %v5354_v2 = vld [vmem:[#allocation5 + $0x7b0] sm:$0xf] }
  0x75   :  { %3417 = vmatpush.bf16.msra.mxu3 %v5099_v21  ;;  %v6749_v21 = vld [vmem:[#allocation5 + $0x764] sm:$0xf0] }
  0x76   :  { %3379 = vmatpush.bf16.msra.mxu0 %v4899_v28  ;;  %v5187_v28 = vor.u32 %v6717_v14, %v5186_v13  ;;  %v6725_v13 = vld [vmem:[#allocation5 + $0x6a4] sm:$0xf0]  ;;  %v5282_v14 = vld [vmem:[#allocation5 + $0x720] sm:$0xf] }
  0x77   :  { %3392 = vmatpush.bf16.msra.mxu1 %v4963_v29  ;;  %v5251_v29 = vor.u32 %v6733_v19, %v5250_v16  ;;  %v6741_v16 = vld [vmem:[#allocation5 + $0x724] sm:$0xf0] }
  0x78   :  { %3405 = vmatpush.bf16.msra.mxu2 %v5027_v30  ;;  %v5315_v30 = vor.u32 %v6749_v21, %v5314_v20  ;;  %v6757_v19 = vld [vmem:[#allocation5 + $0x7a4] sm:$0xf0]  ;;  %v5155_v20 = vor.u32 %v6709_v10, %v5154_v7  ;;  %v5442_v7 = vld [vmem:[#allocation5 + $0x860] sm:$0xf] }
  0x79   :  { %3418 = vmatpush.bf16.msra.mxu3 %v5091_v35  ;;  %v5379_v35 = vor.u32 %v6765_v26, %v5378_v24  ;;  %v5283_v24 = vor.u32 %v6741_v16, %v5282_v14  ;;  %v5146_v26 = vld [vmem:[#allocation5 + $0x610] sm:$0xf]  ;;  %v6781_v10 = vld [vmem:[#allocation5 + $0x864] sm:$0xf0]  ;;  %v5570_v16 = vld [vmem:[#allocation5 + $0x960] sm:$0xf] }
  0x7a   :  { %3380 = vmatpush.bf16.msra.mxu0 %v4891_v45  ;;  %v5243_v45 = vor.u32 %v6731_v36, %v5242_v33  ;;  %v6739_v33 = vld [vmem:[#allocation5 + $0x714] sm:$0xf0]  ;;  %v6797_v14 = vld [vmem:[#allocation5 + $0x8e4] sm:$0xf0] }
  0x7b   :  { %3393 = vmatpush.bf16.msra.mxu1 %v4955_v49  ;;  %v5234_v49 = vld [vmem:[#allocation5 + $0x6c0] sm:$0xf]  ;;  %v6755_v36 = vld [vmem:[#allocation5 + $0x794] sm:$0xf0] }
  0x7c   :  { %3406 = vmatpush.bf16.msra.mxu2 %v5019_v50  ;;  %v5371_v50 = vor.u32 %v6763_v43, %v5370_v42  ;;  %v5235_v57 = vor.u32 %v6729_v51, %v5234_v49  ;;  %v6705_v42 = vld [vmem:[#allocation5 + $0x604] sm:$0xf0] }
  0x7d   :  { %3419 = vmatpush.bf16.msra.mxu3 %v5083_v54  ;;  %v5362_v54 = vld [vmem:[#allocation5 + $0x7c0] sm:$0xf]  ;;  %v6737_v49 = vld [vmem:[#allocation5 + $0x704] sm:$0xf0] }
  0x7e   :  { %3381 = vmatpush.bf16.msra.mxu0 %v4883_v60  ;;  %v6711_v60 = vld [vmem:[#allocation5 + $0x634] sm:$0xf0]  ;;  %v5363_v62 = vor.u32 %v6761_v55, %v5362_v54  ;;  %v6753_v51 = vld [vmem:[#allocation5 + $0x784] sm:$0xf0]  ;;  %v5514_v54 = vld [vmem:[#allocation5 + $0x8f0] sm:$0xf]  ;;  %v5139_v55 = vor.u32 %v6705_v42, %v5138_v41 }
  0x7f   :  { %3394 = vmatpush.bf16.msra.mxu1 %v4947_v63  ;;  %v6727_v63 = vld [vmem:[#allocation5 + $0x6b4] sm:$0xf0]  ;;  %v5626_v42 = vld [vmem:[#allocation5 + $0x9d0] sm:$0xf] }
  0x80   :  { %3407 = vmatpush.bf16.msra.mxu2 %v5011_v0  ;;  %v5290_v0 = vld [vmem:[#allocation5 + $0x730] sm:$0xf]  ;;  %v6811_v41 = vld [vmem:[#allocation5 + $0x954] sm:$0xf0] }
  0x81   :  { %3420 = vmatpush.bf16.msra.mxu3 %v5075_v4  ;;  %3382 = vmatmul.bf16.vlgmr.msra.gmra.mxu0 %v7362_v18  ;;  %v5163_v4 = vor.u32 %v6711_v60, %v5162_v59  ;;  %v5291_v6 = vor.u32 %v6743_v1, %v5290_v0  ;;  %v5267_v60 = vor.u32 %v6737_v49, %v5266_v47  ;;  %v5426_v47 = vld [vmem:[#allocation5 + $0x840] sm:$0xf] }
  0x82   :  { %3426 = vmatpush.bf16.msrb.mxu0 %v5195_v5  ;;  %3395 = vmatmul.bf16.vlgmr.msra.gmra.mxu1 %v7366_v23  ;;  %v5227_v5 = vor.u32 %v6727_v63, %v5226_v61  ;;  %v5642_v61 = vld [vmem:[#allocation5 + $0x9f0] sm:$0xf]  ;;  %v140_v63 = vld [vmem:[#allocation2 + $0x60] sm:$0xff]  ;;  %v5451_v1 = vor.u32 %v6783_v53, %v5450_v52  ;;  %v6809_v53 = vld [vmem:[#allocation5 + $0x944] sm:$0xf0] }
  0x83   :  { %3439 = vmatpush.bf16.msrb.mxu1 %v5259_v11  ;;  %3408 = vmatmul.bf16.vlgmr.msra.gmra.mxu2 %v7364_v22  ;;  %v5218_v11 = vld [vmem:[#allocation5 + $0x6a0] sm:$0xf] }
  0x84   :  { %3452 = vmatpush.bf16.msrb.mxu2 %v5323_v12  ;;  %3421 = vmatmul.bf16.vlgmr.msra.gmra.mxu3 %v7368_v27  ;;  %v5355_v12 = vor.u32 %v6759_v3, %v5354_v2  ;;  %v5219_v21 = vor.u32 %v6725_v13, %v5218_v11  ;;  %v142_v2 = vld [vmem:[#allocation2 + $0x70] sm:$0xff]  ;;  %v141_v3 = vld [vmem:[#allocation2 + $0x68] sm:$0xff]  ;;  %v5506_v11 = vld [vmem:[#allocation5 + $0x8e0] sm:$0xf]  ;;  %v7374_v13 = vpack.c.bf16 %v140_v63, %v140_v63 }
  0x85   :  { %3465 = vmatpush.bf16.msrb.mxu3 %v5387_v17  ;;  %v5346_v17 = vld [vmem:[#allocation5 + $0x7a0] sm:$0xf]  ;;  %v6791_v63 = vld [vmem:[#allocation5 + $0x8b4] sm:$0xf0] }
  0x86   :  { %3427 = vmatpush.bf16.msrb.mxu0 %v5187_v28  ;;  %v6707_v28 = vld [vmem:[#allocation5 + $0x614] sm:$0xf0]  ;;  %v5490_v49 = vld [vmem:[#allocation5 + $0x8c0] sm:$0xf] }
  0x87   :  { %3440 = vmatpush.bf16.msrb.mxu1 %v5251_v29  ;;  %v5210_v29 = vld [vmem:[#allocation5 + $0x690] sm:$0xf]  ;;  %v5147_v39 = vor.u32 %v6707_v28, %v5146_v26  ;;  %v5443_v28 = vor.u32 %v6781_v10, %v5442_v7  ;;  %v5554_v52 = vld [vmem:[#allocation5 + $0x940] sm:$0xf]  ;;  %v6773_v10 = vld [vmem:[#allocation5 + $0x824] sm:$0xf0] }
  0x88   :  { %3453 = vmatpush.bf16.msrb.mxu2 %v5315_v30  ;;  %v5347_v30 = vor.u32 %v6757_v19, %v5346_v17  ;;  %v5211_v43 = vor.u32 %v6723_v31, %v5210_v29  ;;  %v6813_v17 = vld [vmem:[#allocation5 + $0x964] sm:$0xf0]  ;;  %v7376_v19 = vpack.c.bf16 %v142_v2, %v142_v2  ;;  %v5507_v29 = vor.u32 %v6797_v14, %v5506_v11  ;;  %v5434_v31 = vld [vmem:[#allocation5 + $0x850] sm:$0xf]  ;;  %v5410_v7 = vld [vmem:[#allocation5 + $0x820] sm:$0xf] }
  0x89   :  { %3466 = vmatpush.bf16.msrb.mxu3 %v5379_v35  ;;  %v5338_v35 = vld [vmem:[#allocation5 + $0x790] sm:$0xf]  ;;  %v5474_v11 = vld [vmem:[#allocation5 + $0x8a0] sm:$0xf]  ;;  %v6789_v14 = vld [vmem:[#allocation5 + $0x8a4] sm:$0xf0] }
  0x8a   :  { %3428 = vmatpush.bf16.msrb.mxu0 %v5179_v44  ;;  %v5275_v44 = vor.u32 %v6739_v33, %v5274_v32  ;;  %v5339_v48 = vor.u32 %v6755_v36, %v5338_v35  ;;  %v6779_v32 = vld [vmem:[#allocation5 + $0x854] sm:$0xf0]  ;;  %v5498_v33 = vld [vmem:[#allocation5 + $0x8d0] sm:$0xf] }
  0x8b   :  { %3441 = vmatpush.bf16.msrb.mxu1 %v5243_v45  ;;  %v5202_v45 = vld [vmem:[#allocation5 + $0x680] sm:$0xf]  ;;  %v6795_v36 = vld [vmem:[#allocation5 + $0x8d4] sm:$0xf0]  ;;  %v5610_v2 = vld [vmem:[#allocation5 + $0x9b0] sm:$0xf] }
  0x8c   :  { %3454 = vmatpush.bf16.msrb.mxu2 %v5307_v46  ;;  %v6721_v46 = vld [vmem:[#allocation5 + $0x684] sm:$0xf0] }
  0x8d   :  { %3467 = vmatpush.bf16.msrb.mxu3 %v5371_v50  ;;  %v5330_v50 = vld [vmem:[#allocation5 + $0x780] sm:$0xf]  ;;  %v5203_v59 = vor.u32 %v6721_v46, %v5202_v45  ;;  %v5499_v45 = vor.u32 %v6795_v36, %v5498_v33  ;;  %v5466_v33 = vld [vmem:[#allocation5 + $0x890] sm:$0xf]  ;;  %v6787_v36 = vld [vmem:[#allocation5 + $0x894] sm:$0xf0] }
  0x8e   :  { %3429 = vmatpush.bf16.msrb.mxu0 %v5171_v56  ;;  %v6799_v56 = vld [vmem:[#allocation5 + $0x8f4] sm:$0xf0]  ;;  %v5331_v0 = vor.u32 %v6753_v51, %v5330_v50  ;;  %v6793_v51 = vld [vmem:[#allocation5 + $0x8c4] sm:$0xf0] }
  0x8f   :  { %3442 = vmatpush.bf16.msrb.mxu1 %v5235_v57  ;;  %v5578_v57 = vld [vmem:[#allocation5 + $0x970] sm:$0xf] }
  0x90   :  { %3455 = vmatpush.bf16.msrb.mxu2 %v5299_v58  ;;  %v6815_v58 = vld [vmem:[#allocation5 + $0x974] sm:$0xf0] }
  0x91   :  { %3468 = vmatpush.bf16.msrb.mxu3 %v5363_v62  ;;  %v6831_v62 = vld [vmem:[#allocation5 + $0x9f4] sm:$0xf0] }
  0x92   :  { %3430 = vmatpush.bf16.msrb.mxu0 %v5163_v4  ;;  %v143_v4 = vld [vmem:[#allocation2 + $0x78] sm:$0xff] }
  0x93   :  { %3443 = vmatpush.bf16.msrb.mxu1 %v5227_v5  ;;  %v5515_v5 = vor.u32 %v6799_v56, %v5514_v54  ;;  %v7380_v26 = vpack.c.bf16 %v143_v4, %v143_v4  ;;  %v5618_v54 = vld [vmem:[#allocation5 + $0x9c0] sm:$0xf] }
  0x94   :  { %3456 = vmatpush.bf16.msrb.mxu2 %v5291_v6  ;;  %v5579_v6 = vor.u32 %v6815_v58, %v5578_v57  ;;  %v5491_v57 = vor.u32 %v6793_v51, %v5490_v49  ;;  %v5555_v58 = vor.u32 %v6809_v53, %v5554_v52  ;;  %v5458_v49 = vld [vmem:[#allocation5 + $0x880] sm:$0xf]  ;;  %v6801_v53 = vld [vmem:[#allocation5 + $0x904] sm:$0xf0] }
  0x95   :  { %3469 = vmatpush.bf16.msrb.mxu3 %v5355_v12  ;;  %v5643_v12 = vor.u32 %v6831_v62, %v5642_v61  ;;  %v5482_v61 = vld [vmem:[#allocation5 + $0x8b0] sm:$0xf]  ;;  %v5522_v51 = vld [vmem:[#allocation5 + $0x900] sm:$0xf] }
  0x96   :  { %3431 = vmatpush.bf16.msrb.mxu0 %v5155_v20  ;;  %v7378_v20 = vpack.c.bf16 %v141_v3, %v141_v3  ;;  %v6823_v3 = vld [vmem:[#allocation5 + $0x9b4] sm:$0xf0] }
  0x97   :  { %3444 = vmatpush.bf16.msrb.mxu1 %v5219_v21  ;;  %v5634_v21 = vld [vmem:[#allocation5 + $0x9e0] sm:$0xf] }
  0x98   :  { %3457 = vmatpush.bf16.msrb.mxu2 %v5283_v24  ;;  %v6829_v24 = vld [vmem:[#allocation5 + $0x9e4] sm:$0xf0] }
  0x99   :  { %3470 = vmatpush.bf16.msrb.mxu3 %v5347_v30  ;;  %v5571_v30 = vor.u32 %v6813_v17, %v5570_v16  ;;  %v5635_v35 = vor.u32 %v6829_v24, %v5634_v21  ;;  %v5538_v16 = vld [vmem:[#allocation5 + $0x920] sm:$0xf]  ;;  %v6805_v17 = vld [vmem:[#allocation5 + $0x924] sm:$0xf0] }
  0x9a   :  { %3432 = vmatpush.bf16.msrb.mxu0 %v5147_v39  ;;  %v5562_v39 = vld [vmem:[#allocation5 + $0x950] sm:$0xf]  ;;  %v5602_v21 = vld [vmem:[#allocation5 + $0x9a0] sm:$0xf]  ;;  %v6821_v24 = vld [vmem:[#allocation5 + $0x9a4] sm:$0xf0] }
  0x9b   :  { %3445 = vmatpush.bf16.msrb.mxu1 %v5211_v43  ;;  %v6827_v43 = vld [vmem:[#allocation5 + $0x9d4] sm:$0xf0]  ;;  %v5563_v46 = vor.u32 %v6811_v41, %v5562_v39  ;;  %v5530_v39 = vld [vmem:[#allocation5 + $0x910] sm:$0xf] }
  0x9c   :  { %3458 = vmatpush.bf16.msrb.mxu2 %v5275_v44  ;;  %v5435_v44 = vor.u32 %v6779_v32, %v5434_v31  ;;  %v5627_v50 = vor.u32 %v6827_v43, %v5626_v42  ;;  %v5402_v31 = vld [vmem:[#allocation5 + $0x810] sm:$0xf]  ;;  %v6771_v32 = vld [vmem:[#allocation5 + $0x814] sm:$0xf0] }
  0x9d   :  { %3471 = vmatpush.bf16.msrb.mxu3 %v5339_v48  ;;  %v6777_v48 = vld [vmem:[#allocation5 + $0x844] sm:$0xf0]  ;;  %v6803_v41 = vld [vmem:[#allocation5 + $0x914] sm:$0xf0]  ;;  %v5594_v42 = vld [vmem:[#allocation5 + $0x990] sm:$0xf] }
  0x9e   :  { %3433 = vmatpush.bf16.msrb.mxu0 %v5139_v55  ;;  %v6825_v55 = vld [vmem:[#allocation5 + $0x9c4] sm:$0xf0]  ;;  %v5427_v56 = vor.u32 %v6777_v48, %v5426_v47  ;;  %v6819_v43 = vld [vmem:[#allocation5 + $0x994] sm:$0xf0]  ;;  %v5467_v47 = vor.u32 %v6787_v36, %v5466_v33  ;;  %v5531_v48 = vor.u32 %v6803_v41, %v5530_v39  ;;  %v5890_v33 = vld [vmem:[#allocation5 + $0xbe0] sm:$0xf] }
  0x9f   :  { %3446 = vmatpush.bf16.msrb.mxu1 %v5203_v59  ;;  %v5418_v59 = vld [vmem:[#allocation5 + $0x830] sm:$0xf]  ;;  %v5619_v62 = vor.u32 %v6825_v55, %v5618_v54  ;;  %v5595_v52 = vor.u32 %v6819_v43, %v5594_v42  ;;  %v5586_v54 = vld [vmem:[#allocation5 + $0x980] sm:$0xf]  ;;  %v6817_v55 = vld [vmem:[#allocation5 + $0x984] sm:$0xf0] }
  0xa0   :  { %3459 = vmatpush.bf16.msrb.mxu2 %v5267_v60  ;;  %v6775_v60 = vld [vmem:[#allocation5 + $0x834] sm:$0xf0]  ;;  %v5690_v43 = vld [vmem:[#allocation5 + $0xa50] sm:$0xf] }
  0xa1   :  { %3472 = vmatpush.bf16.msrb.mxu3 %v5331_v0  ;;  %3434 = vmatmul.bf16.vlgmr.msrb.gmra.mxu0 %v7374_v13  ;;  %v5546_v0 = vld [vmem:[#allocation5 + $0x930] sm:$0xf]  ;;  %v5419_v4 = vor.u32 %v6775_v60, %v5418_v59  ;;  %v6863_v60 = vld [vmem:[#allocation5 + $0xaf4] sm:$0xf0] }
  0xa2   :  { %3478 = vmatpush.bf16.msra.mxu0 %v5451_v1  ;;  %3447 = vmatmul.bf16.vlgmr.msrb.gmra.mxu1 %v7378_v20  ;;  %v6807_v1 = vld [vmem:[#allocation5 + $0x934] sm:$0xf0] }
  0xa3   :  { %3491 = vmatpush.bf16.msra.mxu1 %v5515_v5  ;;  %3460 = vmatmul.bf16.vlgmr.msrb.gmra.mxu2 %v7376_v19  ;;  %v5483_v5 = vor.u32 %v6791_v63, %v5482_v61  ;;  %v5834_v61 = vld [vmem:[#allocation5 + $0xb70] sm:$0xf] }
  0xa4   :  { %3504 = vmatpush.bf16.msra.mxu2 %v5579_v6  ;;  %3473 = vmatmul.bf16.vlgmr.msrb.gmra.mxu3 %v7380_v26  ;;  %v5547_v6 = vor.u32 %v6807_v1, %v5546_v0  ;;  %v5523_v0 = vor.u32 %v6801_v53, %v5522_v51  ;;  %v5898_v1 = vld [vmem:[#allocation5 + $0xbf0] sm:$0xf]  ;;  %v6891_v51 = vld [vmem:[#allocation5 + $0xbd4] sm:$0xf0]  ;;  %v5682_v53 = vld [vmem:[#allocation5 + $0xa40] sm:$0xf] }
  0xa5   :  { %3517 = vmatpush.bf16.msra.mxu3 %v5643_v12  ;;  %v5611_v12 = vor.u32 %v6823_v3, %v5610_v2  ;;  %v6895_v2 = vld [vmem:[#allocation5 + $0xbf4] sm:$0xf0]  ;;  %v144_v3 = vld [vmem:[#allocation2 + $0x80] sm:$0xff] }
  0xa6   :  { %3479 = vmatpush.bf16.msra.mxu0 %v5443_v28  ;;  %v5411_v28 = vor.u32 %v6773_v10, %v5410_v7  ;;  %v145_v7 = vld [vmem:[#allocation2 + $0x88] sm:$0xff]  ;;  %v147_v10 = vld [vmem:[#allocation2 + $0x98] sm:$0xff] }
  0xa7   :  { %3492 = vmatpush.bf16.msra.mxu1 %v5507_v29  ;;  %v5475_v29 = vor.u32 %v6789_v14, %v5474_v11  ;;  %v5698_v14 = vld [vmem:[#allocation5 + $0xa60] sm:$0xf]  ;;  %v7392_v36 = vpack.c.bf16 %v147_v10, %v147_v10 }
  0xa8   :  { %3505 = vmatpush.bf16.msra.mxu2 %v5571_v30  ;;  %v5539_v30 = vor.u32 %v6805_v17, %v5538_v16  ;;  %v6845_v16 = vld [vmem:[#allocation5 + $0xa64] sm:$0xf0]  ;;  %v5762_v17 = vld [vmem:[#allocation5 + $0xae0] sm:$0xf] }
  0xa9   :  { %3518 = vmatpush.bf16.msra.mxu3 %v5635_v35  ;;  %v5603_v35 = vor.u32 %v6821_v24, %v5602_v21  ;;  %v5899_v21 = vor.u32 %v6895_v2, %v5898_v1  ;;  %v7386_v24 = vpack.c.bf16 %v144_v3, %v144_v3  ;;  %v5699_v39 = vor.u32 %v6845_v16, %v5698_v14  ;;  %v5674_v2 = vld [vmem:[#allocation5 + $0xa30] sm:$0xf]  ;;  %v6871_v14 = vld [vmem:[#allocation5 + $0xb34] sm:$0xf0] }
  0xaa   :  { %3480 = vmatpush.bf16.msra.mxu0 %v5435_v44  ;;  %v5403_v44 = vor.u32 %v6771_v32, %v5402_v31  ;;  %v7390_v32 = vpack.c.bf16 %v145_v7, %v145_v7  ;;  %v5866_v16 = vld [vmem:[#allocation5 + $0xbb0] sm:$0xf] }
  0xab   :  { %3493 = vmatpush.bf16.msra.mxu1 %v5499_v45  ;;  %v5394_v45 = vld [vmem:[#allocation5 + $0x800] sm:$0xf] }
  0xac   :  { %3506 = vmatpush.bf16.msra.mxu2 %v5563_v46  ;;  %v6769_v46 = vld [vmem:[#allocation5 + $0x804] sm:$0xf0] }
  0xad   :  { %3519 = vmatpush.bf16.msra.mxu3 %v5627_v50  ;;  %v6785_v50 = vld [vmem:[#allocation5 + $0x884] sm:$0xf0]  ;;  %v5395_v59 = vor.u32 %v6769_v46, %v5394_v45  ;;  %v5754_v45 = vld [vmem:[#allocation5 + $0xad0] sm:$0xf] }
  0xae   :  { %3481 = vmatpush.bf16.msra.mxu0 %v5427_v56  ;;  %v5706_v56 = vld [vmem:[#allocation5 + $0xa70] sm:$0xf]  ;;  %v5459_v63 = vor.u32 %v6785_v50, %v5458_v49  ;;  %v6875_v49 = vld [vmem:[#allocation5 + $0xb54] sm:$0xf0] }
  0xaf   :  { %3494 = vmatpush.bf16.msra.mxu1 %v5491_v57  ;;  %v6847_v57 = vld [vmem:[#allocation5 + $0xa74] sm:$0xf0]  ;;  %v5882_v50 = vld [vmem:[#allocation5 + $0xbd0] sm:$0xf] }
  0xb0   :  { %3507 = vmatpush.bf16.msra.mxu2 %v5555_v58  ;;  %v5770_v58 = vld [vmem:[#allocation5 + $0xaf0] sm:$0xf] }
  0xb1   :  { %3520 = vmatpush.bf16.msra.mxu3 %v5619_v62  ;;  %v6879_v62 = vld [vmem:[#allocation5 + $0xb74] sm:$0xf0]  ;;  %v5771_v11 = vor.u32 %v6863_v60, %v5770_v58  ;;  %v6857_v58 = vld [vmem:[#allocation5 + $0xac4] sm:$0xf0]  ;;  %v5810_v60 = vld [vmem:[#allocation5 + $0xb40] sm:$0xf] }
  0xb2   :  { %3482 = vmatpush.bf16.msra.mxu0 %v5419_v4  ;;  %v5587_v4 = vor.u32 %v6817_v55, %v5586_v54 }
  0xb3   :  { %3495 = vmatpush.bf16.msra.mxu1 %v5483_v5  ;;  %v5707_v5 = vor.u32 %v6847_v57, %v5706_v56  ;;  %v6841_v56 = vld [vmem:[#allocation5 + $0xa44] sm:$0xf0]  ;;  %v5746_v57 = vld [vmem:[#allocation5 + $0xac0] sm:$0xf] }
  0xb4   :  { %3508 = vmatpush.bf16.msra.mxu2 %v5547_v6  ;;  %v146_v6 = vld [vmem:[#allocation2 + $0x90] sm:$0xff]  ;;  %v5683_v1 = vor.u32 %v6841_v56, %v5682_v53  ;;  %v5747_v3 = vor.u32 %v6857_v58, %v5746_v57  ;;  %v6835_v53 = vld [vmem:[#allocation5 + $0xa14] sm:$0xf0] }
  0xb5   :  { %3521 = vmatpush.bf16.msra.mxu3 %v5611_v12  ;;  %v5835_v12 = vor.u32 %v6879_v62, %v5834_v61  ;;  %v7388_v31 = vpack.c.bf16 %v146_v6, %v146_v6  ;;  %v6873_v61 = vld [vmem:[#allocation5 + $0xb44] sm:$0xf0]  ;;  %v704_v62 = vld [vmem:[#allocation7] sm:$0x3]  ;;  %v5738_v6 = vld [vmem:[#allocation5 + $0xab0] sm:$0xf] }
  0xb6   :  { %3483 = vmatpush.bf16.msra.mxu0 %v5411_v28  ;;  %v6861_v28 = vld [vmem:[#allocation5 + $0xae4] sm:$0xf0]  ;;  %v706_v7 = vperm.slane %v704_v62, 0  ;;  %v6851_v57 = vld [vmem:[#allocation5 + $0xa94] sm:$0xf0] }
  0xb7   :  { %3496 = vmatpush.bf16.msra.mxu1 %v5475_v29  ;;  %v5826_v29 = vld [vmem:[#allocation5 + $0xb60] sm:$0xf]  ;;  %v5763_v41 = vor.u32 %v6861_v28, %v5762_v17  ;;  %v6887_v17 = vld [vmem:[#allocation5 + $0xbb4] sm:$0xf0]  ;;  %v5786_v58 = vld [vmem:[#allocation5 + $0xb10] sm:$0xf] }
  0xb8   :  { %3509 = vmatpush.bf16.msra.mxu2 %v5539_v30  ;;  %v6877_v30 = vld [vmem:[#allocation5 + $0xb64] sm:$0xf0]  ;;  %v6883_v62 = vld [vmem:[#allocation5 + $0xb94] sm:$0xf0] }
  0xb9   :  { %3522 = vmatpush.bf16.msra.mxu3 %v5603_v35  ;;  %v6893_v35 = vld [vmem:[#allocation5 + $0xbe4] sm:$0xf0]  ;;  %v5827_v42 = vor.u32 %v6877_v30, %v5826_v29 }
  0xba   :  { %3484 = vmatpush.bf16.msra.mxu0 %v5403_v44  ;;  %v6843_v44 = vld [vmem:[#allocation5 + $0xa54] sm:$0xf0]  ;;  %v5891_v46 = vor.u32 %v6893_v35, %v5890_v33  ;;  %v5666_v33 = vld [vmem:[#allocation5 + $0xa20] sm:$0xf]  ;;  %v6837_v35 = vld [vmem:[#allocation5 + $0xa24] sm:$0xf0] }
  0xbb   :  { %3497 = vmatpush.bf16.msra.mxu1 %v5467_v47  ;;  %v6859_v47 = vld [vmem:[#allocation5 + $0xad4] sm:$0xf0] }
  0xbc   :  { %3510 = vmatpush.bf16.msra.mxu2 %v5531_v48  ;;  %v5818_v48 = vld [vmem:[#allocation5 + $0xb50] sm:$0xf]  ;;  %v5755_v54 = vor.u32 %v6859_v47, %v5754_v45  ;;  %v6869_v45 = vld [vmem:[#allocation5 + $0xb24] sm:$0xf0] }
  0xbd   :  { %3523 = vmatpush.bf16.msra.mxu3 %v5595_v52  ;;  %v5691_v52 = vor.u32 %v6843_v44, %v5690_v43  ;;  %v5819_v55 = vor.u32 %v6875_v49, %v5818_v48  ;;  %v6853_v43 = vld [vmem:[#allocation5 + $0xaa4] sm:$0xf0]  ;;  %v5794_v44 = vld [vmem:[#allocation5 + $0xb20] sm:$0xf]  ;;  %v5667_v48 = vor.u32 %v6837_v35, %v5666_v33  ;;  %v6927_v35 = vld [vmem:[#allocation5 + $0xcf4] sm:$0xf0] }
  0xbe   :  { %3485 = vmatpush.bf16.msra.mxu0 %v5395_v59  ;;  %v5883_v59 = vor.u32 %v6891_v51, %v5882_v50  ;;  %v3279_v28 = vpop.f32.mrf.mxu0  ;;  %v6885_v47 = vld [vmem:[#allocation5 + $0xba4] sm:$0xf0]  ;;  %v5795_v51 = vor.u32 %v6869_v45, %v5794_v44  ;;  %v6154_v45 = vld [vmem:[#allocation5 + $0xdf0] sm:$0xf] }
  0xbf   :  { %3498 = vmatpush.bf16.msra.mxu1 %v5459_v63  ;;  %v5874_v63 = vld [vmem:[#allocation5 + $0xbc0] sm:$0xf] }
  0xc0   :  { %3511 = vmatpush.bf16.msra.mxu2 %v5523_v0  ;;  %v6889_v0 = vld [vmem:[#allocation5 + $0xbc4] sm:$0xf0] }
  0xc1   :  { %3524 = vmatpush.bf16.msra.mxu3 %v5587_v4  ;;  %3486 = vmatmul.bf16.vlgmr.msra.gmra.mxu0 %v7386_v24  ;;  %v5811_v4 = vor.u32 %v6873_v61, %v5810_v60  ;;  %v5875_v10 = vor.u32 %v6889_v0, %v5874_v63  ;;  %v5850_v61 = vld [vmem:[#allocation5 + $0xb90] sm:$0xf] }
  0xc2   :  { %3530 = vmatpush.bf16.msrb.mxu0 %v5707_v5  ;;  %3499 = vmatmul.bf16.vlgmr.msra.gmra.mxu1 %v7390_v32  ;;  %v6839_v5 = vld [vmem:[#allocation5 + $0xa34] sm:$0xf0]  ;;  %v3292_v49 = vpop.f32.mrf.mxu1 }
  0xc3   :  { %3543 = vmatpush.bf16.msrb.mxu1 %v5771_v11  ;;  %3512 = vmatmul.bf16.vlgmr.msra.gmra.mxu2 %v7388_v31  ;;  %v6855_v11 = vld [vmem:[#allocation5 + $0xab4] sm:$0xf0] }
  0xc4   :  { %3556 = vmatpush.bf16.msrb.mxu2 %v5835_v12  ;;  %3525 = vmatmul.bf16.vlgmr.msra.gmra.mxu3 %v7392_v36  ;;  %v5802_v12 = vld [vmem:[#allocation5 + $0xb30] sm:$0xf]  ;;  %v5739_v29 = vor.u32 %v6855_v11, %v5738_v6  ;;  %v5778_v11 = vld [vmem:[#allocation5 + $0xb00] sm:$0xf] }
  0xc5   :  { %3569 = vmatpush.bf16.msrb.mxu3 %v5899_v21  ;;  %v5675_v21 = vor.u32 %v6839_v5, %v5674_v2  ;;  %v5803_v30 = vor.u32 %v6871_v14, %v5802_v12  ;;  %v5650_v2 = vld [vmem:[#allocation5 + $0xa00] sm:$0xf]  ;;  %v5851_v14 = vor.u32 %v6883_v62, %v5850_v61  ;;  %v6925_v62 = vld [vmem:[#allocation5 + $0xce4] sm:$0xf0] }
  0xc6   :  { %3531 = vmatpush.bf16.msrb.mxu0 %v5699_v39  ;;  %v5730_v39 = vld [vmem:[#allocation5 + $0xaa0] sm:$0xf]  ;;  %v3305_v60 = vpop.f32.mrf.mxu2 }
  0xc7   :  { %3544 = vmatpush.bf16.msrb.mxu1 %v5763_v41  ;;  %v3280_v41 = vadd.f32 %v3279_v28, %v706_v7  ;;  %v5731_v50 = vor.u32 %v6853_v43, %v5730_v39  ;;  %v3318_v0 = vpop.f32.mrf.mxu3  ;;  %v5714_v7 = vld [vmem:[#allocation5 + $0xa80] sm:$0xf]  ;;  %v5962_v28 = vld [vmem:[#allocation5 + $0xc70] sm:$0xf] }
  0xc8   :  { %3557 = vmatpush.bf16.msrb.mxu2 %v5827_v42  ;;  %v5867_v42 = vor.u32 %v6887_v17, %v5866_v16  ;;  %v6865_v16 = vld [vmem:[#allocation5 + $0xb04] sm:$0xf0]  ;;  %v5842_v17 = vld [vmem:[#allocation5 + $0xb80] sm:$0xf]  ;;  %v6090_v39 = vld [vmem:[#allocation5 + $0xd70] sm:$0xf] }
  0xc9   :  { %3570 = vmatpush.bf16.msrb.mxu3 %v5891_v46  ;;  %v5858_v46 = vld [vmem:[#allocation5 + $0xba0] sm:$0xf]  ;;  %v5779_v44 = vor.u32 %v6865_v16, %v5778_v11  ;;  %v5946_v11 = vld [vmem:[#allocation5 + $0xc50] sm:$0xf] }
  0xca   :  { %3532 = vmatpush.bf16.msrb.mxu0 %v5691_v52  ;;  %v5658_v52 = vld [vmem:[#allocation5 + $0xa10] sm:$0xf]  ;;  %v5859_v56 = vor.u32 %v6885_v47, %v5858_v46  ;;  %v6959_v46 = vld [vmem:[#allocation5 + $0xdf4] sm:$0xf0]  ;;  %v148_v47 = vld [vmem:[#allocation2 + $0xa0] sm:$0xff] }
  0xcb   :  { %3545 = vmatpush.bf16.msrb.mxu1 %v5755_v54  ;;  %v5722_v54 = vld [vmem:[#allocation5 + $0xa90] sm:$0xf]  ;;  %v7400_v61 = vpack.c.bf16 %v148_v47, %v148_v47  ;;  %v6066_v47 = vld [vmem:[#allocation5 + $0xd40] sm:$0xf] }
  0xcc   :  { %3558 = vmatpush.bf16.msrb.mxu2 %v5819_v55  ;;  %v3293_v55 = vadd.f32 %v3292_v49, %v3280_v41  ;;  %v5723_v5 = vor.u32 %v6851_v57, %v5722_v54  ;;  %v6943_v41 = vld [vmem:[#allocation5 + $0xd74] sm:$0xf0]  ;;  %v6909_v57 = vld [vmem:[#allocation5 + $0xc64] sm:$0xf0]  ;;  %v6010_v16 = vld [vmem:[#allocation5 + $0xcd0] sm:$0xf] }
  0xcd   :  { %3571 = vmatpush.bf16.msrb.mxu3 %v5883_v59  ;;  %v6867_v59 = vld [vmem:[#allocation5 + $0xb14] sm:$0xf0] }
  0xce   :  { %3533 = vmatpush.bf16.msrb.mxu0 %v5683_v1  ;;  %v3306_v63 = vadd.f32 %v3305_v60, %v3293_v55  ;;  %v5659_v1 = vor.u32 %v6835_v53, %v5658_v52  ;;  %v5787_v6 = vor.u32 %v6867_v59, %v5786_v58  ;;  %v151_v52 = vld [vmem:[#allocation2 + $0xb8] sm:$0xff]  ;;  %v3307_v53 = vpop.f32.mrf.mxu2  ;;  %v6091_v55 = vor.u32 %v6943_v41, %v6090_v39  ;;  %v6018_v58 = vld [vmem:[#allocation5 + $0xce0] sm:$0xf] }
  0xcf   :  { %3546 = vmatpush.bf16.msrb.mxu1 %v5747_v3  ;;  %v6833_v3 = vld [vmem:[#allocation5 + $0xa04] sm:$0xf0]  ;;  %v3320_v59 = vpop.f32.mrf.mxu3  ;;  %v6155_v60 = vor.u32 %v6959_v46, %v6154_v45 }
  0xd0   :  { %3559 = vmatpush.bf16.msrb.mxu2 %v5811_v4  ;;  %v3281_v4 = vpop.f32.mrf.mxu0  ;;  %v7398_v12 = vadd.f32 %v3318_v0, %v3306_v63  ;;  %v5651_v33 = vor.u32 %v6833_v3, %v5650_v2  ;;  %v6082_v63 = vld [vmem:[#allocation5 + $0xd60] sm:$0xf]  ;;  %v6941_v0 = vld [vmem:[#allocation5 + $0xd64] sm:$0xf0] }
  0xd1   :  { %3572 = vmatpush.bf16.msrb.mxu3 %v5875_v10  ;;  %v6849_v10 = vld [vmem:[#allocation5 + $0xa84] sm:$0xf0]  ;;  %v6146_v3 = vld [vmem:[#allocation5 + $0xde0] sm:$0xf] }
  0xd2   :  { %3534 = vmatpush.bf16.msrb.mxu0 %v5675_v21  ;;  %v6881_v21 = vld [vmem:[#allocation5 + $0xb84] sm:$0xf0]  ;;  %v5715_v43 = vor.u32 %v6849_v10, %v5714_v7  ;;  %v6019_v7 = vor.u32 %v6925_v62, %v6018_v58  ;;  %v6083_v10 = vor.u32 %v6941_v0, %v6082_v63  ;;  %v6919_v62 = vld [vmem:[#allocation5 + $0xcb4] sm:$0xf0]  ;;  %v6058_v63 = vld [vmem:[#allocation5 + $0xd30] sm:$0xf] }
  0xd3   :  { %3547 = vmatpush.bf16.msrb.mxu1 %v5739_v29  ;;  %v6911_v29 = vld [vmem:[#allocation5 + $0xc74] sm:$0xf0]  ;;  %v6957_v4 = vld [vmem:[#allocation5 + $0xde4] sm:$0xf0] }
  0xd4   :  { %3560 = vmatpush.bf16.msrb.mxu2 %v5803_v30  ;;  %v6026_v30 = vld [vmem:[#allocation5 + $0xcf0] sm:$0xf]  ;;  %v5963_v49 = vor.u32 %v6911_v29, %v5962_v28  ;;  %v6939_v29 = vld [vmem:[#allocation5 + $0xd54] sm:$0xf0]  ;;  %v6921_v46 = vld [vmem:[#allocation5 + $0xcc4] sm:$0xf0] }
  0xd5   :  { %3573 = vmatpush.bf16.msrb.mxu3 %v5867_v42  ;;  %v3294_v42 = vpop.f32.mrf.mxu1  ;;  %v6027_v54 = vor.u32 %v6927_v35, %v6026_v30  ;;  %v6074_v28 = vld [vmem:[#allocation5 + $0xd50] sm:$0xf]  ;;  %v6935_v0 = vld [vmem:[#allocation5 + $0xd34] sm:$0xf0] }
  0xd6   :  { %3535 = vmatpush.bf16.msrb.mxu0 %v5667_v48  ;;  %v5843_v48 = vor.u32 %v6881_v21, %v5842_v17  ;;  %v6147_v17 = vor.u32 %v6957_v4, %v6146_v3  ;;  %v6923_v21 = vld [vmem:[#allocation5 + $0xcd4] sm:$0xf0]  ;;  %v6138_v30 = vld [vmem:[#allocation5 + $0xdd0] sm:$0xf]  ;;  %v6075_v41 = vor.u32 %v6939_v29, %v6074_v28  ;;  %v5938_v42 = vld [vmem:[#allocation5 + $0xc40] sm:$0xf] }
  0xd7   :  { %3548 = vmatpush.bf16.msrb.mxu1 %v5731_v50  ;;  %v150_v50 = vld [vmem:[#allocation2 + $0xb0] sm:$0xff]  ;;  %v6011_v39 = vor.u32 %v6923_v21, %v6010_v16  ;;  %v6951_v4 = vld [vmem:[#allocation5 + $0xdb4] sm:$0xf0]  ;;  %v6901_v16 = vld [vmem:[#allocation5 + $0xc24] sm:$0xf0] }
  0xd8   :  { %3561 = vmatpush.bf16.msrb.mxu2 %v5795_v51  ;;  %v149_v51 = vld [vmem:[#allocation2 + $0xa8] sm:$0xff]  ;;  %v6122_v3 = vld [vmem:[#allocation5 + $0xdb0] sm:$0xf]  ;;  %v6050_v29 = vld [vmem:[#allocation5 + $0xd20] sm:$0xf] }
  0xd9   :  { %3574 = vmatpush.bf16.msrb.mxu3 %v5859_v56  ;;  %v5954_v56 = vld [vmem:[#allocation5 + $0xc60] sm:$0xf]  ;;  %v7404_v2 = vpack.c.bf16 %v149_v51, %v149_v51  ;;  %v6917_v28 = vld [vmem:[#allocation5 + $0xca4] sm:$0xf0] }
  0xda   :  { %3536 = vmatpush.bf16.msrb.mxu0 %v5659_v1  ;;  %v7402_v1 = vpack.c.bf16 %v150_v50, %v150_v50  ;;  %v6953_v50 = vld [vmem:[#allocation5 + $0xdc4] sm:$0xf0] }
  0xdb   :  { %3549 = vmatpush.bf16.msrb.mxu1 %v5723_v5  ;;  %v7406_v5 = vpack.c.bf16 %v151_v52, %v151_v52 }
  0xdc   :  { %3562 = vmatpush.bf16.msrb.mxu2 %v5787_v6  ;;  %v5955_v6 = vor.u32 %v6909_v57, %v5954_v56  ;;  %v6903_v56 = vld [vmem:[#allocation5 + $0xc34] sm:$0xf0]  ;;  %v5994_v57 = vld [vmem:[#allocation5 + $0xcb0] sm:$0xf] }
  0xdd   :  { %3575 = vmatpush.bf16.msrb.mxu3 %v5851_v14  ;;  %v6907_v14 = vld [vmem:[#allocation5 + $0xc54] sm:$0xf0] }
  0xde   :  { %3537 = vmatpush.bf16.msrb.mxu0 %v5651_v33  ;;  %v6955_v33 = vld [vmem:[#allocation5 + $0xdd4] sm:$0xf0]  ;;  %v5947_v35 = vor.u32 %v6907_v14, %v5946_v11  ;;  %v3331_v52 = vpop.f32.mrf.mxu0  ;;  %v6059_v11 = vor.u32 %v6935_v0, %v6058_v63  ;;  %v5922_v14 = vld [vmem:[#allocation5 + $0xc20] sm:$0xf]  ;;  %v6913_v0 = vld [vmem:[#allocation5 + $0xc84] sm:$0xf0] }
  0xdf   :  { %3550 = vmatpush.bf16.msrb.mxu1 %v5715_v43  ;;  %v6905_v43 = vld [vmem:[#allocation5 + $0xc44] sm:$0xf0]  ;;  %v6139_v45 = vor.u32 %v6955_v33, %v6138_v30  ;;  %v3332_v58 = vadd.f32 %v3331_v52, %v7398_v12  ;;  %v3344_v59 = vpop.f32.mrf.mxu1  ;;  %v6123_v12 = vor.u32 %v6951_v4, %v6122_v3  ;;  %v6915_v52 = vld [vmem:[#allocation5 + $0xc94] sm:$0xf0]  ;;  %v5970_v63 = vld [vmem:[#allocation5 + $0xc80] sm:$0xf] }
  0xe0   :  { %3563 = vmatpush.bf16.msrb.mxu2 %v5779_v44  ;;  %v6002_v44 = vld [vmem:[#allocation5 + $0xcc0] sm:$0xf]  ;;  %v5939_v51 = vor.u32 %v6905_v43, %v5938_v42  ;;  %v6933_v30 = vld [vmem:[#allocation5 + $0xd24] sm:$0xf0]  ;;  %v5923_v42 = vor.u32 %v6901_v16, %v5922_v14  ;;  %v6218_v16 = vld [vmem:[#allocation5 + $0xe70] sm:$0xf] }
  0xe1   :  { %3576 = vmatpush.bf16.msrb.mxu3 %v5843_v48  ;;  %3538 = vmatmul.bf16.vlgmr.msrb.gmra.mxu0 %v7400_v61  ;;  %v6937_v48 = vld [vmem:[#allocation5 + $0xd44] sm:$0xf0]  ;;  %v6003_v53 = vor.u32 %v6921_v46, %v6002_v44  ;;  %v6051_v46 = vor.u32 %v6933_v30, %v6050_v29  ;;  %v6034_v3 = vld [vmem:[#allocation5 + $0xd00] sm:$0xf]  ;;  %v6346_v29 = vld [vmem:[#allocation5 + $0xf70] sm:$0xf] }
  0xe2   :  { %3582 = vmatpush.bf16.msra.mxu0 %v5963_v49  ;;  %3551 = vmatmul.bf16.vlgmr.msrb.gmra.mxu1 %v7404_v2  ;;  %v6130_v49 = vld [vmem:[#allocation5 + $0xdc0] sm:$0xf]  ;;  %v7007_v30 = vld [vmem:[#allocation5 + $0xf74] sm:$0xf0] }
  0xe3   :  { %3595 = vmatpush.bf16.msra.mxu1 %v6027_v54  ;;  %3564 = vmatmul.bf16.vlgmr.msrb.gmra.mxu2 %v7402_v1  ;;  %v6067_v54 = vor.u32 %v6937_v48, %v6066_v47  ;;  %v5914_v47 = vld [vmem:[#allocation5 + $0xc10] sm:$0xf]  ;;  %v6899_v48 = vld [vmem:[#allocation5 + $0xc14] sm:$0xf0] }
  0xe4   :  { %3608 = vmatpush.bf16.msra.mxu2 %v6091_v55  ;;  %3577 = vmatmul.bf16.vlgmr.msrb.gmra.mxu3 %v7406_v5  ;;  %v5930_v55 = vld [vmem:[#allocation5 + $0xc30] sm:$0xf] }
  0xe5   :  { %3621 = vmatpush.bf16.msra.mxu3 %v6155_v60  ;;  %v6131_v60 = vor.u32 %v6953_v50, %v6130_v49  ;;  %v5978_v49 = vld [vmem:[#allocation5 + $0xc90] sm:$0xf] }
  0xe6   :  { %3583 = vmatpush.bf16.msra.mxu0 %v5955_v6  ;;  %v3345_v6 = vadd.f32 %v3344_v59, %v3332_v58  ;;  %v3357_v21 = vpop.f32.mrf.mxu2  ;;  %v3333_v44 = vpop.f32.mrf.mxu0  ;;  %v5906_v58 = vld [vmem:[#allocation5 + $0xc00] sm:$0xf]  ;;  %v6897_v59 = vld [vmem:[#allocation5 + $0xc04] sm:$0xf0] }
  0xe7   :  { %3596 = vmatpush.bf16.msra.mxu1 %v6019_v7  ;;  %v5931_v7 = vor.u32 %v6903_v56, %v5930_v55  ;;  %v3346_v50 = vpop.f32.mrf.mxu1  ;;  %v6106_v55 = vld [vmem:[#allocation5 + $0xd90] sm:$0xf]  ;;  %v6947_v56 = vld [vmem:[#allocation5 + $0xd94] sm:$0xf0] }
  0xe8   :  { %3609 = vmatpush.bf16.msra.mxu2 %v6083_v10  ;;  %v5995_v10 = vor.u32 %v6919_v62, %v5994_v57  ;;  %v3358_v33 = vadd.f32 %v3357_v21, %v3345_v6  ;;  %v5915_v57 = vor.u32 %v6899_v48, %v5914_v47  ;;  %v6107_v6 = vor.u32 %v6947_v56, %v6106_v55  ;;  %v6282_v21 = vld [vmem:[#allocation5 + $0xef0] sm:$0xf]  ;;  %v153_v47 = vld [vmem:[#allocation2 + $0xc8] sm:$0xff]  ;;  %v155_v48 = vld [vmem:[#allocation2 + $0xd8] sm:$0xff] }
  0xe9   :  { %3622 = vmatpush.bf16.msra.mxu3 %v6147_v17  ;;  %v5986_v17 = vld [vmem:[#allocation5 + $0xca0] sm:$0xf]  ;;  %v6347_v50 = vor.u32 %v7007_v30, %v6346_v29  ;;  %v6989_v56 = vld [vmem:[#allocation5 + $0xee4] sm:$0xf0] }
  0xea   :  { %3584 = vmatpush.bf16.msra.mxu0 %v5947_v35  ;;  %v3370_v35 = vpop.f32.mrf.mxu3 }
  0xeb   :  { %3597 = vmatpush.bf16.msra.mxu1 %v6011_v39  ;;  %v6114_v39 = vld [vmem:[#allocation5 + $0xda0] sm:$0xf]  ;;  %v7413_v43 = vadd.f32 %v3370_v35, %v3358_v33  ;;  %v5971_v33 = vor.u32 %v6913_v0, %v5970_v63  ;;  %v7021_v63 = vld [vmem:[#allocation5 + $0xfe4] sm:$0xf0]  ;;  %v7421_v0 = vpack.c.bf16 %v155_v48, %v155_v48 }
  0xec   :  { %3610 = vmatpush.bf16.msra.mxu2 %v6075_v41  ;;  %v6949_v41 = vld [vmem:[#allocation5 + $0xda4] sm:$0xf0]  ;;  %v6386_v48 = vld [vmem:[#allocation5 + $0xfc0] sm:$0xf] }
  0xed   :  { %3623 = vmatpush.bf16.msra.mxu3 %v6139_v45  ;;  %v5987_v45 = vor.u32 %v6917_v28, %v5986_v17  ;;  %v6975_v17 = vld [vmem:[#allocation5 + $0xe74] sm:$0xf0] }
  0xee   :  { %3585 = vmatpush.bf16.msra.mxu0 %v5939_v51  ;;  %v6115_v51 = vor.u32 %v6949_v41, %v6114_v39  ;;  %v3359_v4 = vpop.f32.mrf.mxu2  ;;  %v6991_v28 = vld [vmem:[#allocation5 + $0xef4] sm:$0xf0]  ;;  %v6410_v39 = vld [vmem:[#allocation5 + $0xff0] sm:$0xf] }
  0xef   :  { %3598 = vmatpush.bf16.msra.mxu1 %v6003_v53  ;;  %v6042_v53 = vld [vmem:[#allocation5 + $0xd10] sm:$0xf]  ;;  %v7023_v41 = vld [vmem:[#allocation5 + $0xff4] sm:$0xf0] }
  0xf0   :  { %3611 = vmatpush.bf16.msra.mxu2 %v6067_v54  ;;  %v6931_v54 = vld [vmem:[#allocation5 + $0xd14] sm:$0xf0] }
  0xf1   :  { %3624 = vmatpush.bf16.msra.mxu3 %v6131_v60  ;;  %v5979_v60 = vor.u32 %v6915_v52, %v5978_v49  ;;  %v6043_v62 = vor.u32 %v6931_v54, %v6042_v53  ;;  %v6283_v49 = vor.u32 %v6991_v28, %v6282_v21  ;;  %v6973_v52 = vld [vmem:[#allocation5 + $0xe64] sm:$0xf0]  ;;  %v6274_v53 = vld [vmem:[#allocation5 + $0xee0] sm:$0xf]  ;;  %v6411_v54 = vor.u32 %v7023_v41, %v6410_v39  ;;  %v7003_v21 = vld [vmem:[#allocation5 + $0xf54] sm:$0xf0] }
  0xf2   :  { %3586 = vmatpush.bf16.msra.mxu0 %v5931_v7  ;;  %v6929_v7 = vld [vmem:[#allocation5 + $0xd04] sm:$0xf0]  ;;  %v3372_v14 = vpop.f32.mrf.mxu3  ;;  %v6275_v4 = vor.u32 %v6989_v56, %v6274_v53  ;;  %v7019_v28 = vld [vmem:[#allocation5 + $0xfd4] sm:$0xf0]  ;;  %v6258_v41 = vld [vmem:[#allocation5 + $0xec0] sm:$0xf] }
  0xf3   :  { %3599 = vmatpush.bf16.msra.mxu1 %v5995_v10  ;;  %v6098_v10 = vld [vmem:[#allocation5 + $0xd80] sm:$0xf]  ;;  %v6035_v35 = vor.u32 %v6929_v7, %v6034_v3  ;;  %v6202_v7 = vld [vmem:[#allocation5 + $0xe50] sm:$0xf]  ;;  %v6969_v39 = vld [vmem:[#allocation5 + $0xe44] sm:$0xf0] }
  0xf4   :  { %3612 = vmatpush.bf16.msra.mxu2 %v6059_v11  ;;  %v6945_v11 = vld [vmem:[#allocation5 + $0xd84] sm:$0xf0]  ;;  %v6186_v56 = vld [vmem:[#allocation5 + $0xe30] sm:$0xf] }
  0xf5   :  { %3625 = vmatpush.bf16.msra.mxu3 %v6123_v12  ;;  %v5907_v12 = vor.u32 %v6897_v59, %v5906_v58  ;;  %v6099_v44 = vor.u32 %v6945_v11, %v6098_v10  ;;  %v7005_v58 = vld [vmem:[#allocation5 + $0xf64] sm:$0xf0]  ;;  %v6971_v10 = vld [vmem:[#allocation5 + $0xe54] sm:$0xf0]  ;;  %v6266_v11 = vld [vmem:[#allocation5 + $0xed0] sm:$0xf] }
  0xf6   :  { %3587 = vmatpush.bf16.msra.mxu0 %v5923_v42  ;;  %v152_v42 = vld [vmem:[#allocation2 + $0xc0] sm:$0xff]  ;;  %v6203_v29 = vor.u32 %v6971_v10, %v6202_v7  ;;  %v6378_v7 = vld [vmem:[#allocation5 + $0xfb0] sm:$0xf]  ;;  %v7015_v10 = vld [vmem:[#allocation5 + $0xfb4] sm:$0xf0] }
  0xf7   :  { %3600 = vmatpush.bf16.msra.mxu1 %v5987_v45  ;;  %v6219_v45 = vor.u32 %v6975_v17, %v6218_v16  ;;  %v7415_v55 = vpack.c.bf16 %v152_v42, %v152_v42  ;;  %v6987_v16 = vld [vmem:[#allocation5 + $0xed4] sm:$0xf0]  ;;  %v6330_v17 = vld [vmem:[#allocation5 + $0xf50] sm:$0xf] }
  0xf8   :  { %3613 = vmatpush.bf16.msra.mxu2 %v6051_v46  ;;  %v154_v46 = vld [vmem:[#allocation2 + $0xd0] sm:$0xff]  ;;  %v6267_v30 = vor.u32 %v6987_v16, %v6266_v11  ;;  %v6178_v16 = vld [vmem:[#allocation5 + $0xe20] sm:$0xf] }
  0xf9   :  { %3626 = vmatpush.bf16.msra.mxu3 %v6115_v51  ;;  %v6210_v51 = vld [vmem:[#allocation5 + $0xe60] sm:$0xf]  ;;  %v7417_v59 = vpack.c.bf16 %v154_v46, %v154_v46  ;;  %v7001_v46 = vld [vmem:[#allocation5 + $0xf44] sm:$0xf0] }
  0xfa   :  { %3588 = vmatpush.bf16.msra.mxu0 %v5915_v57  ;;  %v6338_v57 = vld [vmem:[#allocation5 + $0xf60] sm:$0xf]  ;;  %v6211_v3 = vor.u32 %v6973_v52, %v6210_v51 }
  0xfb   :  { %3601 = vmatpush.bf16.msra.mxu1 %v5979_v60  ;;  %v7419_v60 = vpack.c.bf16 %v153_v47, %v153_v47 }
  0xfc   :  { %3614 = vmatpush.bf16.msra.mxu2 %v6043_v62  ;;  %v6402_v62 = vld [vmem:[#allocation5 + $0xfe0] sm:$0xf] }
  0xfd   :  { %3627 = vmatpush.bf16.msra.mxu3 %v6107_v6  ;;  %v6339_v6 = vor.u32 %v7005_v58, %v6338_v57  ;;  %v6403_v14 = vor.u32 %v7021_v63, %v6402_v62  ;;  %v6967_v57 = vld [vmem:[#allocation5 + $0xe34] sm:$0xf0]  ;;  %v6250_v58 = vld [vmem:[#allocation5 + $0xeb0] sm:$0xf] }
  0xfe   :  { %3589 = vmatpush.bf16.msra.mxu0 %v5907_v12  ;;  %v6394_v12 = vld [vmem:[#allocation5 + $0xfd0] sm:$0xf]  ;;  %v3383_v47 = vpop.f32.mrf.mxu0  ;;  %v6187_v11 = vor.u32 %v6967_v57, %v6186_v56  ;;  %v6995_v57 = vld [vmem:[#allocation5 + $0xf14] sm:$0xf0] }
  0xff   :  { %3602 = vmatpush.bf16.msra.mxu1 %v5971_v33  ;;  %v6331_v33 = vor.u32 %v7003_v21, %v6330_v17  ;;  %v6395_v42 = vor.u32 %v7019_v28, %v6394_v12  ;;  %v3396_v52 = vpop.f32.mrf.mxu1  ;;  %v6965_v17 = vld [vmem:[#allocation5 + $0xe24] sm:$0xf0]  ;;  %v6242_v21 = vld [vmem:[#allocation5 + $0xea0] sm:$0xf]  ;;  %v6379_v12 = vor.u32 %v7015_v10, %v6378_v7  ;;  %v6298_v56 = vld [vmem:[#allocation5 + $0xf10] sm:$0xf] }
 0x100   :  { %3615 = vmatpush.bf16.msra.mxu2 %v6035_v35  ;;  %v6194_v35 = vld [vmem:[#allocation5 + $0xe40] sm:$0xf]  ;;  %v6299_v7 = vor.u32 %v6995_v57, %v6298_v56 }
 0x101   :  { %3628 = vmatpush.bf16.msra.mxu3 %v6099_v44  ;;  %3590 = vmatmul.bf16.vlgmr.msra.gmra.mxu0 %v7415_v55  ;;  %v6985_v44 = vld [vmem:[#allocation5 + $0xec4] sm:$0xf0]  ;;  %v6195_v51 = vor.u32 %v6969_v39, %v6194_v35  ;;  %v6226_v10 = vld [vmem:[#allocation5 + $0xe80] sm:$0xf] }
 0x102   :  { %3634 = vmatpush.bf16.msrb.mxu0 %v6219_v45  ;;  %3603 = vmatmul.bf16.vlgmr.msra.gmra.mxu1 %v7419_v60  ;;  %v6322_v45 = vld [vmem:[#allocation5 + $0xf40] sm:$0xf]  ;;  %v6259_v53 = vor.u32 %v6985_v44, %v6258_v41 }
 0x103   :  { %3647 = vmatpush.bf16.msrb.mxu1 %v6283_v49  ;;  %3616 = vmatmul.bf16.vlgmr.msra.gmra.mxu2 %v7417_v59  ;;  %v7017_v49 = vld [vmem:[#allocation5 + $0xfc4] sm:$0xf0]  ;;  %v6370_v41 = vld [vmem:[#allocation5 + $0xfa0] sm:$0xf] }
 0x104   :  { %3660 = vmatpush.bf16.msrb.mxu2 %v6347_v50  ;;  %3629 = vmatmul.bf16.vlgmr.msra.gmra.mxu3 %v7421_v0  ;;  %v3384_v50 = vadd.f32 %v3383_v47, %v7413_v43  ;;  %v6387_v62 = vor.u32 %v7017_v49, %v6386_v48 }
 0x105   :  { %3673 = vmatpush.bf16.msrb.mxu3 %v6411_v54  ;;  %v6323_v54 = vor.u32 %v7001_v46, %v6322_v45  ;;  %v6179_v45 = vor.u32 %v6965_v17, %v6178_v16  ;;  %v6993_v16 = vld [vmem:[#allocation5 + $0xf04] sm:$0xf0]  ;;  %v6354_v17 = vld [vmem:[#allocation5 + $0xf80] sm:$0xf] }
 0x106   :  { %3635 = vmatpush.bf16.msrb.mxu0 %v6211_v3  ;;  %v3397_v63 = vadd.f32 %v3396_v52, %v3384_v50  ;;  %v6983_v3 = vld [vmem:[#allocation5 + $0xeb4] sm:$0xf0]  ;;  %v3409_v28 = vpop.f32.mrf.mxu2  ;;  %v3385_v44 = vpop.f32.mrf.mxu0  ;;  %v6170_v50 = vld [vmem:[#allocation5 + $0xe10] sm:$0xf] }
 0x107   :  { %3648 = vmatpush.bf16.msrb.mxu1 %v6275_v4  ;;  %v6314_v4 = vld [vmem:[#allocation5 + $0xf30] sm:$0xf]  ;;  %v6251_v43 = vor.u32 %v6983_v3, %v6250_v58  ;;  %v3422_v39 = vpop.f32.mrf.mxu3  ;;  %v3398_v46 = vpop.f32.mrf.mxu1  ;;  %v6162_v3 = vld [vmem:[#allocation5 + $0xe00] sm:$0xf] }
 0x108   :  { %3661 = vmatpush.bf16.msrb.mxu2 %v6339_v6  ;;  %v6999_v6 = vld [vmem:[#allocation5 + $0xf34] sm:$0xf0]  ;;  %v3410_v35 = vadd.f32 %v3409_v28, %v3397_v63  ;;  %v6234_v52 = vld [vmem:[#allocation5 + $0xe90] sm:$0xf]  ;;  %v6526_v28 = vld [vmem:[#allocation5 + $0x74] sm:$0xf] }
 0x109   :  { %3674 = vmatpush.bf16.msrb.mxu3 %v6403_v14  ;;  %v6315_v14 = vor.u32 %v6999_v6, %v6314_v4  ;;  %v6362_v58 = vld [vmem:[#allocation5 + $0xf90] sm:$0xf]  ;;  %v6961_v4 = vld [vmem:[#allocation5 + $0xe04] sm:$0xf0]  ;;  %v6574_v46 = vld [vmem:[#allocation5 + $0x1f4] sm:$0xf] }
 0x10a   :  { %3636 = vmatpush.bf16.msrb.mxu0 %v6203_v29  ;;  %v6981_v29 = vld [vmem:[#allocation5 + $0xea4] sm:$0xf0]  ;;  %v7428_v47 = vadd.f32 %v3422_v39, %v3410_v35  ;;  %v6163_v35 = vor.u32 %v6961_v4, %v6162_v3  ;;  %v4492_v39 = vld [vmem:[#allocation5 + $0xf8] sm:$0xf0] }
 0x10b   :  { %3649 = vmatpush.bf16.msrb.mxu1 %v6267_v30  ;;  %v6306_v30 = vld [vmem:[#allocation5 + $0xf20] sm:$0xf]  ;;  %v6243_v48 = vor.u32 %v6981_v29, %v6242_v21  ;;  %v7009_v21 = vld [vmem:[#allocation5 + $0xf84] sm:$0xf0]  ;;  %v4428_v29 = vld [vmem:[#allocation5 + $0x78] sm:$0xf0] }
 0x10c   :  { %3662 = vmatpush.bf16.msrb.mxu2 %v6331_v33  ;;  %v6997_v33 = vld [vmem:[#allocation5 + $0xf24] sm:$0xf0] }
 0x10d   :  { %3675 = vmatpush.bf16.msrb.mxu3 %v6395_v42  ;;  %v7013_v42 = vld [vmem:[#allocation5 + $0xfa4] sm:$0xf0]  ;;  %v6307_v49 = vor.u32 %v6997_v33, %v6306_v30  ;;  %v6542_v30 = vld [vmem:[#allocation5 + $0xf4] sm:$0xf] }
 0x10e   :  { %3637 = vmatpush.bf16.msrb.mxu0 %v6195_v51  ;;  %v6963_v51 = vld [vmem:[#allocation5 + $0xe14] sm:$0xf0]  ;;  %v4495_v56 = vor.u32 %v6542_v30, %v4492_v39  ;;  %v4412_v30 = vld [vmem:[#allocation5 + $0x58] sm:$0xf0] }
 0x10f   :  { %3650 = vmatpush.bf16.msrb.mxu1 %v6259_v53  ;;  %v6371_v53 = vor.u32 %v7013_v42, %v6370_v41  ;;  %v6171_v63 = vor.u32 %v6963_v51, %v6170_v50  ;;  %v3424_v33 = vpop.f32.mrf.mxu3  ;;  %v6558_v41 = vld [vmem:[#allocation5 + $0x174] sm:$0xf]  ;;  %v4556_v42 = vld [vmem:[#allocation5 + $0x178] sm:$0xf0]  ;;  %v6355_v50 = vor.u32 %v7009_v21, %v6354_v17  ;;  %v4431_v51 = vor.u32 %v6526_v28, %v4428_v29 }
 0x110   :  { %3663 = vmatpush.bf16.msrb.mxu2 %v6323_v54  ;;  %v6979_v54 = vld [vmem:[#allocation5 + $0xe94] sm:$0xf0]  ;;  %v4559_v57 = vor.u32 %v6558_v41, %v4556_v42  ;;  %v6522_v29 = vld [vmem:[#allocation5 + $0x54] sm:$0xf]  ;;  %v4476_v39 = vld [vmem:[#allocation5 + $0xd8] sm:$0xf0] }
 0x111   :  { %3676 = vmatpush.bf16.msrb.mxu3 %v6387_v62  ;;  %v7011_v62 = vld [vmem:[#allocation5 + $0xf94] sm:$0xf0]  ;;  %v6235_v6 = vor.u32 %v6979_v54, %v6234_v52  ;;  %v158_v52 = vld [vmem:[#allocation2 + $0xf0] sm:$0xff]  ;;  %v4540_v42 = vld [vmem:[#allocation5 + $0x158] sm:$0xf0] }
 0x112   :  { %3638 = vmatpush.bf16.msrb.mxu0 %v6187_v11  ;;  %v6977_v11 = vld [vmem:[#allocation5 + $0xe84] sm:$0xf0]  ;;  %v159_v54 = vld [vmem:[#allocation2 + $0xf8] sm:$0xff]  ;;  %v6538_v33 = vld [vmem:[#allocation5 + $0xd4] sm:$0xf] }
 0x113   :  { %3651 = vmatpush.bf16.msrb.mxu1 %v6251_v43  ;;  %v6290_v43 = vld [vmem:[#allocation5 + $0xf00] sm:$0xf]  ;;  %v6227_v44 = vor.u32 %v6977_v11, %v6226_v10  ;;  %v4548_v10 = vld [vmem:[#allocation5 + $0x168] sm:$0xf0]  ;;  %v7432_v11 = vpack.c.bf16 %v158_v52, %v158_v52  ;;  %v7436_v17 = vpack.c.bf16 %v159_v54, %v159_v54  ;;  %v6554_v41 = vld [vmem:[#allocation5 + $0x154] sm:$0xf] }
 0x114   :  { %3664 = vmatpush.bf16.msrb.mxu2 %v6315_v14  ;;  %v6363_v14 = vor.u32 %v7011_v62, %v6362_v58  ;;  %v6524_v58 = vld [vmem:[#allocation5 + $0x64] sm:$0xf]  ;;  %v4420_v62 = vld [vmem:[#allocation5 + $0x68] sm:$0xf0] }
 0x115   :  { %3677 = vmatpush.bf16.msrb.mxu3 %v6379_v12  ;;  %v3411_v12 = vpop.f32.mrf.mxu2  ;;  %v4423_v21 = vor.u32 %v6524_v58, %v4420_v62  ;;  %v6536_v52 = vld [vmem:[#allocation5 + $0xc4] sm:$0xf]  ;;  %v4468_v54 = vld [vmem:[#allocation5 + $0xc8] sm:$0xf0] }
 0x116   :  { %3639 = vmatpush.bf16.msrb.mxu0 %v6179_v45  ;;  %v6291_v45 = vor.u32 %v6993_v16, %v6290_v43  ;;  %v4612_v16 = vld [vmem:[#allocation5 + $0x1e8] sm:$0xf0]  ;;  %v6568_v62 = vld [vmem:[#allocation5 + $0x1c4] sm:$0xf] }
 0x117   :  { %3652 = vmatpush.bf16.msrb.mxu1 %v6243_v48  ;;  %v4620_v48 = vld [vmem:[#allocation5 + $0x1f8] sm:$0xf0] }
 0x118   :  { %3665 = vmatpush.bf16.msrb.mxu2 %v6307_v49  ;;  %v156_v49 = vld [vmem:[#allocation2 + $0xe0] sm:$0xff]  ;;  %v4623_v3 = vor.u32 %v6574_v46, %v4620_v48  ;;  %v4415_v46 = vor.u32 %v6522_v29, %v4412_v30  ;;  %v4479_v48 = vor.u32 %v6538_v33, %v4476_v39  ;;  %v4460_v30 = vld [vmem:[#allocation5 + $0xb8] sm:$0xf0]  ;;  %v6550_v33 = vld [vmem:[#allocation5 + $0x134] sm:$0xf] }
 0x119   :  { %3678 = vmatpush.bf16.msrb.mxu3 %v6371_v53  ;;  %v157_v53 = vld [vmem:[#allocation2 + $0xe8] sm:$0xff]  ;;  %v7430_v4 = vpack.c.bf16 %v156_v49, %v156_v49  ;;  %v4543_v49 = vor.u32 %v6554_v41, %v4540_v42  ;;  %v6566_v39 = vld [vmem:[#allocation5 + $0x1b4] sm:$0xf]  ;;  %v4588_v41 = vld [vmem:[#allocation5 + $0x1b8] sm:$0xf0] }
 0x11a   :  { %3640 = vmatpush.bf16.msrb.mxu0 %v6171_v63  ;;  %v6540_v63 = vld [vmem:[#allocation5 + $0xe4] sm:$0xf]  ;;  %v7434_v43 = vpack.c.bf16 %v157_v53, %v157_v53 }
 0x11b   :  { %3653 = vmatpush.bf16.msrb.mxu1 %v6235_v6  ;;  %v4484_v6 = vld [vmem:[#allocation5 + $0xe8] sm:$0xf0] }
 0x11c   :  { %3666 = vmatpush.bf16.msrb.mxu2 %v6299_v7  ;;  %v6556_v7 = vld [vmem:[#allocation5 + $0x164] sm:$0xf]  ;;  %v4487_v12 = vor.u32 %v6540_v63, %v4484_v6  ;;  %v4596_v63 = vld [vmem:[#allocation5 + $0x1c8] sm:$0xf0] }
 0x11d   :  { %3679 = vmatpush.bf16.msrb.mxu3 %v6363_v14  ;;  %v6572_v14 = vld [vmem:[#allocation5 + $0x1e4] sm:$0xf]  ;;  %v4551_v28 = vor.u32 %v6556_v7, %v4548_v10  ;;  %v4471_v10 = vor.u32 %v6536_v52, %v4468_v54 }
 0x11e   :  { %3641 = vmatpush.bf16.msrb.mxu0 %v6163_v35  ;;  %v4615_v35 = vor.u32 %v6572_v14, %v4612_v16  ;;  %v3435_v58 = vpop.f32.mrf.mxu0  ;;  %v6518_v16 = vld [vmem:[#allocation5 + $0x34] sm:$0xf]  ;;  %v6548_v52 = vld [vmem:[#allocation5 + $0x124] sm:$0xf] }
 0x11f   :  { %3654 = vmatpush.bf16.msrb.mxu1 %v6227_v44  ;;  %v6570_v44 = vld [vmem:[#allocation5 + $0x1d4] sm:$0xf]  ;;  %v3448_v7 = vpop.f32.mrf.mxu1 }
 0x120   :  { %3667 = vmatpush.bf16.msrb.mxu2 %v6291_v45  ;;  %v4604_v45 = vld [vmem:[#allocation5 + $0x1d8] sm:$0xf0] }
 0x121   :  { %3680 = vmatpush.bf16.msrb.mxu3 %v6355_v50  ;;  %3642 = vmatmul.bf16.vlgmr.msrb.gmra.mxu0 %v7430_v4  ;;  %v6520_v50 = vld [vmem:[#allocation5 + $0x44] sm:$0xf]  ;;  %v4607_v53 = vor.u32 %v6570_v44, %v4604_v45 }
 0x122   :  { %3686 = vmatpush.bf16.msra.mxu0 %v4431_v51  ;;  %3655 = vmatmul.bf16.vlgmr.msrb.gmra.mxu1 %v7434_v43  ;;  %v4404_v51 = vld [vmem:[#allocation5 + $0x48] sm:$0xf0]  ;;  %v6516_v45 = vld [vmem:[#allocation5 + $0x24] sm:$0xf] }
 0x123   :  { %3699 = vmatpush.bf16.msra.mxu1 %v4495_v56  ;;  %3668 = vmatmul.bf16.vlgmr.msrb.gmra.mxu2 %v7432_v11  ;;  %v6552_v56 = vld [vmem:[#allocation5 + $0x144] sm:$0xf]  ;;  %v4407_v6 = vor.u32 %v6520_v50, %v4404_v51  ;;  %v4452_v51 = vld [vmem:[#allocation5 + $0xa8] sm:$0xf0] }
 0x124   :  { %3712 = vmatpush.bf16.msra.mxu2 %v4559_v57  ;;  %3681 = vmatmul.bf16.vlgmr.msrb.gmra.mxu3 %v7436_v17  ;;  %v4532_v57 = vld [vmem:[#allocation5 + $0x148] sm:$0xf0] }
 0x125   :  { %3725 = vmatpush.bf16.msra.mxu3 %v4623_v3  ;;  %v3436_v3 = vadd.f32 %v3435_v58, %v7428_v47  ;;  %v4535_v14 = vor.u32 %v6552_v56, %v4532_v57  ;;  %v6564_v57 = vld [vmem:[#allocation5 + $0x1a4] sm:$0xf]  ;;  %v4580_v58 = vld [vmem:[#allocation5 + $0x1a8] sm:$0xf0] }
 0x126   :  { %3687 = vmatpush.bf16.msra.mxu0 %v4423_v21  ;;  %v4396_v21 = vld [vmem:[#allocation5 + $0x38] sm:$0xf0]  ;;  %v3461_v50 = vpop.f32.mrf.mxu2 }
 0x127   :  { %3700 = vmatpush.bf16.msra.mxu1 %v4487_v12  ;;  %v6534_v12 = vld [vmem:[#allocation5 + $0xb4] sm:$0xf]  ;;  %v3449_v29 = vadd.f32 %v3448_v7, %v3436_v3  ;;  %v4399_v42 = vor.u32 %v6518_v16, %v4396_v21  ;;  %v3474_v56 = vpop.f32.mrf.mxu3  ;;  %v3450_v3 = vpop.f32.mrf.mxu1  ;;  %v4380_v16 = vld [vmem:[#allocation5 + $0x18] sm:$0xf0] }
 0x128   :  { %3713 = vmatpush.bf16.msra.mxu2 %v4551_v28  ;;  %v4599_v28 = vor.u32 %v6568_v62, %v4596_v63  ;;  %v4463_v47 = vor.u32 %v6534_v12, %v4460_v30  ;;  %v3437_v62 = vpop.f32.mrf.mxu0  ;;  %v6530_v21 = vld [vmem:[#allocation5 + $0x94] sm:$0xf]  ;;  %v4583_v12 = vor.u32 %v6564_v57, %v4580_v58  ;;  %v4508_v30 = vld [vmem:[#allocation5 + $0x118] sm:$0xf0] }
 0x129   :  { %3726 = vmatpush.bf16.msra.mxu3 %v4615_v35  ;;  %v4524_v35 = vld [vmem:[#allocation5 + $0x138] sm:$0xf0]  ;;  %v3462_v54 = vadd.f32 %v3461_v50, %v3449_v29  ;;  %v6546_v29 = vld [vmem:[#allocation5 + $0x114] sm:$0xf] }
 0x12a   :  { %3688 = vmatpush.bf16.msra.mxu0 %v4415_v46  ;;  %v4527_v44 = vor.u32 %v6550_v33, %v4524_v35  ;;  %v4388_v46 = vld [vmem:[#allocation5 + $0x28] sm:$0xf0]  ;;  %v6562_v33 = vld [vmem:[#allocation5 + $0x194] sm:$0xf]  ;;  %v4572_v35 = vld [vmem:[#allocation5 + $0x198] sm:$0xf0] }
 0x12b   :  { %3701 = vmatpush.bf16.msra.mxu1 %v4479_v48  ;;  %v6532_v48 = vld [vmem:[#allocation5 + $0xa4] sm:$0xf]  ;;  %v4391_v63 = vor.u32 %v6516_v45, %v4388_v46  ;;  %v4436_v46 = vld [vmem:[#allocation5 + $0x88] sm:$0xf0]  ;;  %v4575_v50 = vor.u32 %v6562_v33, %v4572_v35  ;;  %v6606_v57 = vld [vmem:[#allocation5 + $0x2f4] sm:$0xf] }
 0x12c   :  { %3714 = vmatpush.bf16.msra.mxu2 %v4543_v49  ;;  %v4591_v49 = vor.u32 %v6566_v39, %v4588_v41  ;;  %v4455_v7 = vor.u32 %v6532_v48, %v4452_v51  ;;  %v6512_v41 = vld [vmem:[#allocation5 + $0x4] sm:$0xf]  ;;  %v6622_v3 = vld [vmem:[#allocation5 + $0x374] sm:$0xf]  ;;  %v4676_v35 = vld [vmem:[#allocation5 + $0x268] sm:$0xf0] }
 0x12d   :  { %3727 = vmatpush.bf16.msra.mxu3 %v4607_v53  ;;  %v4516_v53 = vld [vmem:[#allocation5 + $0x128] sm:$0xf0]  ;;  %v6528_v45 = vld [vmem:[#allocation5 + $0x84] sm:$0xf] }
 0x12e   :  { %3689 = vmatpush.bf16.msra.mxu0 %v4407_v6  ;;  %v7443_v6 = vadd.f32 %v3474_v56, %v3462_v54  ;;  %v6544_v48 = vld [vmem:[#allocation5 + $0x104] sm:$0xf]  ;;  %v6590_v54 = vld [vmem:[#allocation5 + $0x274] sm:$0xf]  ;;  %v4684_v56 = vld [vmem:[#allocation5 + $0x278] sm:$0xf0] }
 0x12f   :  { %3702 = vmatpush.bf16.msra.mxu1 %v4471_v10  ;;  %v4519_v10 = vor.u32 %v6548_v52, %v4516_v53  ;;  %v6560_v51 = vld [vmem:[#allocation5 + $0x184] sm:$0xf]  ;;  %v4564_v52 = vld [vmem:[#allocation5 + $0x188] sm:$0xf0]  ;;  %v3463_v53 = vpop.f32.mrf.mxu2  ;;  %v3476_v58 = vpop.f32.mrf.mxu3 }
 0x130   :  { %3715 = vmatpush.bf16.msra.mxu2 %v4535_v14  ;;  %v6514_v14 = vld [vmem:[#allocation5 + $0x14] sm:$0xf]  ;;  %v6588_v33 = vld [vmem:[#allocation5 + $0x264] sm:$0xf]  ;;  %v4804_v58 = vld [vmem:[#allocation5 + $0x368] sm:$0xf0] }
 0x131   :  { %3728 = vmatpush.bf16.msra.mxu3 %v4599_v28  ;;  %v4444_v28 = vld [vmem:[#allocation5 + $0x98] sm:$0xf0]  ;;  %v4383_v39 = vor.u32 %v6514_v14, %v4380_v16  ;;  %v6638_v16 = vld [vmem:[#allocation5 + $0x3f4] sm:$0xf]  ;;  %v6604_v53 = vld [vmem:[#allocation5 + $0x2e4] sm:$0xf] }
 0x132   :  { %3690 = vmatpush.bf16.msra.mxu0 %v4399_v42  ;;  %v4372_v42 = vld [vmem:[#allocation5 + $0x8] sm:$0xf0] }
 0x133   :  { %3703 = vmatpush.bf16.msra.mxu1 %v4463_v47  ;;  %v4447_v47 = vor.u32 %v6530_v21, %v4444_v28  ;;  %v4375_v62 = vor.u32 %v6512_v41, %v4372_v42  ;;  %v4876_v21 = vld [vmem:[#allocation5 + $0x3f8] sm:$0xf0]  ;;  %v4687_v28 = vor.u32 %v6590_v54, %v4684_v56  ;;  %v4740_v41 = vld [vmem:[#allocation5 + $0x2e8] sm:$0xf0]  ;;  %v6620_v42 = vld [vmem:[#allocation5 + $0x364] sm:$0xf] }
 0x134   :  { %3716 = vmatpush.bf16.msra.mxu2 %v4527_v44  ;;  %v4511_v44 = vor.u32 %v6546_v29, %v4508_v30  ;;  %v4732_v54 = vld [vmem:[#allocation5 + $0x2d8] sm:$0xf0]  ;;  %v6618_v56 = vld [vmem:[#allocation5 + $0x354] sm:$0xf] }
 0x135   :  { %3729 = vmatpush.bf16.msra.mxu3 %v4591_v49  ;;  %v4500_v49 = vld [vmem:[#allocation5 + $0x108] sm:$0xf0] }
 0x136   :  { %3691 = vmatpush.bf16.msra.mxu0 %v4391_v63  ;;  %v4748_v63 = vld [vmem:[#allocation5 + $0x2f8] sm:$0xf0]  ;;  %v4503_v14 = vor.u32 %v6544_v48, %v4500_v49  ;;  %v4807_v48 = vor.u32 %v6620_v42, %v4804_v58  ;;  %v6598_v58 = vld [vmem:[#allocation5 + $0x2b4] sm:$0xf] }
 0x137   :  { %3704 = vmatpush.bf16.msra.mxu1 %v4455_v7  ;;  %v4812_v7 = vld [vmem:[#allocation5 + $0x378] sm:$0xf0]  ;;  %v4751_v29 = vor.u32 %v6606_v57, %v4748_v63 }
 0x138   :  { %3717 = vmatpush.bf16.msra.mxu2 %v4519_v10  ;;  %v4439_v10 = vor.u32 %v6528_v45, %v4436_v46  ;;  %v4815_v30 = vor.u32 %v6622_v3, %v4812_v7  ;;  %v4679_v45 = vor.u32 %v6588_v33, %v4676_v35  ;;  %v4743_v46 = vor.u32 %v6604_v53, %v4740_v41  ;;  %v4668_v49 = vld [vmem:[#allocation5 + $0x258] sm:$0xf0]  ;;  %v4852_v33 = vld [vmem:[#allocation5 + $0x3c8] sm:$0xf0]  ;;  %v6582_v41 = vld [vmem:[#allocation5 + $0x234] sm:$0xf] }
 0x139   :  { %3730 = vmatpush.bf16.msra.mxu3 %v4583_v12  ;;  %v4567_v12 = vor.u32 %v6560_v51, %v4564_v52  ;;  %v6602_v51 = vld [vmem:[#allocation5 + $0x2d4] sm:$0xf]  ;;  %v4796_v57 = vld [vmem:[#allocation5 + $0x358] sm:$0xf0] }
 0x13a   :  { %3692 = vmatpush.bf16.msra.mxu0 %v4383_v39  ;;  %v4879_v39 = vor.u32 %v6638_v16, %v4876_v21  ;;  %v4860_v63 = vld [vmem:[#allocation5 + $0x3d8] sm:$0xf0]  ;;  %v4735_v7 = vor.u32 %v6602_v51, %v4732_v54  ;;  %v4660_v16 = vld [vmem:[#allocation5 + $0x248] sm:$0xf0]  ;;  %v6600_v21 = vld [vmem:[#allocation5 + $0x2c4] sm:$0xf] }
 0x13b   :  { %3705 = vmatpush.bf16.msra.mxu1 %v4447_v47  ;;  %v6636_v47 = vld [vmem:[#allocation5 + $0x3e4] sm:$0xf]  ;;  %v4652_v42 = vld [vmem:[#allocation5 + $0x238] sm:$0xf0] }
 0x13c   :  { %3718 = vmatpush.bf16.msra.mxu2 %v4511_v44  ;;  %v4868_v44 = vld [vmem:[#allocation5 + $0x3e8] sm:$0xf0]  ;;  %v4655_v51 = vor.u32 %v6582_v41, %v4652_v42  ;;  %v6580_v54 = vld [vmem:[#allocation5 + $0x224] sm:$0xf]  ;;  %v6610_v41 = vld [vmem:[#allocation5 + $0x314] sm:$0xf] }
 0x13d   :  { %3731 = vmatpush.bf16.msra.mxu3 %v4575_v50  ;;  %v6586_v50 = vld [vmem:[#allocation5 + $0x254] sm:$0xf]  ;;  %v4871_v52 = vor.u32 %v6636_v47, %v4868_v44  ;;  %v4764_v42 = vld [vmem:[#allocation5 + $0x318] sm:$0xf0] }
 0x13e   :  { %3693 = vmatpush.bf16.msra.mxu0 %v4375_v62  ;;  %v6634_v62 = vld [vmem:[#allocation5 + $0x3d4] sm:$0xf]  ;;  %v4671_v3 = vor.u32 %v6586_v50, %v4668_v49  ;;  %v4844_v49 = vld [vmem:[#allocation5 + $0x3b8] sm:$0xf0] }
 0x13f   :  { %3706 = vmatpush.bf16.msra.mxu1 %v4439_v10  ;;  %v4799_v10 = vor.u32 %v6618_v56, %v4796_v57  ;;  %v6630_v50 = vld [vmem:[#allocation5 + $0x3b4] sm:$0xf]  ;;  %v4644_v56 = vld [vmem:[#allocation5 + $0x228] sm:$0xf0]  ;;  %v6596_v57 = vld [vmem:[#allocation5 + $0x2a4] sm:$0xf] }
 0x140   :  { %3719 = vmatpush.bf16.msra.mxu2 %v4503_v14  ;;  %v6584_v14 = vld [vmem:[#allocation5 + $0x244] sm:$0xf] }
 0x141   :  { %3732 = vmatpush.bf16.msra.mxu3 %v4567_v12  ;;  %3694 = vmatmul.bf16.vlgmr.msra.gmra.mxu0 %v7340_v9  ;;  %v4863_v12 = vor.u32 %v6634_v62, %v4860_v63  ;;  %v6632_v9 = vld [vmem:[#allocation5 + $0x3c4] sm:$0xf]  ;;  %v4663_v35 = vor.u32 %v6584_v14, %v4660_v16  ;;  %v4847_v62 = vor.u32 %v6630_v50, %v4844_v49 }
 0x142   :  { %3738 = vmatpush.bf16.msrb.mxu0 %v4687_v28  ;;  %3707 = vmatmul.bf16.vlgmr.msra.gmra.mxu1 %v7347_v25  ;;  %v6616_v28 = vld [vmem:[#allocation5 + $0x344] sm:$0xf]  ;;  %v3500_v25 = vpop.f32.mrf.mxu1  ;;  %v4855_v47 = vor.u32 %v6632_v9, %v4852_v33  ;;  %v4767_v50 = vor.u32 %v6610_v41, %v4764_v42 }
 0x143   :  { %3751 = vmatpush.bf16.msrb.mxu1 %v4751_v29  ;;  %3720 = vmatmul.bf16.vlgmr.msra.gmra.mxu2 %v7338_v8  ;;  %v4724_v8 = vld [vmem:[#allocation5 + $0x2c8] sm:$0xf0]  ;;  %v6592_v49 = vld [vmem:[#allocation5 + $0x284] sm:$0xf] }
 0x144   :  { %3764 = vmatpush.bf16.msrb.mxu2 %v4815_v30  ;;  %3733 = vmatmul.bf16.vlgmr.msra.gmra.mxu3 %v7342_v15  ;;  %v4788_v29 = vld [vmem:[#allocation5 + $0x348] sm:$0xf0]  ;;  %v3487_v30 = vpop.f32.mrf.mxu0  ;;  %v4727_v53 = vor.u32 %v6600_v21, %v4724_v8  ;;  %v6628_v21 = vld [vmem:[#allocation5 + $0x3a4] sm:$0xf] }
 0x145   :  { %3777 = vmatpush.bf16.msrb.mxu3 %v4879_v39  ;;  %v3488_v15 = vadd.f32 %v3487_v30, %v7443_v6  ;;  %v4791_v39 = vor.u32 %v6616_v28, %v4788_v29  ;;  %v4647_v28 = vor.u32 %v6580_v54, %v4644_v56  ;;  %v4756_v54 = vld [vmem:[#allocation5 + $0x308] sm:$0xf0]  ;;  %v6624_v56 = vld [vmem:[#allocation5 + $0x384] sm:$0xf] }
 0x146   :  { %3739 = vmatpush.bf16.msrb.mxu0 %v4679_v45  ;;  %v4716_v45 = vld [vmem:[#allocation5 + $0x2b8] sm:$0xf0]  ;;  %v3513_v63 = vpop.f32.mrf.mxu2  ;;  %v6668_v41 = vld [vmem:[#allocation5 + $0x4e4] sm:$0xf] }
 0x147   :  { %3752 = vmatpush.bf16.msrb.mxu1 %v4743_v46  ;;  %v3501_v44 = vadd.f32 %v3500_v25, %v3488_v15  ;;  %v6614_v46 = vld [vmem:[#allocation5 + $0x334] sm:$0xf]  ;;  %v4719_v6 = vor.u32 %v6598_v58, %v4716_v45  ;;  %v3526_v16 = vpop.f32.mrf.mxu3  ;;  %v6576_v45 = vld [vmem:[#allocation5 + $0x204] sm:$0xf] }
 0x148   :  { %3765 = vmatpush.bf16.msrb.mxu2 %v4807_v48  ;;  %v4780_v48 = vld [vmem:[#allocation5 + $0x338] sm:$0xf0]  ;;  %v6578_v15 = vld [vmem:[#allocation5 + $0x214] sm:$0xf] }
 0x149   :  { %3778 = vmatpush.bf16.msrb.mxu3 %v4871_v52  ;;  %v4783_v52 = vor.u32 %v6614_v46, %v4780_v48  ;;  %v3514_v14 = vadd.f32 %v3513_v63, %v3501_v44  ;;  %v6594_v25 = vld [vmem:[#allocation5 + $0x294] sm:$0xf]  ;;  %v4628_v46 = vld [vmem:[#allocation5 + $0x208] sm:$0xf0] }
 0x14a   :  { %3740 = vmatpush.bf16.msrb.mxu0 %v4671_v3  ;;  %v4708_v3 = vld [vmem:[#allocation5 + $0x2a8] sm:$0xf0]  ;;  %v3502_v29 = vpop.f32.mrf.mxu1  ;;  %v6626_v58 = vld [vmem:[#allocation5 + $0x394] sm:$0xf] }
 0x14b   :  { %3753 = vmatpush.bf16.msrb.mxu1 %v4735_v7  ;;  %v6612_v7 = vld [vmem:[#allocation5 + $0x324] sm:$0xf]  ;;  %v7450_v30 = vadd.f32 %v3526_v16, %v3514_v14  ;;  %v4711_v9 = vor.u32 %v6596_v57, %v4708_v3  ;;  %v4820_v57 = vld [vmem:[#allocation5 + $0x388] sm:$0xf0]  ;;  %v6654_v63 = vld [vmem:[#allocation5 + $0x474] sm:$0xf]  ;;  %v4631_v14 = vor.u32 %v6576_v45, %v4628_v46 }
 0x14c   :  { %3766 = vmatpush.bf16.msrb.mxu2 %v4799_v10  ;;  %v4772_v10 = vld [vmem:[#allocation5 + $0x328] sm:$0xf0]  ;;  %v3489_v8 = vpop.f32.mrf.mxu0  ;;  %v4940_v3 = vld [vmem:[#allocation5 + $0x478] sm:$0xf0]  ;;  %v6702_v29 = vld [vmem:[#allocation5 + $0x5f4] sm:$0xf] }
 0x14d   :  { %3779 = vmatpush.bf16.msrb.mxu3 %v4863_v12  ;;  %v4836_v12 = vld [vmem:[#allocation5 + $0x3a8] sm:$0xf0]  ;;  %v4775_v33 = vor.u32 %v6612_v7, %v4772_v10  ;;  %v6670_v7 = vld [vmem:[#allocation5 + $0x4f4] sm:$0xf]  ;;  %v5004_v16 = vld [vmem:[#allocation5 + $0x4f8] sm:$0xf0] }
 0x14e   :  { %3741 = vmatpush.bf16.msrb.mxu0 %v4663_v35  ;;  %v4636_v35 = vld [vmem:[#allocation5 + $0x218] sm:$0xf0]  ;;  %v6700_v45 = vld [vmem:[#allocation5 + $0x5e4] sm:$0xf]  ;;  %v5124_v46 = vld [vmem:[#allocation5 + $0x5e8] sm:$0xf0] }
 0x14f   :  { %3754 = vmatpush.bf16.msrb.mxu1 %v4727_v53  ;;  %v4839_v53 = vor.u32 %v6628_v21, %v4836_v12  ;;  %v4639_v44 = vor.u32 %v6578_v15, %v4636_v35  ;;  %v3528_v10 = vpop.f32.mrf.mxu3  ;;  %v6686_v21 = vld [vmem:[#allocation5 + $0x574] sm:$0xf]  ;;  %v5068_v12 = vld [vmem:[#allocation5 + $0x578] sm:$0xf0]  ;;  %v4943_v15 = vor.u32 %v6654_v63, %v4940_v3  ;;  %v5007_v35 = vor.u32 %v6670_v7, %v5004_v16  ;;  %v6648_v16 = vld [vmem:[#allocation5 + $0x444] sm:$0xf] }
 0x150   :  { %3767 = vmatpush.bf16.msrb.mxu2 %v4791_v39  ;;  %v4700_v39 = vld [vmem:[#allocation5 + $0x298] sm:$0xf0]  ;;  %v6698_v63 = vld [vmem:[#allocation5 + $0x5d4] sm:$0xf] }
 0x151   :  { %3780 = vmatpush.bf16.msrb.mxu3 %v4855_v47  ;;  %v4828_v47 = vld [vmem:[#allocation5 + $0x398] sm:$0xf0]  ;;  %v4703_v48 = vor.u32 %v6594_v25, %v4700_v39  ;;  %v5071_v25 = vor.u32 %v6686_v21, %v5068_v12  ;;  %v4932_v39 = vld [vmem:[#allocation5 + $0x468] sm:$0xf0] }
 0x152   :  { %3742 = vmatpush.bf16.msrb.mxu0 %v4655_v51  ;;  %v4692_v51 = vld [vmem:[#allocation5 + $0x288] sm:$0xf0]  ;;  %v5116_v3 = vld [vmem:[#allocation5 + $0x5d8] sm:$0xf0] }
 0x153   :  { %3755 = vmatpush.bf16.msrb.mxu1 %v4719_v6  ;;  %v6608_v6 = vld [vmem:[#allocation5 + $0x304] sm:$0xf]  ;;  %v4695_v8 = vor.u32 %v6592_v49, %v4692_v51  ;;  %v6650_v51 = vld [vmem:[#allocation5 + $0x454] sm:$0xf]  ;;  %v4916_v21 = vld [vmem:[#allocation5 + $0x448] sm:$0xf0]  ;;  %v5119_v12 = vor.u32 %v6698_v63, %v5116_v3 }
 0x154   :  { %3768 = vmatpush.bf16.msrb.mxu2 %v4783_v52  ;;  %v4831_v52 = vor.u32 %v6626_v58, %v4828_v47  ;;  %v4996_v58 = vld [vmem:[#allocation5 + $0x4e8] sm:$0xf0]  ;;  %v6684_v47 = vld [vmem:[#allocation5 + $0x564] sm:$0xf] }
 0x155   :  { %3781 = vmatpush.bf16.msrb.mxu3 %v4847_v62  ;;  %v3515_v62 = vpop.f32.mrf.mxu2  ;;  %v5028_v63 = vld [vmem:[#allocation5 + $0x528] sm:$0xf0] }
 0x156   :  { %3743 = vmatpush.bf16.msrb.mxu0 %v4647_v28  ;;  %v4759_v28 = vor.u32 %v6608_v6, %v4756_v54  ;;  %v4924_v6 = vld [vmem:[#allocation5 + $0x458] sm:$0xf0]  ;;  %v5127_v54 = vor.u32 %v6700_v45, %v5124_v46  ;;  %v6694_v46 = vld [vmem:[#allocation5 + $0x5b4] sm:$0xf] }
 0x157   :  { %3756 = vmatpush.bf16.msrb.mxu1 %v4711_v9  ;;  %v5132_v9 = vld [vmem:[#allocation5 + $0x5f8] sm:$0xf0]  ;;  %v4927_v7 = vor.u32 %v6650_v51, %v4924_v6  ;;  %v6644_v51 = vld [vmem:[#allocation5 + $0x424] sm:$0xf]  ;;  %v4900_v6 = vld [vmem:[#allocation5 + $0x428] sm:$0xf0] }
 0x158   :  { %3769 = vmatpush.bf16.msrb.mxu2 %v4775_v33  ;;  %v4823_v33 = vor.u32 %v6624_v56, %v4820_v57  ;;  %v5135_v42 = vor.u32 %v6702_v29, %v5132_v9  ;;  %v4988_v56 = vld [vmem:[#allocation5 + $0x4d8] sm:$0xf0]  ;;  %v6682_v57 = vld [vmem:[#allocation5 + $0x554] sm:$0xf]  ;;  %v5044_v29 = vld [vmem:[#allocation5 + $0x548] sm:$0xf0] }
 0x159   :  { %3782 = vmatpush.bf16.msrb.mxu3 %v4839_v53  ;;  %v6652_v53 = vld [vmem:[#allocation5 + $0x464] sm:$0xf]  ;;  %v5052_v62 = vld [vmem:[#allocation5 + $0x558] sm:$0xf0] }
 0x15a   :  { %3744 = vmatpush.bf16.msrb.mxu0 %v4639_v44  ;;  %v5060_v44 = vld [vmem:[#allocation5 + $0x568] sm:$0xf0]  ;;  %v5036_v45 = vld [vmem:[#allocation5 + $0x538] sm:$0xf0] }
 0x15b   :  { %3757 = vmatpush.bf16.msrb.mxu1 %v4703_v48  ;;  %v4935_v48 = vor.u32 %v6652_v53, %v4932_v39  ;;  %v5063_v49 = vor.u32 %v6684_v47, %v5060_v44  ;;  %v6646_v53 = vld [vmem:[#allocation5 + $0x434] sm:$0xf]  ;;  %v4908_v39 = vld [vmem:[#allocation5 + $0x438] sm:$0xf0] }
 0x15c   :  { %3770 = vmatpush.bf16.msrb.mxu2 %v4767_v50  ;;  %v4999_v50 = vor.u32 %v6668_v41, %v4996_v58  ;;  %v6662_v41 = vld [vmem:[#allocation5 + $0x4b4] sm:$0xf]  ;;  %v4972_v47 = vld [vmem:[#allocation5 + $0x4b8] sm:$0xf0] }
 0x15d   :  { %3783 = vmatpush.bf16.msrb.mxu3 %v4831_v52  ;;  %v6666_v52 = vld [vmem:[#allocation5 + $0x4d4] sm:$0xf] }
 0x15e   :  { %3745 = vmatpush.bf16.msrb.mxu0 %v4631_v14  ;;  %v4991_v10 = vor.u32 %v6666_v52, %v4988_v56  ;;  %v5055_v14 = vor.u32 %v6682_v57, %v5052_v62  ;;  %v3539_v9 = vpop.f32.mrf.mxu0  ;;  %v6678_v44 = vld [vmem:[#allocation5 + $0x534] sm:$0xf]  ;;  %v6660_v52 = vld [vmem:[#allocation5 + $0x4a4] sm:$0xf]  ;;  %v4964_v57 = vld [vmem:[#allocation5 + $0x4a8] sm:$0xf0] }
 0x15f   :  { %3758 = vmatpush.bf16.msrb.mxu1 %v4695_v8  ;;  %v4980_v8 = vld [vmem:[#allocation5 + $0x4c8] sm:$0xf0]  ;;  %v6676_v62 = vld [vmem:[#allocation5 + $0x524] sm:$0xf] }
 0x160   :  { %3771 = vmatpush.bf16.msrb.mxu2 %v4759_v28  ;;  %v6680_v28 = vld [vmem:[#allocation5 + $0x544] sm:$0xf] }
 0x161   :  { %3784 = vmatpush.bf16.msrb.mxu3 %v4823_v33  ;;  %3746 = vmatmul.bf16.vlgmr.msrb.gmra.mxu0 %v7352_v37  ;;  %v6696_v37 = vld [vmem:[#allocation5 + $0x5c4] sm:$0xf]  ;;  %v5108_v33 = vld [vmem:[#allocation5 + $0x5c8] sm:$0xf0] }
 0x162   :  { %3790 = vmatpush.bf16.msra.mxu0 %v4943_v15  ;;  %3759 = vmatmul.bf16.vlgmr.msrb.gmra.mxu1 %v7356_v40  ;;  %v4919_v15 = vor.u32 %v6648_v16, %v4916_v21  ;;  %v3552_v40 = vpop.f32.mrf.mxu1  ;;  %v4903_v21 = vor.u32 %v6644_v51, %v4900_v6  ;;  %v6718_v51 = vld [vmem:[#allocation5 + $0x674] sm:$0xf]  ;;  %v5196_v6 = vld [vmem:[#allocation5 + $0x678] sm:$0xf0] }
 0x163   :  { %3803 = vmatpush.bf16.msra.mxu1 %v5007_v35  ;;  %3772 = vmatmul.bf16.vlgmr.msrb.gmra.mxu2 %v7350_v34  ;;  %v6664_v34 = vld [vmem:[#allocation5 + $0x4c4] sm:$0xf] }
 0x164   :  { %3816 = vmatpush.bf16.msra.mxu2 %v5071_v25  ;;  %3785 = vmatmul.bf16.vlgmr.msrb.gmra.mxu3 %v7354_v38  ;;  %v3540_v38 = vadd.f32 %v3539_v9, %v7450_v30  ;;  %v4983_v35 = vor.u32 %v6664_v34, %v4980_v8  ;;  %v5047_v25 = vor.u32 %v6680_v28, %v5044_v29  ;;  %v6642_v29 = vld [vmem:[#allocation5 + $0x414] sm:$0xf]  ;;  %v4892_v9 = vld [vmem:[#allocation5 + $0x418] sm:$0xf0] }
 0x165   :  { %3829 = vmatpush.bf16.msra.mxu3 %v5135_v42  ;;  %v5111_v42 = vor.u32 %v6696_v37, %v5108_v33  ;;  %v4975_v30 = vor.u32 %v6662_v41, %v4972_v47  ;;  %v4967_v8 = vor.u32 %v6660_v52, %v4964_v57  ;;  %v5031_v28 = vor.u32 %v6676_v62, %v5028_v63  ;;  %v6658_v37 = vld [vmem:[#allocation5 + $0x494] sm:$0xf]  ;;  %v4884_v41 = vld [vmem:[#allocation5 + $0x408] sm:$0xf0]  ;;  %v6656_v47 = vld [vmem:[#allocation5 + $0x484] sm:$0xf] }
 0x166   :  { %3791 = vmatpush.bf16.msra.mxu0 %v4935_v48  ;;  %v3553_v58 = vadd.f32 %v3552_v40, %v3540_v38  ;;  %v5100_v48 = vld [vmem:[#allocation5 + $0x5b8] sm:$0xf0]  ;;  %v3565_v56 = vpop.f32.mrf.mxu2  ;;  %v3541_v16 = vpop.f32.mrf.mxu0  ;;  %v6734_v52 = vld [vmem:[#allocation5 + $0x6f4] sm:$0xf] }
 0x167   :  { %3804 = vmatpush.bf16.msra.mxu1 %v4999_v50  ;;  %v4911_v50 = vor.u32 %v6646_v53, %v4908_v39  ;;  %v4956_v38 = vld [vmem:[#allocation5 + $0x498] sm:$0xf0]  ;;  %v4895_v53 = vor.u32 %v6642_v29, %v4892_v9  ;;  %v6640_v39 = vld [vmem:[#allocation5 + $0x404] sm:$0xf]  ;;  %v6750_v62 = vld [vmem:[#allocation5 + $0x774] sm:$0xf] }
 0x168   :  { %3817 = vmatpush.bf16.msra.mxu2 %v5063_v49  ;;  %v5039_v49 = vor.u32 %v6678_v44, %v5036_v45  ;;  %v3566_v3 = vadd.f32 %v3565_v56, %v3553_v58  ;;  %v5020_v40 = vld [vmem:[#allocation5 + $0x518] sm:$0xf0]  ;;  %v4948_v44 = vld [vmem:[#allocation5 + $0x488] sm:$0xf0]  ;;  %v6672_v45 = vld [vmem:[#allocation5 + $0x504] sm:$0xf]  ;;  %v4887_v56 = vor.u32 %v6640_v39, %v4884_v41 }
 0x169   :  { %3830 = vmatpush.bf16.msra.mxu3 %v5127_v54  ;;  %v5103_v54 = vor.u32 %v6694_v46, %v5100_v48  ;;  %v5012_v48 = vld [vmem:[#allocation5 + $0x508] sm:$0xf0]  ;;  %v5260_v57 = vld [vmem:[#allocation5 + $0x6f8] sm:$0xf0]  ;;  %v6732_v9 = vld [vmem:[#allocation5 + $0x6e4] sm:$0xf] }
 0x16a   :  { %3792 = vmatpush.bf16.msra.mxu0 %v4927_v7  ;;  %v3578_v7 = vpop.f32.mrf.mxu3  ;;  %v3554_v34 = vpop.f32.mrf.mxu1  ;;  %v5324_v63 = vld [vmem:[#allocation5 + $0x778] sm:$0xf0]  ;;  %v5188_v29 = vld [vmem:[#allocation5 + $0x668] sm:$0xf0]  ;;  %v6714_v41 = vld [vmem:[#allocation5 + $0x654] sm:$0xf] }
 0x16b   :  { %3805 = vmatpush.bf16.msra.mxu1 %v4991_v10  ;;  %v6692_v10 = vld [vmem:[#allocation5 + $0x5a4] sm:$0xf]  ;;  %v5263_v34 = vor.u32 %v6734_v52, %v5260_v57 }
 0x16c   :  { %3818 = vmatpush.bf16.msra.mxu2 %v5055_v14  ;;  %v5092_v14 = vld [vmem:[#allocation5 + $0x5a8] sm:$0xf0]  ;;  %v6728_v52 = vld [vmem:[#allocation5 + $0x6c4] sm:$0xf] }
 0x16d   :  { %3831 = vmatpush.bf16.msra.mxu3 %v5119_v12  ;;  %v7457_v12 = vadd.f32 %v3578_v7, %v3566_v3  ;;  %v5095_v33 = vor.u32 %v6692_v10, %v5092_v14  ;;  %v4951_v3 = vor.u32 %v6656_v47, %v4948_v44  ;;  %v5015_v7 = vor.u32 %v6672_v45, %v5012_v48  ;;  %v6766_v10 = vld [vmem:[#allocation5 + $0x7f4] sm:$0xf]  ;;  %v5388_v14 = vld [vmem:[#allocation5 + $0x7f8] sm:$0xf0]  ;;  %v6744_v57 = vld [vmem:[#allocation5 + $0x744] sm:$0xf] }
 0x16e   :  { %3793 = vmatpush.bf16.msra.mxu0 %v4919_v15  ;;  %v6674_v15 = vld [vmem:[#allocation5 + $0x514] sm:$0xf]  ;;  %v5244_v44 = vld [vmem:[#allocation5 + $0x6d8] sm:$0xf0] }
 0x16f   :  { %3806 = vmatpush.bf16.msra.mxu1 %v4983_v35  ;;  %v6690_v35 = vld [vmem:[#allocation5 + $0x594] sm:$0xf]  ;;  %v5023_v58 = vor.u32 %v6674_v15, %v5020_v40  ;;  %v5316_v15 = vld [vmem:[#allocation5 + $0x768] sm:$0xf0]  ;;  %v6764_v40 = vld [vmem:[#allocation5 + $0x7e4] sm:$0xf] }
 0x170   :  { %3819 = vmatpush.bf16.msra.mxu2 %v5047_v25  ;;  %v5084_v25 = vld [vmem:[#allocation5 + $0x598] sm:$0xf0]  ;;  %v6746_v45 = vld [vmem:[#allocation5 + $0x754] sm:$0xf] }
 0x171   :  { %3832 = vmatpush.bf16.msra.mxu3 %v5111_v42  ;;  %v4959_v42 = vor.u32 %v6658_v37, %v4956_v38  ;;  %v5087_v46 = vor.u32 %v6690_v35, %v5084_v25  ;;  %v5391_v37 = vor.u32 %v6766_v10, %v5388_v14  ;;  %v6748_v38 = vld [vmem:[#allocation5 + $0x764] sm:$0xf]  ;;  %v5380_v35 = vld [vmem:[#allocation5 + $0x7e8] sm:$0xf0]  ;;  %v6762_v48 = vld [vmem:[#allocation5 + $0x7d4] sm:$0xf] }
 0x172   :  { %3794 = vmatpush.bf16.msra.mxu0 %v4911_v50  ;;  %v6688_v50 = vld [vmem:[#allocation5 + $0x584] sm:$0xf]  ;;  %v5319_v39 = vor.u32 %v6748_v38, %v5316_v15  ;;  %v5383_v47 = vor.u32 %v6764_v40, %v5380_v35  ;;  %v5356_v38 = vld [vmem:[#allocation5 + $0x7b8] sm:$0xf0] }
 0x173   :  { %3807 = vmatpush.bf16.msra.mxu1 %v4975_v30  ;;  %v5076_v30 = vld [vmem:[#allocation5 + $0x588] sm:$0xf0]  ;;  %v6708_v35 = vld [vmem:[#allocation5 + $0x624] sm:$0xf] }
 0x174   :  { %3820 = vmatpush.bf16.msra.mxu2 %v5039_v49  ;;  %v3567_v49 = vpop.f32.mrf.mxu2  ;;  %v5079_v16 = vor.u32 %v6688_v50, %v5076_v30  ;;  %v5372_v50 = vld [vmem:[#allocation5 + $0x7d8] sm:$0xf0] }
 0x175   :  { %3833 = vmatpush.bf16.msra.mxu3 %v5103_v54  ;;  %v3580_v54 = vpop.f32.mrf.mxu3 }
 0x176   :  { %3795 = vmatpush.bf16.msra.mxu0 %v4903_v21  ;;  %v5199_v21 = vor.u32 %v6718_v51, %v5196_v6  ;;  %v6712_v6 = vld [vmem:[#allocation5 + $0x644] sm:$0xf]  ;;  %v5375_v54 = vor.u32 %v6762_v48, %v5372_v50  ;;  %v5348_v48 = vld [vmem:[#allocation5 + $0x7a8] sm:$0xf0] }
 0x177   :  { %3808 = vmatpush.bf16.msra.mxu1 %v4967_v8  ;;  %v5327_v8 = vor.u32 %v6750_v62, %v5324_v63  ;;  %v5364_v63 = vld [vmem:[#allocation5 + $0x7c8] sm:$0xf0] }
 0x178   :  { %3821 = vmatpush.bf16.msra.mxu2 %v5031_v28  ;;  %v6716_v28 = vld [vmem:[#allocation5 + $0x664] sm:$0xf] }
 0x179   :  { %3834 = vmatpush.bf16.msra.mxu3 %v5095_v33  ;;  %v5252_v33 = vld [vmem:[#allocation5 + $0x6e8] sm:$0xf0]  ;;  %v5191_v25 = vor.u32 %v6716_v28, %v5188_v29  ;;  %v5228_v29 = vld [vmem:[#allocation5 + $0x6b8] sm:$0xf0] }
 0x17a   :  { %3796 = vmatpush.bf16.msra.mxu0 %v4895_v53  ;;  %v5255_v53 = vor.u32 %v6732_v9, %v5252_v33  ;;  %v6742_v9 = vld [vmem:[#allocation5 + $0x734] sm:$0xf] }
 0x17b   :  { %3809 = vmatpush.bf16.msra.mxu1 %v4959_v42  ;;  %v5180_v42 = vld [vmem:[#allocation5 + $0x658] sm:$0xf0]  ;;  %v6758_v33 = vld [vmem:[#allocation5 + $0x7b4] sm:$0xf] }
 0x17c   :  { %3822 = vmatpush.bf16.msra.mxu2 %v5023_v58  ;;  %v6730_v58 = vld [vmem:[#allocation5 + $0x6d4] sm:$0xf]  ;;  %v5183_v30 = vor.u32 %v6714_v41, %v5180_v42  ;;  %v5220_v42 = vld [vmem:[#allocation5 + $0x6a8] sm:$0xf0] }
 0x17d   :  { %3835 = vmatpush.bf16.msra.mxu3 %v5087_v46  ;;  %v5308_v46 = vld [vmem:[#allocation5 + $0x758] sm:$0xf0]  ;;  %v5247_v49 = vor.u32 %v6730_v58, %v5244_v44  ;;  %v6740_v58 = vld [vmem:[#allocation5 + $0x724] sm:$0xf] }
 0x17e   :  { %3797 = vmatpush.bf16.msra.mxu0 %v4887_v56  ;;  %v5311_v51 = vor.u32 %v6746_v45, %v5308_v46  ;;  %v5236_v56 = vld [vmem:[#allocation5 + $0x6c8] sm:$0xf0]  ;;  %v3591_v62 = vpop.f32.mrf.mxu0  ;;  %v6756_v46 = vld [vmem:[#allocation5 + $0x7a4] sm:$0xf] }
 0x17f   :  { %3810 = vmatpush.bf16.msra.mxu1 %v4951_v3  ;;  %v5239_v10 = vor.u32 %v6728_v52, %v5236_v56  ;;  %v6706_v52 = vld [vmem:[#allocation5 + $0x614] sm:$0xf] }
 0x180   :  { %3823 = vmatpush.bf16.msra.mxu2 %v5015_v7  ;;  %v3604_v7 = vpop.f32.mrf.mxu1  ;;  %v6722_v56 = vld [vmem:[#allocation5 + $0x694] sm:$0xf] }
 0x181   :  { %3836 = vmatpush.bf16.msra.mxu3 %v5079_v16  ;;  %3798 = vmatmul.bf16.vlgmr.msra.gmra.mxu0 %v7362_v18  ;;  %v5172_v18 = vld [vmem:[#allocation5 + $0x648] sm:$0xf0]  ;;  %v6710_v16 = vld [vmem:[#allocation5 + $0x634] sm:$0xf] }
 0x182   :  { %3842 = vmatpush.bf16.msrb.mxu0 %v5199_v21  ;;  %3811 = vmatmul.bf16.vlgmr.msra.gmra.mxu1 %v7366_v23  ;;  %v6760_v23 = vld [vmem:[#allocation5 + $0x7c4] sm:$0xf]  ;;  %v5175_v3 = vor.u32 %v6712_v6, %v5172_v18  ;;  %v5164_v21 = vld [vmem:[#allocation5 + $0x638] sm:$0xf0] }
 0x183   :  { %3855 = vmatpush.bf16.msrb.mxu1 %v5263_v34  ;;  %3824 = vmatmul.bf16.vlgmr.msra.gmra.mxu2 %v7364_v22  ;;  %v5300_v22 = vld [vmem:[#allocation5 + $0x748] sm:$0xf0]  ;;  %v6726_v34 = vld [vmem:[#allocation5 + $0x6b4] sm:$0xf]  ;;  %v5167_v15 = vor.u32 %v6710_v16, %v5164_v21  ;;  %v6720_v21 = vld [vmem:[#allocation5 + $0x684] sm:$0xf] }
 0x184   :  { %3868 = vmatpush.bf16.msrb.mxu2 %v5327_v8  ;;  %3837 = vmatmul.bf16.vlgmr.msra.gmra.mxu3 %v7368_v27  ;;  %v3592_v27 = vadd.f32 %v3591_v62, %v7457_v12  ;;  %v5303_v14 = vor.u32 %v6744_v57, %v5300_v22  ;;  %v5367_v8 = vor.u32 %v6760_v23, %v5364_v63  ;;  %v5212_v22 = vld [vmem:[#allocation5 + $0x698] sm:$0xf0]  ;;  %v6738_v62 = vld [vmem:[#allocation5 + $0x714] sm:$0xf] }
 0x185   :  { %3881 = vmatpush.bf16.msrb.mxu3 %v5391_v37  ;;  %v5292_v37 = vld [vmem:[#allocation5 + $0x738] sm:$0xf0]  ;;  %v5231_v12 = vor.u32 %v6726_v34, %v5228_v29  ;;  %v5351_v57 = vor.u32 %v6756_v46, %v5348_v48  ;;  %v6754_v63 = vld [vmem:[#allocation5 + $0x794] sm:$0xf]  ;;  %v5204_v34 = vld [vmem:[#allocation5 + $0x688] sm:$0xf0] }
 0x186   :  { %3843 = vmatpush.bf16.msrb.mxu0 %v5191_v25  ;;  %v3605_v28 = vadd.f32 %v3604_v7, %v3592_v27  ;;  %v5295_v40 = vor.u32 %v6742_v9, %v5292_v37  ;;  %v5156_v25 = vld [vmem:[#allocation5 + $0x628] sm:$0xf0]  ;;  %v3617_v41 = vpop.f32.mrf.mxu2  ;;  %v3593_v50 = vpop.f32.mrf.mxu0  ;;  %v5276_v23 = vld [vmem:[#allocation5 + $0x718] sm:$0xf0]  ;;  %v6704_v7 = vld [vmem:[#allocation5 + $0x604] sm:$0xf] }
 0x187   :  { %3856 = vmatpush.bf16.msrb.mxu1 %v5255_v53  ;;  %v6724_v53 = vld [vmem:[#allocation5 + $0x6a4] sm:$0xf]  ;;  %v3630_v45 = vpop.f32.mrf.mxu3  ;;  %v5340_v27 = vld [vmem:[#allocation5 + $0x798] sm:$0xf0]  ;;  %v5279_v16 = vor.u32 %v6738_v62, %v5276_v23  ;;  %v5268_v29 = vld [vmem:[#allocation5 + $0x708] sm:$0xf0] }
 0x188   :  { %3869 = vmatpush.bf16.msrb.mxu2 %v5319_v39  ;;  %v5359_v39 = vor.u32 %v6758_v33, %v5356_v38  ;;  %v3618_v44 = vadd.f32 %v3617_v41, %v3605_v28  ;;  %v5223_v6 = vor.u32 %v6724_v53, %v5220_v42  ;;  %v5343_v28 = vor.u32 %v6754_v63, %v5340_v27  ;;  %v6752_v9 = vld [vmem:[#allocation5 + $0x784] sm:$0xf]  ;;  %v5332_v37 = vld [vmem:[#allocation5 + $0x788] sm:$0xf0]  ;;  %v6782_v38 = vld [vmem:[#allocation5 + $0x874] sm:$0xf] }
 0x189   :  { %3882 = vmatpush.bf16.msrb.mxu3 %v5383_v47  ;;  %v5284_v47 = vld [vmem:[#allocation5 + $0x728] sm:$0xf0]  ;;  %v6814_v53 = vld [vmem:[#allocation5 + $0x974] sm:$0xf]  ;;  %v5207_v41 = vor.u32 %v6720_v21, %v5204_v34  ;;  %v6780_v50 = vld [vmem:[#allocation5 + $0x864] sm:$0xf] }
 0x18a   :  { %3844 = vmatpush.bf16.msrb.mxu0 %v5183_v30  ;;  %v5159_v30 = vor.u32 %v6708_v35, %v5156_v25  ;;  %v5287_v18 = vor.u32 %v6740_v58, %v5284_v47  ;;  %v5516_v25 = vld [vmem:[#allocation5 + $0x8f8] sm:$0xf0]  ;;  %v6830_v58 = vld [vmem:[#allocation5 + $0x9f4] sm:$0xf] }
 0x18b   :  { %3857 = vmatpush.bf16.msrb.mxu1 %v5247_v49  ;;  %v3606_v49 = vpop.f32.mrf.mxu1  ;;  %v5644_v47 = vld [vmem:[#allocation5 + $0x9f8] sm:$0xf0]  ;;  %v6778_v63 = vld [vmem:[#allocation5 + $0x854] sm:$0xf] }
 0x18c   :  { %3870 = vmatpush.bf16.msrb.mxu2 %v5311_v51  ;;  %v7464_v51 = vadd.f32 %v3630_v45, %v3618_v44  ;;  %v5335_v44 = vor.u32 %v6752_v9, %v5332_v37  ;;  %v6796_v49 = vld [vmem:[#allocation5 + $0x8e4] sm:$0xf]  ;;  %v5436_v27 = vld [vmem:[#allocation5 + $0x858] sm:$0xf0]  ;;  %v6826_v21 = vld [vmem:[#allocation5 + $0x9d4] sm:$0xf] }
 0x18d   :  { %3883 = vmatpush.bf16.msrb.mxu3 %v5375_v54  ;;  %v5148_v54 = vld [vmem:[#allocation5 + $0x618] sm:$0xf0]  ;;  %v6776_v9 = vld [vmem:[#allocation5 + $0x844] sm:$0xf] }
 0x18e   :  { %3845 = vmatpush.bf16.msrb.mxu0 %v5175_v3  ;;  %v5151_v3 = vor.u32 %v6706_v52, %v5148_v54  ;;  %v3619_v33 = vpop.f32.mrf.mxu2  ;;  %v6812_v52 = vld [vmem:[#allocation5 + $0x964] sm:$0xf]  ;;  %v5572_v54 = vld [vmem:[#allocation5 + $0x968] sm:$0xf0]  ;;  %v5628_v34 = vld [vmem:[#allocation5 + $0x9d8] sm:$0xf0] }
 0x18f   :  { %3858 = vmatpush.bf16.msrb.mxu1 %v5239_v10  ;;  %v5140_v10 = vld [vmem:[#allocation5 + $0x608] sm:$0xf0]  ;;  %v5575_v23 = vor.u32 %v6812_v52, %v5572_v54  ;;  %v6792_v37 = vld [vmem:[#allocation5 + $0x8c4] sm:$0xf]  ;;  %v5631_v33 = vor.u32 %v6826_v21, %v5628_v34 }
 0x190   :  { %3871 = vmatpush.bf16.msrb.mxu2 %v5303_v14  ;;  %v5215_v14 = vor.u32 %v6722_v56, %v5212_v22  ;;  %v5143_v35 = vor.u32 %v6704_v7, %v5140_v10  ;;  %v6828_v56 = vld [vmem:[#allocation5 + $0x9e4] sm:$0xf]  ;;  %v5500_v10 = vld [vmem:[#allocation5 + $0x8d8] sm:$0xf0]  ;;  %v5412_v52 = vld [vmem:[#allocation5 + $0x828] sm:$0xf0] }
 0x191   :  { %3884 = vmatpush.bf16.msrb.mxu3 %v5367_v8  ;;  %v6736_v8 = vld [vmem:[#allocation5 + $0x704] sm:$0xf] }
 0x192   :  { %3846 = vmatpush.bf16.msrb.mxu0 %v5167_v15  ;;  %v5452_v15 = vld [vmem:[#allocation5 + $0x878] sm:$0xf0]  ;;  %v5271_v42 = vor.u32 %v6736_v8, %v5268_v29  ;;  %v5439_v8 = vor.u32 %v6778_v63, %v5436_v27  ;;  %v6788_v54 = vld [vmem:[#allocation5 + $0x8a4] sm:$0xf] }
 0x193   :  { %3859 = vmatpush.bf16.msrb.mxu1 %v5231_v12  ;;  %v6798_v12 = vld [vmem:[#allocation5 + $0x8f4] sm:$0xf]  ;;  %v5455_v45 = vor.u32 %v6782_v38, %v5452_v15  ;;  %v5492_v38 = vld [vmem:[#allocation5 + $0x8c8] sm:$0xf0]  ;;  %v6808_v15 = vld [vmem:[#allocation5 + $0x944] sm:$0xf] }
 0x194   :  { %3872 = vmatpush.bf16.msrb.mxu2 %v5295_v40  ;;  %v3632_v40 = vpop.f32.mrf.mxu3  ;;  %v5519_v46 = vor.u32 %v6798_v12, %v5516_v25 }
 0x195   :  { %3885 = vmatpush.bf16.msrb.mxu3 %v5359_v39  ;;  %v5580_v39 = vld [vmem:[#allocation5 + $0x978] sm:$0xf0]  ;;  %v5620_v40 = vld [vmem:[#allocation5 + $0x9c8] sm:$0xf0] }
 0x196   :  { %3847 = vmatpush.bf16.msrb.mxu0 %v5159_v30  ;;  %v5583_v48 = vor.u32 %v6814_v53, %v5580_v39  ;;  %v5444_v30 = vld [vmem:[#allocation5 + $0x868] sm:$0xf0]  ;;  %v5495_v53 = vor.u32 %v6792_v37, %v5492_v38  ;;  %v5468_v37 = vld [vmem:[#allocation5 + $0x898] sm:$0xf0] }
 0x197   :  { %3860 = vmatpush.bf16.msrb.mxu1 %v5223_v6  ;;  %v5647_v6 = vor.u32 %v6830_v58, %v5644_v47  ;;  %v5447_v22 = vor.u32 %v6780_v50, %v5444_v30  ;;  %v6790_v58 = vld [vmem:[#allocation5 + $0x8b4] sm:$0xf]  ;;  %v5612_v30 = vld [vmem:[#allocation5 + $0x9b8] sm:$0xf0] }
 0x198   :  { %3873 = vmatpush.bf16.msrb.mxu2 %v5287_v18  ;;  %v5508_v18 = vld [vmem:[#allocation5 + $0x8e8] sm:$0xf0]  ;;  %v6822_v50 = vld [vmem:[#allocation5 + $0x9b4] sm:$0xf]  ;;  %v5532_v38 = vld [vmem:[#allocation5 + $0x918] sm:$0xf0] }
 0x199   :  { %3886 = vmatpush.bf16.msrb.mxu3 %v5351_v57  ;;  %v5636_v57 = vld [vmem:[#allocation5 + $0x9e8] sm:$0xf0]  ;;  %v5511_v62 = vor.u32 %v6796_v49, %v5508_v18  ;;  %v6772_v18 = vld [vmem:[#allocation5 + $0x824] sm:$0xf] }
 0x19a   :  { %3848 = vmatpush.bf16.msrb.mxu0 %v5151_v3  ;;  %v6794_v3 = vld [vmem:[#allocation5 + $0x8d4] sm:$0xf]  ;;  %v5639_v7 = vor.u32 %v6828_v56, %v5636_v57  ;;  %v5615_v56 = vor.u32 %v6822_v50, %v5612_v30 }
 0x19b   :  { %3861 = vmatpush.bf16.msrb.mxu1 %v5215_v14  ;;  %v6810_v14 = vld [vmem:[#allocation5 + $0x954] sm:$0xf] }
 0x19c   :  { %3874 = vmatpush.bf16.msrb.mxu2 %v5279_v16  ;;  %v5564_v16 = vld [vmem:[#allocation5 + $0x958] sm:$0xf0] }
 0x19d   :  { %3887 = vmatpush.bf16.msrb.mxu3 %v5343_v28  ;;  %v5503_v28 = vor.u32 %v6794_v3, %v5500_v10  ;;  %v5567_v29 = vor.u32 %v6810_v14, %v5564_v16  ;;  %v6820_v3 = vld [vmem:[#allocation5 + $0x9a4] sm:$0xf]  ;;  %v5415_v14 = vor.u32 %v6772_v18, %v5412_v52 }
 0x19e   :  { %3849 = vmatpush.bf16.msrb.mxu0 %v5143_v35  ;;  %v3643_v12 = vpop.f32.mrf.mxu0 }
 0x19f   :  { %3862 = vmatpush.bf16.msrb.mxu1 %v5207_v41  ;;  %v3656_v25 = vpop.f32.mrf.mxu1  ;;  %v6774_v41 = vld [vmem:[#allocation5 + $0x834] sm:$0xf] }
 0x1a0   :  { %3875 = vmatpush.bf16.msrb.mxu2 %v5271_v42  ;;  %v5420_v42 = vld [vmem:[#allocation5 + $0x838] sm:$0xf0] }
 0x1a1   :  { %3888 = vmatpush.bf16.msrb.mxu3 %v5335_v44  ;;  %3850 = vmatmul.bf16.vlgmr.msrb.gmra.mxu0 %v7374_v13  ;;  %v5428_v13 = vld [vmem:[#allocation5 + $0x848] sm:$0xf0]  ;;  %v5423_v49 = vor.u32 %v6774_v41, %v5420_v42 }
 0x1a2   :  { %3894 = vmatpush.bf16.msra.mxu0 %v5455_v45  ;;  %3863 = vmatmul.bf16.vlgmr.msrb.gmra.mxu1 %v7378_v20  ;;  %v6824_v20 = vld [vmem:[#allocation5 + $0x9c4] sm:$0xf]  ;;  %v5431_v35 = vor.u32 %v6776_v9, %v5428_v13  ;;  %v5484_v45 = vld [vmem:[#allocation5 + $0x8b8] sm:$0xf0]  ;;  %v6786_v9 = vld [vmem:[#allocation5 + $0x894] sm:$0xf] }
 0x1a3   :  { %3907 = vmatpush.bf16.msra.mxu1 %v5519_v46  ;;  %3876 = vmatmul.bf16.vlgmr.msrb.gmra.mxu2 %v7376_v19  ;;  %v5556_v19 = vld [vmem:[#allocation5 + $0x948] sm:$0xf0]  ;;  %v5623_v47 = vor.u32 %v6824_v20, %v5620_v40  ;;  %v6806_v46 = vld [vmem:[#allocation5 + $0x934] sm:$0xf]  ;;  %v6768_v20 = vld [vmem:[#allocation5 + $0x804] sm:$0xf] }
 0x1a4   :  { %3920 = vmatpush.bf16.msra.mxu2 %v5583_v48  ;;  %3889 = vmatmul.bf16.vlgmr.msrb.gmra.mxu3 %v7380_v26  ;;  %v3644_v26 = vadd.f32 %v3643_v12, %v7464_v51  ;;  %v5559_v39 = vor.u32 %v6808_v15, %v5556_v19  ;;  %v5548_v48 = vld [vmem:[#allocation5 + $0x938] sm:$0xf0]  ;;  %v5487_v51 = vor.u32 %v6790_v58, %v5484_v45  ;;  %v6818_v15 = vld [vmem:[#allocation5 + $0x994] sm:$0xf]  ;;  %v5396_v40 = vld [vmem:[#allocation5 + $0x808] sm:$0xf0] }
 0x1a5   :  { %3933 = vmatpush.bf16.msra.mxu3 %v5647_v6  ;;  %v5551_v6 = vor.u32 %v6806_v46, %v5548_v48  ;;  %v5596_v19 = vld [vmem:[#allocation5 + $0x998] sm:$0xf0]  ;;  %v5524_v42 = vld [vmem:[#allocation5 + $0x908] sm:$0xf0]  ;;  %v6816_v58 = vld [vmem:[#allocation5 + $0x984] sm:$0xf]  ;;  %v5399_v30 = vor.u32 %v6768_v20, %v5396_v40 }
 0x1a6   :  { %3895 = vmatpush.bf16.msra.mxu0 %v5447_v22  ;;  %v3657_v44 = vadd.f32 %v3656_v25, %v3644_v26  ;;  %v3669_v57 = vpop.f32.mrf.mxu2  ;;  %v5476_v22 = vld [vmem:[#allocation5 + $0x8a8] sm:$0xf0]  ;;  %v3645_v10 = vpop.f32.mrf.mxu0  ;;  %v5471_v26 = vor.u32 %v6786_v9, %v5468_v37  ;;  %v6784_v25 = vld [vmem:[#allocation5 + $0x884] sm:$0xf]  ;;  %v5599_v41 = vor.u32 %v6818_v15, %v5596_v19  ;;  %v6846_v45 = vld [vmem:[#allocation5 + $0xa74] sm:$0xf] }
 0x1a7   :  { %3908 = vmatpush.bf16.msra.mxu1 %v5511_v62  ;;  %v6804_v62 = vld [vmem:[#allocation5 + $0x924] sm:$0xf]  ;;  %v3682_v27 = vpop.f32.mrf.mxu3  ;;  %v3658_v16 = vpop.f32.mrf.mxu1  ;;  %v5479_v34 = vor.u32 %v6788_v54, %v5476_v22  ;;  %v5708_v46 = vld [vmem:[#allocation5 + $0xa78] sm:$0xf0]  ;;  %v6862_v48 = vld [vmem:[#allocation5 + $0xaf4] sm:$0xf] }
 0x1a8   :  { %3921 = vmatpush.bf16.msra.mxu2 %v5575_v23  ;;  %v5540_v23 = vld [vmem:[#allocation5 + $0x928] sm:$0xf0]  ;;  %v3670_v63 = vadd.f32 %v3669_v57, %v3657_v44  ;;  %v6894_v54 = vld [vmem:[#allocation5 + $0xbf4] sm:$0xf]  ;;  %v5711_v22 = vor.u32 %v6846_v45, %v5708_v46  ;;  %v5692_v37 = vld [vmem:[#allocation5 + $0xa58] sm:$0xf0] }
 0x1a9   :  { %3934 = vmatpush.bf16.msra.mxu3 %v5639_v7  ;;  %v5604_v7 = vld [vmem:[#allocation5 + $0x9a8] sm:$0xf0]  ;;  %v5756_v15 = vld [vmem:[#allocation5 + $0xad8] sm:$0xf0]  ;;  %v6874_v19 = vld [vmem:[#allocation5 + $0xb54] sm:$0xf] }
 0x1aa   :  { %3896 = vmatpush.bf16.msra.mxu0 %v5439_v8  ;;  %v7471_v21 = vadd.f32 %v3682_v27, %v3670_v63  ;;  %v5543_v8 = vor.u32 %v6804_v62, %v5540_v23  ;;  %v5607_v13 = vor.u32 %v6820_v3, %v5604_v7  ;;  %v6844_v63 = vld [vmem:[#allocation5 + $0xa64] sm:$0xf]  ;;  %v5700_v27 = vld [vmem:[#allocation5 + $0xa68] sm:$0xf0]  ;;  %v6890_v20 = vld [vmem:[#allocation5 + $0xbd4] sm:$0xf] }
 0x1ab   :  { %3909 = vmatpush.bf16.msra.mxu1 %v5503_v28  ;;  %v6770_v28 = vld [vmem:[#allocation5 + $0x814] sm:$0xf]  ;;  %v6860_v3 = vld [vmem:[#allocation5 + $0xae4] sm:$0xf]  ;;  %v5764_v10 = vld [vmem:[#allocation5 + $0xae8] sm:$0xf0] }
 0x1ac   :  { %3922 = vmatpush.bf16.msra.mxu2 %v5567_v29  ;;  %v5404_v29 = vld [vmem:[#allocation5 + $0x818] sm:$0xf0]  ;;  %v5828_v16 = vld [vmem:[#allocation5 + $0xb68] sm:$0xf0] }
 0x1ad   :  { %3935 = vmatpush.bf16.msra.mxu3 %v5631_v33  ;;  %v6802_v33 = vld [vmem:[#allocation5 + $0x914] sm:$0xf]  ;;  %v5407_v12 = vor.u32 %v6770_v28, %v5404_v29  ;;  %v5703_v28 = vor.u32 %v6844_v63, %v5700_v27  ;;  %v5767_v29 = vor.u32 %v6860_v3, %v5764_v10  ;;  %v5884_v40 = vld [vmem:[#allocation5 + $0xbd8] sm:$0xf0]  ;;  %v5876_v45 = vld [vmem:[#allocation5 + $0xbc8] sm:$0xf0] }
 0x1ae   :  { %3897 = vmatpush.bf16.msra.mxu0 %v5431_v35  ;;  %v5535_v35 = vor.u32 %v6802_v33, %v5532_v38  ;;  %v3671_v44 = vpop.f32.mrf.mxu2  ;;  %v6858_v33 = vld [vmem:[#allocation5 + $0xad4] sm:$0xf]  ;;  %v5668_v10 = vld [vmem:[#allocation5 + $0xa28] sm:$0xf0] }
 0x1af   :  { %3910 = vmatpush.bf16.msra.mxu1 %v5495_v53  ;;  %v5460_v53 = vld [vmem:[#allocation5 + $0x888] sm:$0xf0]  ;;  %v3684_v50 = vpop.f32.mrf.mxu3  ;;  %v6888_v44 = vld [vmem:[#allocation5 + $0xbc4] sm:$0xf] }
 0x1b0   :  { %3923 = vmatpush.bf16.msra.mxu2 %v5559_v39  ;;  %v6800_v39 = vld [vmem:[#allocation5 + $0x904] sm:$0xf]  ;;  %v5463_v18 = vor.u32 %v6784_v25, %v5460_v53  ;;  %v5759_v25 = vor.u32 %v6858_v33, %v5756_v15  ;;  %v5860_v33 = vld [vmem:[#allocation5 + $0xba8] sm:$0xf0] }
 0x1b1   :  { %3936 = vmatpush.bf16.msra.mxu3 %v5623_v47  ;;  %v5588_v47 = vld [vmem:[#allocation5 + $0x988] sm:$0xf0]  ;;  %v5527_v52 = vor.u32 %v6800_v39, %v5524_v42  ;;  %v6856_v39 = vld [vmem:[#allocation5 + $0xac4] sm:$0xf] }
 0x1b2   :  { %3898 = vmatpush.bf16.msra.mxu0 %v5423_v49  ;;  %v5772_v49 = vld [vmem:[#allocation5 + $0xaf8] sm:$0xf0]  ;;  %v5591_v57 = vor.u32 %v6816_v58, %v5588_v47  ;;  %v5887_v58 = vor.u32 %v6890_v20, %v5884_v40  ;;  %v6872_v47 = vld [vmem:[#allocation5 + $0xb44] sm:$0xf]  ;;  %v6834_v40 = vld [vmem:[#allocation5 + $0xa14] sm:$0xf] }
 0x1b3   :  { %3911 = vmatpush.bf16.msra.mxu1 %v5487_v51  ;;  %v6878_v51 = vld [vmem:[#allocation5 + $0xb74] sm:$0xf]  ;;  %v5775_v62 = vor.u32 %v6862_v48, %v5772_v49  ;;  %v5676_v49 = vld [vmem:[#allocation5 + $0xa38] sm:$0xf0] }
 0x1b4   :  { %3924 = vmatpush.bf16.msra.mxu2 %v5551_v6  ;;  %v5836_v6 = vld [vmem:[#allocation5 + $0xb78] sm:$0xf0] }
 0x1b5   :  { %3937 = vmatpush.bf16.msra.mxu3 %v5615_v56  ;;  %v5900_v56 = vld [vmem:[#allocation5 + $0xbf8] sm:$0xf0]  ;;  %v5839_v23 = vor.u32 %v6878_v51, %v5836_v6  ;;  %v6854_v51 = vld [vmem:[#allocation5 + $0xab4] sm:$0xf] }
 0x1b6   :  { %3899 = vmatpush.bf16.msra.mxu0 %v5415_v14  ;;  %v5903_v7 = vor.u32 %v6894_v54, %v5900_v56  ;;  %v6876_v14 = vld [vmem:[#allocation5 + $0xb64] sm:$0xf]  ;;  %v5740_v54 = vld [vmem:[#allocation5 + $0xab8] sm:$0xf0]  ;;  %v6870_v56 = vld [vmem:[#allocation5 + $0xb34] sm:$0xf] }
 0x1b7   :  { %3912 = vmatpush.bf16.msra.mxu1 %v5479_v34  ;;  %v6892_v34 = vld [vmem:[#allocation5 + $0xbe4] sm:$0xf]  ;;  %v5831_v9 = vor.u32 %v6876_v14, %v5828_v16  ;;  %v5743_v27 = vor.u32 %v6854_v51, %v5740_v54  ;;  %v5964_v54 = vld [vmem:[#allocation5 + $0xc78] sm:$0xf0] }
 0x1b8   :  { %3925 = vmatpush.bf16.msra.mxu2 %v5543_v8  ;;  %v5892_v8 = vld [vmem:[#allocation5 + $0xbe8] sm:$0xf0]  ;;  %v6852_v14 = vld [vmem:[#allocation5 + $0xaa4] sm:$0xf] }
 0x1b9   :  { %3938 = vmatpush.bf16.msra.mxu3 %v5607_v13  ;;  %v6842_v13 = vld [vmem:[#allocation5 + $0xa54] sm:$0xf]  ;;  %v5895_v38 = vor.u32 %v6892_v34, %v5892_v8  ;;  %v5732_v8 = vld [vmem:[#allocation5 + $0xaa8] sm:$0xf0]  ;;  %v6880_v51 = vld [vmem:[#allocation5 + $0xb84] sm:$0xf] }
 0x1ba   :  { %3900 = vmatpush.bf16.msra.mxu0 %v5407_v12  ;;  %v5820_v12 = vld [vmem:[#allocation5 + $0xb58] sm:$0xf0] }
 0x1bb   :  { %3913 = vmatpush.bf16.msra.mxu1 %v5471_v26  ;;  %v5695_v26 = vor.u32 %v6842_v13, %v5692_v37  ;;  %v5823_v53 = vor.u32 %v6874_v19, %v5820_v12  ;;  %v6884_v37 = vld [vmem:[#allocation5 + $0xba4] sm:$0xf]  ;;  %v5735_v12 = vor.u32 %v6852_v14, %v5732_v8 }
 0x1bc   :  { %3926 = vmatpush.bf16.msra.mxu2 %v5535_v35  ;;  %v6840_v35 = vld [vmem:[#allocation5 + $0xa44] sm:$0xf] }
 0x1bd   :  { %3939 = vmatpush.bf16.msra.mxu3 %v5599_v41  ;;  %v7062_v41 = vld [vmem:[#allocation7] sm:$0x3]  ;;  %v6908_v8 = vld [vmem:[#allocation5 + $0xc64] sm:$0xf] }
 0x1be   :  { %3901 = vmatpush.bf16.msra.mxu0 %v5399_v30  ;;  %v707_v42 = vperm.slane %v7062_v41, 1  ;;  %v3695_v46 = vpop.f32.mrf.mxu0  ;;  %v6838_v30 = vld [vmem:[#allocation5 + $0xa34] sm:$0xf]  ;;  %v5788_v41 = vld [vmem:[#allocation5 + $0xb18] sm:$0xf0] }
 0x1bf   :  { %3914 = vmatpush.bf16.msra.mxu1 %v5463_v18  ;;  %v3708_v18 = vpop.f32.mrf.mxu1  ;;  %v5679_v63 = vor.u32 %v6838_v30, %v5676_v49  ;;  %v5780_v49 = vld [vmem:[#allocation5 + $0xb08] sm:$0xf0] }
 0x1c0   :  { %3927 = vmatpush.bf16.msra.mxu2 %v5527_v52  ;;  %v3696_v6 = vadd.f32 %v3695_v46, %v707_v42  ;;  %v5879_v52 = vor.u32 %v6888_v44, %v5876_v45  ;;  %v6882_v42 = vld [vmem:[#allocation5 + $0xb94] sm:$0xf]  ;;  %v5716_v46 = vld [vmem:[#allocation5 + $0xa88] sm:$0xf0] }
 0x1c1   :  { %3940 = vmatpush.bf16.msra.mxu3 %v5591_v57  ;;  %3902 = vmatmul.bf16.vlgmr.msra.gmra.mxu0 %v7386_v24  ;;  %v5684_v24 = vld [vmem:[#allocation5 + $0xa48] sm:$0xf0]  ;;  %v5804_v57 = vld [vmem:[#allocation5 + $0xb38] sm:$0xf0] }
 0x1c2   :  { %3946 = vmatpush.bf16.msrb.mxu0 %v5711_v22  ;;  %3915 = vmatmul.bf16.vlgmr.msra.gmra.mxu1 %v7390_v32  ;;  %v5812_v32 = vld [vmem:[#allocation5 + $0xb48] sm:$0xf0]  ;;  %v6886_v22 = vld [vmem:[#allocation5 + $0xbb4] sm:$0xf]  ;;  %v5807_v3 = vor.u32 %v6870_v56, %v5804_v57 }
 0x1c3   :  { %3959 = vmatpush.bf16.msrb.mxu1 %v5775_v62  ;;  %3928 = vmatmul.bf16.vlgmr.msra.gmra.mxu2 %v7388_v31  ;;  %v5748_v31 = vld [vmem:[#allocation5 + $0xac8] sm:$0xf0]  ;;  %v5815_v50 = vor.u32 %v6872_v47, %v5812_v32  ;;  %v5868_v62 = vld [vmem:[#allocation5 + $0xbb8] sm:$0xf0]  ;;  %v6832_v47 = vld [vmem:[#allocation5 + $0xa04] sm:$0xf] }
 0x1c4   :  { %3972 = vmatpush.bf16.msrb.mxu2 %v5839_v23  ;;  %3941 = vmatmul.bf16.vlgmr.msra.gmra.mxu3 %v7392_v36  ;;  %v5687_v36 = vor.u32 %v6840_v35, %v5684_v24  ;;  %v5751_v48 = vor.u32 %v6856_v39, %v5748_v31  ;;  %v3709_v23 = vadd.f32 %v3708_v18, %v3696_v6  ;;  %v6850_v35 = vld [vmem:[#allocation5 + $0xa94] sm:$0xf]  ;;  %v5724_v24 = vld [vmem:[#allocation5 + $0xa98] sm:$0xf0]  ;;  %v5652_v32 = vld [vmem:[#allocation5 + $0xa08] sm:$0xf0] }
 0x1c5   :  { %3985 = vmatpush.bf16.msrb.mxu3 %v5903_v7  ;;  %v6836_v7 = vld [vmem:[#allocation5 + $0xa24] sm:$0xf]  ;;  %v5871_v34 = vor.u32 %v6886_v22, %v5868_v62  ;;  %v6866_v39 = vld [vmem:[#allocation5 + $0xb14] sm:$0xf]  ;;  %v5727_v44 = vor.u32 %v6850_v35, %v5724_v24  ;;  %v5844_v6 = vld [vmem:[#allocation5 + $0xb88] sm:$0xf0]  ;;  %v5655_v57 = vor.u32 %v6832_v47, %v5652_v32 }
 0x1c6   :  { %3947 = vmatpush.bf16.msrb.mxu0 %v5703_v28  ;;  %v3721_v16 = vpop.f32.mrf.mxu2  ;;  %v6868_v28 = vld [vmem:[#allocation5 + $0xb24] sm:$0xf]  ;;  %v3697_v19 = vpop.f32.mrf.mxu0  ;;  %v5791_v45 = vor.u32 %v6866_v39, %v5788_v41  ;;  %v6926_v56 = vld [vmem:[#allocation5 + $0xcf4] sm:$0xf]  ;;  %v6028_v22 = vld [vmem:[#allocation5 + $0xcf8] sm:$0xf0] }
 0x1c7   :  { %3960 = vmatpush.bf16.msrb.mxu1 %v5767_v29  ;;  %v5796_v29 = vld [vmem:[#allocation5 + $0xb28] sm:$0xf0]  ;;  %v3734_v13 = vpop.f32.mrf.mxu3  ;;  %v6942_v62 = vld [vmem:[#allocation5 + $0xd74] sm:$0xf]  ;;  %v5948_v35 = vld [vmem:[#allocation5 + $0xc58] sm:$0xf0] }
 0x1c8   :  { %3973 = vmatpush.bf16.msrb.mxu2 %v5831_v9  ;;  %v3722_v9 = vadd.f32 %v3721_v16, %v3709_v23  ;;  %v5799_v20 = vor.u32 %v6868_v28, %v5796_v29  ;;  %v6092_v23 = vld [vmem:[#allocation5 + $0xd78] sm:$0xf0]  ;;  %v6031_v16 = vor.u32 %v6926_v56, %v6028_v22  ;;  %v5956_v28 = vld [vmem:[#allocation5 + $0xc68] sm:$0xf0]  ;;  %v6924_v29 = vld [vmem:[#allocation5 + $0xce4] sm:$0xf] }
 0x1c9   :  { %3986 = vmatpush.bf16.msrb.mxu3 %v5895_v38  ;;  %v5671_v38 = vor.u32 %v6836_v7, %v5668_v10  ;;  %v6156_v7 = vld [vmem:[#allocation5 + $0xdf8] sm:$0xf0]  ;;  %v5847_v10 = vor.u32 %v6880_v51, %v5844_v6  ;;  %v6148_v19 = vld [vmem:[#allocation5 + $0xde8] sm:$0xf0]  ;;  %v6938_v39 = vld [vmem:[#allocation5 + $0xd54] sm:$0xf] }
 0x1ca   :  { %3948 = vmatpush.bf16.msrb.mxu0 %v5695_v26  ;;  %v7477_v15 = vadd.f32 %v3734_v13, %v3722_v9  ;;  %v5660_v26 = vld [vmem:[#allocation5 + $0xa18] sm:$0xf0]  ;;  %v6020_v13 = vld [vmem:[#allocation5 + $0xce8] sm:$0xf0]  ;;  %v6902_v6 = vld [vmem:[#allocation5 + $0xc34] sm:$0xf] }
 0x1cb   :  { %3961 = vmatpush.bf16.msrb.mxu1 %v5759_v25  ;;  %v3710_v25 = vpop.f32.mrf.mxu1  ;;  %v5663_v31 = vor.u32 %v6834_v40, %v5660_v26  ;;  %v6906_v26 = vld [vmem:[#allocation5 + $0xc54] sm:$0xf]  ;;  %v6012_v24 = vld [vmem:[#allocation5 + $0xcd8] sm:$0xf0] }
 0x1cc   :  { %3974 = vmatpush.bf16.msrb.mxu2 %v5823_v53  ;;  %v5863_v53 = vor.u32 %v6884_v37, %v5860_v33  ;;  %v6940_v37 = vld [vmem:[#allocation5 + $0xd64] sm:$0xf]  ;;  %v6084_v33 = vld [vmem:[#allocation5 + $0xd68] sm:$0xf0]  ;;  %v6922_v25 = vld [vmem:[#allocation5 + $0xcd4] sm:$0xf] }
 0x1cd   :  { %3987 = vmatpush.bf16.msrb.mxu3 %v5887_v58  ;;  %v5852_v58 = vld [vmem:[#allocation5 + $0xb98] sm:$0xf0]  ;;  %v6087_v40 = vor.u32 %v6940_v37, %v6084_v33  ;;  %v6015_v47 = vor.u32 %v6922_v25, %v6012_v24  ;;  %v6898_v25 = vld [vmem:[#allocation5 + $0xc14] sm:$0xf] }
 0x1ce   :  { %3949 = vmatpush.bf16.msrb.mxu0 %v5687_v36  ;;  %v6848_v36 = vld [vmem:[#allocation5 + $0xa84] sm:$0xf]  ;;  %v5855_v30 = vor.u32 %v6882_v42, %v5852_v58  ;;  %v6076_v41 = vld [vmem:[#allocation5 + $0xd58] sm:$0xf0]  ;;  %v6954_v42 = vld [vmem:[#allocation5 + $0xdd4] sm:$0xf] }
 0x1cf   :  { %3962 = vmatpush.bf16.msrb.mxu1 %v5751_v48  ;;  %v6864_v48 = vld [vmem:[#allocation5 + $0xb04] sm:$0xf]  ;;  %v3736_v18 = vpop.f32.mrf.mxu3  ;;  %v6140_v58 = vld [vmem:[#allocation5 + $0xdd8] sm:$0xf0]  ;;  %v6079_v32 = vor.u32 %v6938_v39, %v6076_v41  ;;  %v6914_v24 = vld [vmem:[#allocation5 + $0xc94] sm:$0xf] }
 0x1d0   :  { %3975 = vmatpush.bf16.msrb.mxu2 %v5815_v50  ;;  %v3723_v50 = vpop.f32.mrf.mxu2  ;;  %v5932_v18 = vld [vmem:[#allocation5 + $0xc38] sm:$0xf0] }
 0x1d1   :  { %3988 = vmatpush.bf16.msrb.mxu3 %v5879_v52  ;;  %v6910_v52 = vld [vmem:[#allocation5 + $0xc74] sm:$0xf]  ;;  %v6952_v50 = vld [vmem:[#allocation5 + $0xdc4] sm:$0xf]  ;;  %v5996_v22 = vld [vmem:[#allocation5 + $0xcb8] sm:$0xf0] }
 0x1d2   :  { %3950 = vmatpush.bf16.msrb.mxu0 %v5679_v63  ;;  %v5719_v63 = vor.u32 %v6848_v36, %v5716_v46  ;;  %v5967_v14 = vor.u32 %v6910_v52, %v5964_v54  ;;  %v6143_v36 = vor.u32 %v6954_v42, %v6140_v58  ;;  %v6004_v46 = vld [vmem:[#allocation5 + $0xcc8] sm:$0xf0]  ;;  %v6918_v52 = vld [vmem:[#allocation5 + $0xcb4] sm:$0xf]  ;;  %v5980_v42 = vld [vmem:[#allocation5 + $0xc98] sm:$0xf0] }
 0x1d3   :  { %3963 = vmatpush.bf16.msrb.mxu1 %v5743_v27  ;;  %v5783_v27 = vor.u32 %v6864_v48, %v5780_v49  ;;  %v6936_v48 = vld [vmem:[#allocation5 + $0xd44] sm:$0xf]  ;;  %v6930_v58 = vld [vmem:[#allocation5 + $0xd14] sm:$0xf] }
 0x1d4   :  { %3976 = vmatpush.bf16.msrb.mxu2 %v5807_v3  ;;  %v6958_v3 = vld [vmem:[#allocation5 + $0xdf4] sm:$0xf] }
 0x1d5   :  { %3989 = vmatpush.bf16.msrb.mxu3 %v5871_v34  ;;  %v6095_v34 = vor.u32 %v6942_v62, %v6092_v23  ;;  %v6159_v9 = vor.u32 %v6958_v3, %v6156_v7  ;;  %v6934_v62 = vld [vmem:[#allocation5 + $0xd34] sm:$0xf]  ;;  %v6060_v23 = vld [vmem:[#allocation5 + $0xd38] sm:$0xf0]  ;;  %v5935_v7 = vor.u32 %v6902_v6, %v5932_v18 }
 0x1d6   :  { %3951 = vmatpush.bf16.msrb.mxu0 %v5671_v38  ;;  %v6956_v38 = vld [vmem:[#allocation5 + $0xde4] sm:$0xf]  ;;  %v6974_v18 = vld [vmem:[#allocation5 + $0xe74] sm:$0xf] }
 0x1d7   :  { %3964 = vmatpush.bf16.msrb.mxu1 %v5735_v12  ;;  %v5959_v12 = vor.u32 %v6908_v8, %v5956_v28  ;;  %v6916_v8 = vld [vmem:[#allocation5 + $0xca4] sm:$0xf] }
 0x1d8   :  { %3977 = vmatpush.bf16.msrb.mxu2 %v5799_v20  ;;  %v6023_v20 = vor.u32 %v6924_v29, %v6020_v13  ;;  %v5988_v29 = vld [vmem:[#allocation5 + $0xca8] sm:$0xf0] }
 0x1d9   :  { %3990 = vmatpush.bf16.msrb.mxu3 %v5863_v53  ;;  %v6151_v53 = vor.u32 %v6956_v38, %v6148_v19  ;;  %v6052_v13 = vld [vmem:[#allocation5 + $0xd28] sm:$0xf0]  ;;  %v6948_v38 = vld [vmem:[#allocation5 + $0xda4] sm:$0xf] }
 0x1da   :  { %3952 = vmatpush.bf16.msrb.mxu0 %v5663_v31  ;;  %v5951_v31 = vor.u32 %v6906_v26, %v5948_v35  ;;  %v6116_v19 = vld [vmem:[#allocation5 + $0xda8] sm:$0xf0]  ;;  %v5991_v26 = vor.u32 %v6916_v8, %v5988_v29 }
 0x1db   :  { %3965 = vmatpush.bf16.msrb.mxu1 %v5727_v44  ;;  %v6904_v44 = vld [vmem:[#allocation5 + $0xc44] sm:$0xf]  ;;  %v6119_v41 = vor.u32 %v6948_v38, %v6116_v19  ;;  %v6212_v8 = vld [vmem:[#allocation5 + $0xe68] sm:$0xf0] }
 0x1dc   :  { %3978 = vmatpush.bf16.msrb.mxu2 %v5791_v45  ;;  %v6920_v45 = vld [vmem:[#allocation5 + $0xcc4] sm:$0xf]  ;;  %v6276_v29 = vld [vmem:[#allocation5 + $0xee8] sm:$0xf0] }
 0x1dd   :  { %3991 = vmatpush.bf16.msrb.mxu3 %v5855_v30 }
 0x1de   :  { %3953 = vmatpush.bf16.msrb.mxu0 %v5655_v57  ;;  %v3747_v49 = vpop.f32.mrf.mxu0 }
 0x1df   :  { %3966 = vmatpush.bf16.msrb.mxu1 %v5719_v63  ;;  %v3748_v54 = vadd.f32 %v3747_v49, %v7477_v15  ;;  %v3760_v56 = vpop.f32.mrf.mxu1  ;;  %v6950_v63 = vld [vmem:[#allocation5 + $0xdb4] sm:$0xf]  ;;  %v6036_v49 = vld [vmem:[#allocation5 + $0xd08] sm:$0xf0] }
 0x1e0   :  { %3979 = vmatpush.bf16.msrb.mxu2 %v5783_v27  ;;  %v6124_v27 = vld [vmem:[#allocation5 + $0xdb8] sm:$0xf0] }
 0x1e1   :  { %3992 = vmatpush.bf16.msrb.mxu3 %v5847_v10  ;;  %3954 = vmatmul.bf16.vlgmr.msrb.gmra.mxu0 %v7400_v61  ;;  %v5940_v61 = vld [vmem:[#allocation5 + $0xc48] sm:$0xf0]  ;;  %v3761_v3 = vadd.f32 %v3760_v56, %v3748_v54  ;;  %v5999_v10 = vor.u32 %v6918_v52, %v5996_v22  ;;  %v6127_v15 = vor.u32 %v6950_v63, %v6124_v27  ;;  %v6220_v52 = vld [vmem:[#allocation5 + $0xe78] sm:$0xf0]  ;;  %v6990_v54 = vld [vmem:[#allocation5 + $0xef4] sm:$0xf] }
 0x1e2   :  { %3998 = vmatpush.bf16.msra.mxu0 %v5967_v14  ;;  %3967 = vmatmul.bf16.vlgmr.msrb.gmra.mxu1 %v7404_v2  ;;  %v6132_v2 = vld [vmem:[#allocation5 + $0xdc8] sm:$0xf0]  ;;  %v5943_v30 = vor.u32 %v6904_v44, %v5940_v61  ;;  %v6063_v14 = vor.u32 %v6934_v62, %v6060_v23  ;;  %v6896_v61 = vld [vmem:[#allocation5 + $0xc04] sm:$0xf]  ;;  %v7006_v22 = vld [vmem:[#allocation5 + $0xf74] sm:$0xf] }
 0x1e3   :  { %4011 = vmatpush.bf16.msra.mxu1 %v6031_v16  ;;  %3980 = vmatmul.bf16.vlgmr.msrb.gmra.mxu2 %v7402_v1  ;;  %v6068_v1 = vld [vmem:[#allocation5 + $0xd48] sm:$0xf0]  ;;  %v6135_v57 = vor.u32 %v6952_v50, %v6132_v2  ;;  %v6900_v16 = vld [vmem:[#allocation5 + $0xc24] sm:$0xf]  ;;  %v6348_v62 = vld [vmem:[#allocation5 + $0xf78] sm:$0xf0] }
 0x1e4   :  { %4024 = vmatpush.bf16.msra.mxu2 %v6095_v34  ;;  %3993 = vmatmul.bf16.vlgmr.msrb.gmra.mxu3 %v7406_v5  ;;  %v6007_v5 = vor.u32 %v6920_v45, %v6004_v46  ;;  %v6071_v51 = vor.u32 %v6936_v48, %v6068_v1  ;;  %v5924_v34 = vld [vmem:[#allocation5 + $0xc28] sm:$0xf0]  ;;  %v6912_v48 = vld [vmem:[#allocation5 + $0xc84] sm:$0xf]  ;;  %v7022_v27 = vld [vmem:[#allocation5 + $0xff4] sm:$0xf] }
 0x1e5   :  { %4037 = vmatpush.bf16.msra.mxu3 %v6159_v9  ;;  %v6932_v9 = vld [vmem:[#allocation5 + $0xd24] sm:$0xf]  ;;  %v5908_v45 = vld [vmem:[#allocation5 + $0xc08] sm:$0xf0] }
 0x1e6   :  { %3999 = vmatpush.bf16.msra.mxu0 %v5959_v12  ;;  %v3773_v28 = vpop.f32.mrf.mxu2  ;;  %v5927_v12 = vor.u32 %v6900_v16, %v5924_v34  ;;  %v6055_v35 = vor.u32 %v6932_v9, %v6052_v13  ;;  %v5972_v1 = vld [vmem:[#allocation5 + $0xc88] sm:$0xf0]  ;;  %v6928_v50 = vld [vmem:[#allocation5 + $0xd04] sm:$0xf]  ;;  %v5911_v56 = vor.u32 %v6896_v61, %v5908_v45  ;;  %v6351_v16 = vor.u32 %v7006_v22, %v6348_v62  ;;  %v6380_v22 = vld [vmem:[#allocation5 + $0xfb8] sm:$0xf0] }
 0x1e7   :  { %4012 = vmatpush.bf16.msra.mxu1 %v6023_v20  ;;  %v3774_v37 = vadd.f32 %v3773_v28, %v3761_v3  ;;  %v3786_v33 = vpop.f32.mrf.mxu3  ;;  %v3762_v39 = vpop.f32.mrf.mxu1  ;;  %v5975_v23 = vor.u32 %v6912_v48, %v5972_v1  ;;  %v6039_v63 = vor.u32 %v6928_v50, %v6036_v49  ;;  %v6412_v3 = vld [vmem:[#allocation5 + $0xff8] sm:$0xf0]  ;;  %v6972_v34 = vld [vmem:[#allocation5 + $0xe64] sm:$0xf]  ;;  %v6340_v13 = vld [vmem:[#allocation5 + $0xf68] sm:$0xf0] }
 0x1e8   :  { %4025 = vmatpush.bf16.msra.mxu2 %v6087_v40  ;;  %v3749_v40 = vpop.f32.mrf.mxu0  ;;  %v6988_v28 = vld [vmem:[#allocation5 + $0xee4] sm:$0xf]  ;;  %v6215_v38 = vor.u32 %v6972_v34, %v6212_v8  ;;  %v6332_v39 = vld [vmem:[#allocation5 + $0xf58] sm:$0xf0]  ;;  %v6260_v45 = vld [vmem:[#allocation5 + $0xec8] sm:$0xf0] }
 0x1e9   :  { %4038 = vmatpush.bf16.msra.mxu3 %v6151_v53  ;;  %v7484_v20 = vadd.f32 %v3786_v33, %v3774_v37  ;;  %v5916_v53 = vld [vmem:[#allocation5 + $0xc18] sm:$0xf0]  ;;  %v7004_v9 = vld [vmem:[#allocation5 + $0xf64] sm:$0xf]  ;;  %v6404_v33 = vld [vmem:[#allocation5 + $0xfe8] sm:$0xf0]  ;;  %v6279_v19 = vor.u32 %v6988_v28, %v6276_v29 }
 0x1ea   :  { %4000 = vmatpush.bf16.msra.mxu0 %v5951_v31  ;;  %v6044_v31 = vld [vmem:[#allocation5 + $0xd18] sm:$0xf0]  ;;  %v5919_v44 = vor.u32 %v6898_v25, %v5916_v53  ;;  %v7020_v37 = vld [vmem:[#allocation5 + $0xfe4] sm:$0xf]  ;;  %v6970_v40 = vld [vmem:[#allocation5 + $0xe54] sm:$0xf] }
 0x1eb   :  { %4013 = vmatpush.bf16.msra.mxu1 %v6015_v47  ;;  %v6946_v47 = vld [vmem:[#allocation5 + $0xd94] sm:$0xf]  ;;  %v6047_v46 = vor.u32 %v6930_v58, %v6044_v31  ;;  %v6407_v25 = vor.u32 %v7020_v37, %v6404_v33  ;;  %v6268_v53 = vld [vmem:[#allocation5 + $0xed8] sm:$0xf0]  ;;  %v6388_v48 = vld [vmem:[#allocation5 + $0xfc8] sm:$0xf0] }
 0x1ec   :  { %4026 = vmatpush.bf16.msra.mxu2 %v6079_v32  ;;  %v6108_v32 = vld [vmem:[#allocation5 + $0xd98] sm:$0xf0]  ;;  %v6966_v49 = vld [vmem:[#allocation5 + $0xe34] sm:$0xf]  ;;  %v6308_v34 = vld [vmem:[#allocation5 + $0xf28] sm:$0xf0] }
 0x1ed   :  { %4039 = vmatpush.bf16.msra.mxu3 %v6143_v36  ;;  %v5983_v36 = vor.u32 %v6914_v24, %v5980_v42  ;;  %v7002_v24 = vld [vmem:[#allocation5 + $0xf54] sm:$0xf]  ;;  %v6396_v42 = vld [vmem:[#allocation5 + $0xfd8] sm:$0xf0]  ;;  %v6372_v29 = vld [vmem:[#allocation5 + $0xfa8] sm:$0xf0] }
 0x1ee   :  { %4001 = vmatpush.bf16.msra.mxu0 %v5943_v30  ;;  %v3775_v2 = vpop.f32.mrf.mxu2  ;;  %v6111_v30 = vor.u32 %v6946_v47, %v6108_v32  ;;  %v6335_v47 = vor.u32 %v7002_v24, %v6332_v39  ;;  %v6968_v32 = vld [vmem:[#allocation5 + $0xe44] sm:$0xf]  ;;  %v6300_v24 = vld [vmem:[#allocation5 + $0xf18] sm:$0xf0]  ;;  %v7010_v39 = vld [vmem:[#allocation5 + $0xf94] sm:$0xf] }
 0x1ef   :  { %4014 = vmatpush.bf16.msra.mxu1 %v6007_v5  ;;  %v6944_v5 = vld [vmem:[#allocation5 + $0xd84] sm:$0xf]  ;;  %v3788_v6 = vpop.f32.mrf.mxu3 }
 0x1f0   :  { %4027 = vmatpush.bf16.msra.mxu2 %v6071_v51  ;;  %v6100_v51 = vld [vmem:[#allocation5 + $0xd88] sm:$0xf0] }
 0x1f1   :  { %4040 = vmatpush.bf16.msra.mxu3 %v6135_v57  ;;  %v6284_v57 = vld [vmem:[#allocation5 + $0xef8] sm:$0xf0] }
 0x1f2   :  { %4002 = vmatpush.bf16.msra.mxu0 %v5935_v7  ;;  %v6103_v7 = vor.u32 %v6944_v5, %v6100_v51  ;;  %v6188_v5 = vld [vmem:[#allocation5 + $0xe38] sm:$0xf0]  ;;  %v6982_v51 = vld [vmem:[#allocation5 + $0xeb4] sm:$0xf] }
 0x1f3   :  { %4015 = vmatpush.bf16.msra.mxu1 %v5999_v10  ;;  %v6223_v10 = vor.u32 %v6974_v18, %v6220_v52  ;;  %v6252_v52 = vld [vmem:[#allocation5 + $0xeb8] sm:$0xf0]  ;;  %v6191_v62 = vor.u32 %v6966_v49, %v6188_v5  ;;  %v7030_v49 = vld [vmem:[#allocation8 + $0x30] sm:$0xff]  ;;  %v7029_v5 = vld [vmem:[#allocation8 + $0x28] sm:$0xff] }
 0x1f4   :  { %4028 = vmatpush.bf16.msra.mxu2 %v6063_v14  ;;  %v6287_v14 = vor.u32 %v6990_v54, %v6284_v57  ;;  %v6998_v54 = vld [vmem:[#allocation5 + $0xf34] sm:$0xf] }
 0x1f5   :  { %4041 = vmatpush.bf16.msra.mxu3 %v6127_v15  ;;  %v6415_v15 = vor.u32 %v7022_v27, %v6412_v3  ;;  %v7014_v57 = vld [vmem:[#allocation5 + $0xfb4] sm:$0xf]  ;;  %v6180_v27 = vld [vmem:[#allocation5 + $0xe28] sm:$0xf0]  ;;  %v6980_v3 = vld [vmem:[#allocation5 + $0xea4] sm:$0xf] }
 0x1f6   :  { %4003 = vmatpush.bf16.msra.mxu0 %v5927_v12  ;;  %v6343_v12 = vor.u32 %v7004_v9, %v6340_v13 }
 0x1f7   :  { %4016 = vmatpush.bf16.msra.mxu1 %v5991_v26  ;;  %v6204_v26 = vld [vmem:[#allocation5 + $0xe58] sm:$0xf0] }
 0x1f8   :  { %4029 = vmatpush.bf16.msra.mxu2 %v6055_v35  ;;  %v6986_v35 = vld [vmem:[#allocation5 + $0xed4] sm:$0xf]  ;;  %v6207_v58 = vor.u32 %v6970_v40, %v6204_v26  ;;  %v6172_v40 = vld [vmem:[#allocation5 + $0xe18] sm:$0xf0] }
 0x1f9   :  { %4042 = vmatpush.bf16.msra.mxu3 %v6119_v41  ;;  %v7018_v41 = vld [vmem:[#allocation5 + $0xfd4] sm:$0xf]  ;;  %v6271_v31 = vor.u32 %v6986_v35, %v6268_v53 }
 0x1fa   :  { %4004 = vmatpush.bf16.msra.mxu0 %v5919_v44  ;;  %v6984_v44 = vld [vmem:[#allocation5 + $0xec4] sm:$0xf]  ;;  %v6399_v61 = vor.u32 %v7018_v41, %v6396_v42  ;;  %v6978_v26 = vld [vmem:[#allocation5 + $0xe94] sm:$0xf]  ;;  %v6364_v41 = vld [vmem:[#allocation5 + $0xf98] sm:$0xf0] }
 0x1fb   :  { %4017 = vmatpush.bf16.msra.mxu1 %v5983_v36  ;;  %v7000_v36 = vld [vmem:[#allocation5 + $0xf44] sm:$0xf]  ;;  %v6263_v2 = vor.u32 %v6984_v44, %v6260_v45  ;;  %v6994_v53 = vld [vmem:[#allocation5 + $0xf14] sm:$0xf]  ;;  %v6367_v44 = vor.u32 %v7010_v39, %v6364_v41 }
 0x1fc   :  { %4030 = vmatpush.bf16.msra.mxu2 %v6047_v46  ;;  %v6992_v45 = vld [vmem:[#allocation5 + $0xf04] sm:$0xf] }
 0x1fd   :  { %4043 = vmatpush.bf16.msra.mxu3 %v6111_v30  ;;  %v7036_v41 = vld [vmem:[#allocation8 + $0x60] sm:$0xff] }
 0x1fe   :  { %4005 = vmatpush.bf16.msra.mxu0 %v5911_v56  ;;  %v3799_v46 = vpop.f32.mrf.mxu0  ;;  %v6316_v56 = vld [vmem:[#allocation5 + $0xf38] sm:$0xf0] }
 0x1ff   :  { %4018 = vmatpush.bf16.msra.mxu1 %v5975_v23  ;;  %v3812_v50 = vpop.f32.mrf.mxu1  ;;  %v6319_v23 = vor.u32 %v6998_v54, %v6316_v56  ;;  %v7027_v56 = vld [vmem:[#allocation8 + $0x18] sm:$0xff] }
 0x200   :  { %4031 = vmatpush.bf16.msra.mxu2 %v6039_v63  ;;  %v6964_v63 = vld [vmem:[#allocation5 + $0xe24] sm:$0xf] }
 0x201   :  { %4044 = vmatpush.bf16.msra.mxu3 %v6103_v7  ;;  %4006 = vmatmul.bf16.vlgmr.msra.gmra.mxu0 %v7415_v55  ;;  %v6196_v55 = vld [vmem:[#allocation5 + $0xe48] sm:$0xf0]  ;;  %v6383_v7 = vor.u32 %v7014_v57, %v6380_v22  ;;  %v6183_v13 = vor.u32 %v6964_v63, %v6180_v27  ;;  %v7024_v27 = vld [vmem:[#allocation8] sm:$0xff] }
 0x202   :  { %4050 = vmatpush.bf16.msrb.mxu0 %v6223_v10  ;;  %4019 = vmatmul.bf16.vlgmr.msra.gmra.mxu1 %v7419_v60  ;;  %v7016_v60 = vld [vmem:[#allocation5 + $0xfc4] sm:$0xf]  ;;  %v6199_v1 = vor.u32 %v6968_v32, %v6196_v55  ;;  %v6164_v32 = vld [vmem:[#allocation5 + $0xe08] sm:$0xf0] }
 0x203   :  { %4063 = vmatpush.bf16.msrb.mxu1 %v6287_v14  ;;  %4032 = vmatmul.bf16.vlgmr.msra.gmra.mxu2 %v7417_v59  ;;  %v6324_v59 = vld [vmem:[#allocation5 + $0xf48] sm:$0xf0]  ;;  %v6391_v6 = vor.u32 %v7016_v60, %v6388_v48  ;;  %v6976_v55 = vld [vmem:[#allocation5 + $0xe84] sm:$0xf] }
 0x204   :  { %4076 = vmatpush.bf16.msrb.mxu2 %v6351_v16  ;;  %4045 = vmatmul.bf16.vlgmr.msra.gmra.mxu3 %v7421_v0  ;;  %v3800_v0 = vadd.f32 %v3799_v46, %v7484_v20  ;;  %v6327_v30 = vor.u32 %v7000_v36, %v6324_v59  ;;  %v6255_v20 = vor.u32 %v6982_v51, %v6252_v52  ;;  %v6244_v14 = vld [vmem:[#allocation5 + $0xea8] sm:$0xf0]  ;;  %v6996_v16 = vld [vmem:[#allocation5 + $0xf24] sm:$0xf] }
 0x205   :  { %4089 = vmatpush.bf16.msrb.mxu3 %v6415_v15  ;;  %v7012_v15 = vld [vmem:[#allocation5 + $0xfa4] sm:$0xf]  ;;  %v6292_v36 = vld [vmem:[#allocation5 + $0xf08] sm:$0xf0] }
 0x206   :  { %4051 = vmatpush.bf16.msrb.mxu0 %v6215_v38  ;;  %v3813_v18 = vadd.f32 %v3812_v50, %v3800_v0  ;;  %v3825_v10 = vpop.f32.mrf.mxu2  ;;  %v3801_v9 = vpop.f32.mrf.mxu0  ;;  %v6247_v38 = vor.u32 %v6980_v3, %v6244_v14  ;;  %v6375_v35 = vor.u32 %v7012_v15, %v6372_v29  ;;  %v7008_v46 = vld [vmem:[#allocation5 + $0xf84] sm:$0xf]  ;;  %v6356_v60 = vld [vmem:[#allocation5 + $0xf88] sm:$0xf0]  ;;  %v6295_v50 = vor.u32 %v6992_v45, %v6292_v36 }
 0x207   :  { %4064 = vmatpush.bf16.msrb.mxu1 %v6279_v19  ;;  %v3838_v28 = vpop.f32.mrf.mxu3  ;;  %v3814_v37 = vpop.f32.mrf.mxu1  ;;  %v6311_v19 = vor.u32 %v6996_v16, %v6308_v34  ;;  %v4102_v3 = vmax.f32 %v7471_v21, 0.0 }
 0x208   :  { %4077 = vmatpush.bf16.msrb.mxu2 %v6343_v12  ;;  %v3826_v8 = vadd.f32 %v3825_v10, %v3813_v18  ;;  %v6962_v12 = vld [vmem:[#allocation5 + $0xe14] sm:$0xf]  ;;  %v7028_v18 = vld [vmem:[#allocation8 + $0x20] sm:$0xff] }
 0x209   :  { %4090 = vmatpush.bf16.msrb.mxu3 %v6407_v25  ;;  %v6236_v25 = vld [vmem:[#allocation5 + $0xe98] sm:$0xf0]  ;;  %v6175_v42 = vor.u32 %v6962_v12, %v6172_v40 }
 0x20a   :  { %4052 = vmatpush.bf16.msrb.mxu0 %v6207_v58  ;;  %v3839_v33 = vadd.f32 %v3838_v28, %v3826_v8  ;;  %v6239_v58 = vor.u32 %v6978_v26, %v6236_v25  ;;  %v7039_v26 = vld [vmem:[#allocation8 + $0x78] sm:$0xff]  ;;  %v7038_v25 = vld [vmem:[#allocation8 + $0x70] sm:$0xff] }
 0x20b   :  { %4065 = vmatpush.bf16.msrb.mxu1 %v6271_v31  ;;  %v6303_v31 = vor.u32 %v6994_v53, %v6300_v24  ;;  %v7037_v53 = vld [vmem:[#allocation8 + $0x68] sm:$0xff] }
 0x20c   :  { %4078 = vmatpush.bf16.msrb.mxu2 %v6335_v47  ;;  %v6960_v47 = vld [vmem:[#allocation5 + $0xe04] sm:$0xf] }
 0x20d   :  { %4091 = vmatpush.bf16.msrb.mxu3 %v6399_v61  ;;  %v6228_v61 = vld [vmem:[#allocation5 + $0xe88] sm:$0xf0]  ;;  %v6167_v0 = vor.u32 %v6960_v47, %v6164_v32 }
 0x20e   :  { %4053 = vmatpush.bf16.msrb.mxu0 %v6199_v1  ;;  %v3827_v59 = vpop.f32.mrf.mxu2  ;;  %v6231_v1 = vor.u32 %v6976_v55, %v6228_v61  ;;  %v7033_v32 = vld [vmem:[#allocation8 + $0x48] sm:$0xff] }
 0x20f   :  { %4066 = vmatpush.bf16.msrb.mxu1 %v6263_v2  ;;  %v3840_v48 = vpop.f32.mrf.mxu3  ;;  %v6359_v2 = vor.u32 %v7008_v46, %v6356_v60  ;;  %v7032_v59 = vld [vmem:[#allocation8 + $0x40] sm:$0xff] }
 0x210   :  { %4079 = vmatpush.bf16.msrb.mxu2 %v6327_v30  ;;  %v7031_v30 = vld [vmem:[#allocation8 + $0x38] sm:$0xff] }
 0x211   :  { %4092 = vmatpush.bf16.msrb.mxu3 %v6391_v6 }
 0x212   :  { %4054 = vmatpush.bf16.msrb.mxu0 %v6191_v62 }
 0x213   :  { %4067 = vmatpush.bf16.msrb.mxu1 %v6255_v20 }
 0x214   :  { %4080 = vmatpush.bf16.msrb.mxu2 %v6319_v23 }
 0x215   :  { %4093 = vmatpush.bf16.msrb.mxu3 %v6383_v7  ;;  %v4104_v7 = vpack.c.bf16 %v4102_v3, %v4102_v3  ;;  %v7043_v3 = vld [vmem:[#allocation11 + $0x18] sm:$0xff] }
 0x216   :  { %4055 = vmatpush.bf16.msrb.mxu0 %v6183_v13 }
 0x217   :  { %4068 = vmatpush.bf16.msrb.mxu1 %v6247_v38 }
 0x218   :  { %4081 = vmatpush.bf16.msrb.mxu2 %v6311_v19 }
 0x219   :  { %4094 = vmatpush.bf16.msrb.mxu3 %v6375_v35 }
 0x21a   :  { %4056 = vmatpush.bf16.msrb.mxu0 %v6175_v42  ;;  %v7035_v42 = vld [vmem:[#allocation8 + $0x58] sm:$0xff] }
 0x21b   :  { %4069 = vmatpush.bf16.msrb.mxu1 %v6239_v58 }
 0x21c   :  { %4082 = vmatpush.bf16.msrb.mxu2 %v6303_v31  ;;  %v7034_v31 = vld [vmem:[#allocation8 + $0x50] sm:$0xff] }
 0x21d   :  { %4095 = vmatpush.bf16.msrb.mxu3 %v6367_v44 }
 0x21e   :  { %4057 = vmatpush.bf16.msrb.mxu0 %v6167_v0  ;;  %v3851_v51 = vpop.f32.mrf.mxu0 }
 0x21f   :  { %4070 = vmatpush.bf16.msrb.mxu1 %v6231_v1  ;;  %v3852_v6 = vadd.f32 %v3851_v51, %v3839_v33  ;;  %v3864_v52 = vpop.f32.mrf.mxu1 }
 0x220   :  { %4083 = vmatpush.bf16.msrb.mxu2 %v6295_v50 }
 0x221   :  { %4096 = vmatpush.bf16.msrb.mxu3 %v6359_v2  ;;  %4058 = vmatmul.bf16.vlgmr.msrb.gmra.mxu0 %v7430_v4  ;;  %v3865_v54 = vadd.f32 %v3864_v52, %v3852_v6  ;;  %v7047_v52 = vld [vmem:[#allocation11 + $0x38] sm:$0xff] }
 0x222   :  { %4238 = vmatpush.bf16.msra.mxu0 %v7031_v30  ;;  %4071 = vmatmul.bf16.vlgmr.msrb.gmra.mxu1 %v7434_v43  ;;  %v7026_v43 = vld [vmem:[#allocation8 + $0x10] sm:$0xff] }
 0x223   :  { %4084 = vmatmul.bf16.vlgmr.msrb.gmra.mxu2 %v7432_v11  ;;  %4251 = vmatpush.bf16.msra.mxu1 %v7039_v26 }
 0x224   :  { %4097 = vmatmul.bf16.vlgmr.msrb.gmra.mxu3 %v7436_v17  ;;  %v7025_v17 = vld [vmem:[#allocation8 + $0x8] sm:$0xff]  ;;  %4334 = vmatpush.bf16.msra.mxu2 %v7047_v52 }
 0x226   :  { %4239 = vmatpush.bf16.msra.mxu0 %v7030_v49  ;;  %v3877_v57 = vpop.f32.mrf.mxu2  ;;  %v3853_v4 = vpop.f32.mrf.mxu0 }
 0x227   :  { %v3878_v22 = vadd.f32 %v3877_v57, %v3865_v54  ;;  %v3890_v62 = vpop.f32.mrf.mxu3  ;;  %v3866_v20 = vpop.f32.mrf.mxu1  ;;  %4252 = vmatpush.bf16.msra.mxu1 %v7038_v25 }
 0x229   :  { %v3891_v11 = vadd.f32 %v3890_v62, %v3878_v22  ;;  %v7046_v62 = vld [vmem:[#allocation11 + $0x30] sm:$0xff] }
 0x22a   :  { %4240 = vmatpush.bf16.msra.mxu0 %v7029_v5  ;;  %4335 = vmatpush.bf16.msra.mxu2 %v7046_v62 }
 0x22b   :  { %4253 = vmatpush.bf16.msra.mxu1 %v7037_v53 }
 0x22e   :  { %4241 = vmatpush.bf16.msra.mxu0 %v7028_v18  ;;  %v3879_v23 = vpop.f32.mrf.mxu2 }
 0x22f   :  { %v3892_v63 = vpop.f32.mrf.mxu3  ;;  %4254 = vmatpush.bf16.msra.mxu1 %v7036_v41 }
 0x232   :  { %4242 = vmatpush.bf16.msra.mxu0 %v7027_v56 }
 0x233   :  { %4255 = vmatpush.bf16.msra.mxu1 %v7035_v42 }
 0x236   :  { %4243 = vmatpush.bf16.msra.mxu0 %v7026_v43 }
 0x237   :  { %4256 = vmatpush.bf16.msra.mxu1 %v7034_v31 }
 0x23a   :  { %4244 = vmatpush.bf16.msra.mxu0 %v7025_v17 }
 0x23b   :  { %4257 = vmatpush.bf16.msra.mxu1 %v7033_v32 }
 0x23e   :  { %4245 = vmatpush.bf16.msra.mxu0 %v7024_v27  ;;  %v3903_v10 = vpop.f32.mrf.mxu0  ;;  %v7044_v27 = vld [vmem:[#allocation11 + $0x20] sm:$0xff] }
 0x23f   :  { %v3904_v14 = vadd.f32 %v3903_v10, %v3891_v11  ;;  %v3916_v16 = vpop.f32.mrf.mxu1  ;;  %4258 = vmatpush.bf16.msra.mxu1 %v7032_v59  ;;  %v7045_v11 = vld [vmem:[#allocation11 + $0x28] sm:$0xff] }
 0x240   :  { %4336 = vmatpush.bf16.msra.mxu2 %v7045_v11 }
 0x241   :  { %4246 = vmatmul.bf16.vlgmr.msra.gmra.mxu0 %v4104_v7  ;;  %v3917_v34 = vadd.f32 %v3916_v16, %v3904_v14  ;;  %v7042_v7 = vld [vmem:[#allocation11 + $0x10] sm:$0xff]  ;;  %v7041_v16 = vld [vmem:[#allocation11 + $0x8] sm:$0xff] }
 0x244   :  { %4337 = vmatpush.bf16.msra.mxu2 %v7044_v27 }
 0x246   :  { %v3929_v8 = vpop.f32.mrf.mxu2  ;;  %v3905_v29 = vpop.f32.mrf.mxu0 }
 0x247   :  { %v3930_v28 = vadd.f32 %v3929_v8, %v3917_v34  ;;  %v3942_v15 = vpop.f32.mrf.mxu3  ;;  %v3918_v9 = vpop.f32.mrf.mxu1  ;;  %v7040_v34 = vld [vmem:[#allocation11] sm:$0xff]  ;;  %v7060_v8 = vld [vmem:[#allocation10] ss:$0 sm:$0xff] }
 0x248   :  { %4338 = vmatpush.bf16.msra.mxu2 %v7043_v3 }
 0x249   :  { %v3943_v13 = vadd.f32 %v3942_v15, %v3930_v28 }
 0x24c   :  { %4339 = vmatpush.bf16.msra.mxu2 %v7042_v7 }
 0x24e   :  { %v3931_v37 = vpop.f32.mrf.mxu2 }
 0x24f   :  { %v3944_v33 = vpop.f32.mrf.mxu3 }
 0x250   :  { %4340 = vmatpush.bf16.msra.mxu2 %v7041_v16  ;;  %v7061_v33 = vld [vmem:[#allocation13] ss:$0 sm:$0xff] }
 0x254   :  { %4341 = vmatpush.bf16.msra.mxu2 %v7040_v34 }
 0x25e   :  { %v3955_v38 = vpop.f32.mrf.mxu0 }
 0x25f   :  { %v3968_v19 = vpop.f32.mrf.mxu1  ;;  %v3956_v55 = vadd.f32 %v3955_v38, %v3943_v13 }
 0x261   :  { %v3969_v46 = vadd.f32 %v3968_v19, %v3956_v55 }
 0x266   :  { %v3981_v12 = vpop.f32.mrf.mxu2  ;;  %v3957_v21 = vpop.f32.mrf.mxu0 }
 0x267   :  { %v3994_v40 = vpop.f32.mrf.mxu3  ;;  %v3970_v35 = vpop.f32.mrf.mxu1  ;;  %v3982_v60 = vadd.f32 %v3981_v12, %v3969_v46 }
 0x269   :  { %v3995_v1 = vadd.f32 %v3994_v40, %v3982_v60 }
 0x26e   :  { %v3983_v24 = vpop.f32.mrf.mxu2 }
 0x26f   :  { %v3996_v39 = vpop.f32.mrf.mxu3 }
 0x27e   :  { %v4007_v58 = vpop.f32.mrf.mxu0 }
 0x27f   :  { %v4020_v47 = vpop.f32.mrf.mxu1  ;;  %v4008_v50 = vadd.f32 %v4007_v58, %v3995_v1 }
 0x281   :  { %v4021_v2 = vadd.f32 %v4020_v47, %v4008_v50 }
 0x286   :  { %v4033_v44 = vpop.f32.mrf.mxu2  ;;  %v4009_v45 = vpop.f32.mrf.mxu0 }
 0x287   :  { %v4046_v61 = vpop.f32.mrf.mxu3  ;;  %v4022_v36 = vpop.f32.mrf.mxu1  ;;  %v4034_v30 = vadd.f32 %v4033_v44, %v4021_v2 }
 0x289   :  { %v4047_v49 = vadd.f32 %v4046_v61, %v4034_v30 }
 0x28e   :  { %v4035_v48 = vpop.f32.mrf.mxu2 }
 0x28f   :  { %v4048_v0 = vpop.f32.mrf.mxu3 }
 0x29e   :  { %v4059_v5 = vpop.f32.mrf.mxu0 }
 0x29f   :  { %v4072_v51 = vpop.f32.mrf.mxu1  ;;  %v4060_v6 = vadd.f32 %v4059_v5, %v4047_v49 }
 0x2a1   :  { %v4073_v18 = vadd.f32 %v4072_v51, %v4060_v6 }
 0x2a6   :  { %v4085_v54 = vpop.f32.mrf.mxu2  ;;  %v4061_v22 = vpop.f32.mrf.mxu0 }
 0x2a7   :  { %v4086_v56 = vadd.f32 %v4085_v54, %v4073_v18  ;;  %v4098_v57 = vpop.f32.mrf.mxu3  ;;  %v4074_v4 = vpop.f32.mrf.mxu1 }
 0x2a9   :  { %v4099_v43 = vadd.f32 %v4098_v57, %v4086_v56 }
 0x2ab   :  { %v4103_v20 = vmax.f32 %v4099_v43, 0.0 }
 0x2ad   :  { %v4105_v17 = vpack.c.bf16 %v4103_v20, %v4103_v20 }
 0x2ae   :  { %v4087_v23 = vpop.f32.mrf.mxu2 }
 0x2af   :  { %v4100_v63 = vpop.f32.mrf.mxu3  ;;  %4259 = vmatmul.bf16.vlgmr.msra.gmra.mxu1 %v4105_v17 }
 0x2be   :  { %v4247_v10 = vpop.f32.mrf.mxu0 }
 0x2bf   :  { %v4248_v28 = vadd.f32 %v7060_v8, %v4247_v10 }
 0x2c6   :  { %v4249_v14 = vpop.f32.mrf.mxu0 }
 0x32c   :  { %v4260_v15 = vpop.f32.mrf.mxu1 }
 0x32d   :  { %v4261_v29 = vadd.f32 %v4260_v15, %v4248_v28 }
 0x32f   :  { %v4264_v9 = vmax.f32 %v4261_v29, 0.0 }
 0x331   :  { %v4265_v13 = vpack.c.bf16 %v4264_v9, %v4264_v9 }
 0x333   :  { %4342 = vmatmul.bf16.vlgmr.msra.gmra.mxu2 %v4265_v13 }
 0x334   :  { %v4262_v37 = vpop.f32.mrf.mxu1 }
 0x3b6   :  { %v4343_v38 = vpop.f32.mrf.mxu2 }
 0x3b7   :  { %v4344_v19 = vadd.f32 %v7061_v33, %v4343_v38 }
 0x3b9   :  { %4347 = vst [vmem:[#allocation14] sm:$0xff] %v4344_v19 }
 0x3ba   :  { %4358 = dma.vmem_to_hbm [thread:$0]  %s4354_s6, 128, %s4356_s14, [#allocation4]  }
 0x3be   :  { %v4345_v12 = vpop.f32.mrf.mxu2 }
 0x3bf   :  { %7263 = dma.done.wait [#allocation4], 128  }
 0x3c0   :  { %7264 = vsyncadd [#allocation4], 4294967168 }
 0x3c1   :  { %4363 = vsyncpa [#allocation3], 1 }
 0x3c2   :  { %4364 = vsyncpa [#allocation6], 1 }
 0x3c3   :  { %4365 = vsyncpa [#allocation9], 1 }
 0x3c4   :  { %4366 = vsyncpa [#allocation12], 1 }
 0x3c5   :  { %4367 = vsyncpa [#allocation4], 1 }

</bundles_post_ra>
